<compile_context>
chip_gen: v7x
topology: tpu7x:2x2x1
jax: 0.10.0
libtpu: 0.0.40
codegen_flags: <defaults>
</compile_context>

<pallas_src>
import functools
import math

import jax
import jax.numpy as jnp
from jax.experimental import pallas as pl
from jax.experimental.pallas import tpu as pltpu  # noqa: F401  (TPU backend)

NEG_BIG = -1e30  # finite "-inf": avoids NaN when a key row is fully masked


# ----------------------------------------------------------------------------
# Pallas kernels
# ----------------------------------------------------------------------------
def _linear_kernel(x_ref, w_ref, b_ref, o_ref, *, activation):
    """o = act(x @ w + b). bf16 MXU operands, f32 accumulation."""
    x = x_ref[...].astype(jnp.bfloat16)
    w = w_ref[...].astype(jnp.bfloat16)
    acc = jnp.dot(x, w, preferred_element_type=jnp.float32) + b_ref[...]
    if activation == "relu":
        acc = jnp.maximum(acc, 0.0)
    o_ref[...] = acc.astype(o_ref.dtype)


def linear(x, w, b, activation="none", out_dtype=jnp.float32):
    M = x.shape[0]
    N = w.shape[1]
    kern = functools.partial(_linear_kernel, activation=activation)
    return pl.pallas_call(
        kern, out_shape=jax.ShapeDtypeStruct((M, N), out_dtype)
    )(x, w, b)


def _split_proj_kernel(x_ref, w_ref, b_ref, *o_refs):
    """One matmul against a concatenated weight, split into several outputs."""
    x = x_ref[...].astype(jnp.bfloat16)
    w = w_ref[...].astype(jnp.bfloat16)
    acc = jnp.dot(x, w, preferred_element_type=jnp.float32) + b_ref[...]
    off = 0
    for o_ref in o_refs:
        width = o_ref.shape[-1]
        o_ref[...] = acc[:, off:off + width].astype(o_ref.dtype)
        off += width


def fused_proj(x, w, b, out_dims, out_dtype=jnp.bfloat16):
    """x:(M,K) @ w:(K,sum(out_dims)) + b -> tuple of (M,d) arrays (one kernel)."""
    M = x.shape[0]
    out_shapes = tuple(jax.ShapeDtypeStruct((M, d), out_dtype) for d in out_dims)
    return pl.pallas_call(_split_proj_kernel, out_shape=out_shapes)(x, w, b)


def _mha_kernel(*refs, scale, causal, heads, has_kp):
    """All-heads, all-batch scaled-dot-product attention in one block.

    q,k,v: (N, Sq/Sk, E) bf16.  Optional key-padding additive bias (N,1,Sk) f32.
    Causal mask built in-kernel via iota.  Softmax in f32, dots in bf16.
    """
    if has_kp:
        q_ref, k_ref, v_ref, kp_ref, o_ref = refs
    else:
        q_ref, k_ref, v_ref, o_ref = refs
        kp_ref = None

    q = q_ref[...]
    k = k_ref[...]
    v = v_ref[...]
    N, Sq, E = q.shape
    Sk = k.shape[1]
    Dh = E // heads

    if causal:
        row = jax.lax.broadcasted_iota(jnp.int32, (N, Sq, Sk), 1)
        col = jax.lax.broadcasted_iota(jnp.int32, (N, Sq, Sk), 2)
        causal_bias = jnp.where(col > row, NEG_BIG, 0.0).astype(jnp.float32)
    else:
        causal_bias = None

    outs = []
    for h in range(heads):  # static unroll; heads live in the lane dimension
        sl = slice(h * Dh, (h + 1) * Dh)
        qs, ks, vs = q[:, :, sl], k[:, :, sl], v[:, :, sl]
        s = jnp.einsum("bqd,bkd->bqk", qs, ks,
                       preferred_element_type=jnp.float32) * scale
        if has_kp:
            s = s + kp_ref[...]          # (N,1,Sk) broadcasts over queries
        if causal:
            s = s + causal_bias
        m = jnp.max(s, axis=-1, keepdims=True)
        p = jnp.exp(s - m)
        p = p / jnp.sum(p, axis=-1, keepdims=True)
        o = jnp.einsum("bqk,bkd->bqd", p.astype(jnp.bfloat16), vs,
                       preferred_element_type=jnp.float32)
        outs.append(o)
    o_ref[...] = jnp.concatenate(outs, axis=-1).astype(o_ref.dtype)


def mha_attention(q3, k3, v3, kp_bias, causal, heads):
    """q3:(N,Sq,E) k3,v3:(N,Sk,E) bf16; kp_bias:(N,1,Sk) f32 or None."""
    N, Sq, E = q3.shape
    Dh = E // heads
    has_kp = kp_bias is not None
    kern = functools.partial(_mha_kernel, scale=1.0 / math.sqrt(Dh),
                             causal=causal, heads=heads, has_kp=has_kp)
    args = (q3, k3, v3) + ((kp_bias,) if has_kp else ())
    return pl.pallas_call(
        kern, out_shape=jax.ShapeDtypeStruct((N, Sq, E), jnp.bfloat16)
    )(*args)


def _proj_res_ln_kernel(a_ref, w_ref, b_ref, res_ref, g_ref, beta_ref, o_ref, *, eps):
    """o = LayerNorm(res + (a @ w + b)); matmul in bf16, LN in f32."""
    a = a_ref[...].astype(jnp.bfloat16)
    w = w_ref[...].astype(jnp.bfloat16)
    proj = jnp.dot(a, w, preferred_element_type=jnp.float32) + b_ref[...]
    x = res_ref[...] + proj
    mean = jnp.mean(x, axis=-1, keepdims=True)
    var = jnp.mean((x - mean) ** 2, axis=-1, keepdims=True)
    y = (x - mean) * jax.lax.rsqrt(var + eps)
    o_ref[...] = (y * g_ref[...] + beta_ref[...]).astype(o_ref.dtype)


def proj_residual_ln(a, w, b, res, g, beta, eps=1e-5):
    kern = functools.partial(_proj_res_ln_kernel, eps=eps)
    return pl.pallas_call(
        kern, out_shape=jax.ShapeDtypeStruct(res.shape, jnp.float32)
    )(a, w, b, res, g, beta)


def _ffn_res_ln_kernel(x_ref, w1_ref, b1_ref, w2_ref, b2_ref, g_ref, beta_ref,
                       o_ref, *, eps):
    """o = LayerNorm(x + lin2(relu(lin1(x)))). FF intermediate stays in VMEM."""
    x = x_ref[...]
    xb = x.astype(jnp.bfloat16)
    h = jnp.dot(xb, w1_ref[...].astype(jnp.bfloat16),
                preferred_element_type=jnp.float32) + b1_ref[...]
    h = jnp.maximum(h, 0.0)
    y = jnp.dot(h.astype(jnp.bfloat16), w2_ref[...].astype(jnp.bfloat16),
                preferred_element_type=jnp.float32) + b2_ref[...]
    z = x + y
    mean = jnp.mean(z, axis=-1, keepdims=True)
    var = jnp.mean((z - mean) ** 2, axis=-1, keepdims=True)
    n = (z - mean) * jax.lax.rsqrt(var + eps)
    o_ref[...] = (n * g_ref[...] + beta_ref[...]).astype(o_ref.dtype)


def ffn_residual_ln(x, w1, b1, w2, b2, g, beta, eps=1e-5):
    kern = functools.partial(_ffn_res_ln_kernel, eps=eps)
    return pl.pallas_call(
        kern, out_shape=jax.ShapeDtypeStruct(x.shape, jnp.float32)
    )(x, w1, b1, w2, b2, g, beta)


def _bottleneck_kernel(x_ref, w1_ref, b1_ref, w2_ref, b2_ref, w3_ref, b3_ref, o_ref):
    """ff1 -> ReLU -> sigmoid -> round -> ff2a -> ReLU -> ff2b, one kernel."""
    x = x_ref[...].astype(jnp.bfloat16)
    h = jnp.dot(x, w1_ref[...].astype(jnp.bfloat16),
                preferred_element_type=jnp.float32) + b1_ref[...]
    h = jnp.maximum(h, 0.0)            # nn.ReLU
    h = jax.nn.sigmoid(h)              # F.sigmoid
    h = jnp.round(h)                   # PassthroughRound.forward
    h = jnp.dot(h.astype(jnp.bfloat16), w2_ref[...].astype(jnp.bfloat16),
                preferred_element_type=jnp.float32) + b2_ref[...]
    h = jnp.maximum(h, 0.0)            # nn.ReLU
    y = jnp.dot(h.astype(jnp.bfloat16), w3_ref[...].astype(jnp.bfloat16),
                preferred_element_type=jnp.float32) + b3_ref[...]
    o_ref[...] = y.astype(o_ref.dtype)


def bottleneck(flat, params):
    out_dim = params["ff2b_w"].shape[1]
    return pl.pallas_call(
        _bottleneck_kernel,
        out_shape=jax.ShapeDtypeStruct((flat.shape[0], out_dim), jnp.float32),
    )(flat, params["ff1_w"], params["ff1_b"], params["ff2a_w"], params["ff2a_b"],
      params["ff2b_w"], params["ff2b_b"])


# ----------------------------------------------------------------------------
# Model building blocks (batch-first (N, S, E) layout, flattened to (N*S, E))
# ----------------------------------------------------------------------------
def encoder_layer(x2d, p, heads, N, S, kp_bias):
    E = x2d.shape[-1]
    # self-attention sublayer (post-norm): x = LN(x + MHA(x))
    q2, k2, v2 = fused_proj(x2d, p["self"]["qkv_w"], p["self"]["qkv_b"], (E, E, E))
    attn = mha_attention(q2.reshape(N, S, E), k2.reshape(N, S, E),
                         v2.reshape(N, S, E), kp_bias, False, heads)
    x2d = proj_residual_ln(attn.reshape(N * S, E), p["self"]["o_w"],
                           p["self"]["o_b"], x2d, p["ln1_g"], p["ln1_b"])
    # feed-forward sublayer: x = LN(x + FFN(x))
    x2d = ffn_residual_ln(x2d, p["lin1_w"], p["lin1_b"], p["lin2_w"], p["lin2_b"],
                          p["ln2_g"], p["ln2_b"])
    return x2d


def decoder_layer(y2d, mem2d, p, heads, N, T, S, tgt_kp_bias):
    E = y2d.shape[-1]
    # masked self-attention
    q2, k2, v2 = fused_proj(y2d, p["self"]["qkv_w"], p["self"]["qkv_b"], (E, E, E))
    attn = mha_attention(q2.reshape(N, T, E), k2.reshape(N, T, E),
                         v2.reshape(N, T, E), tgt_kp_bias, True, heads)
    y2d = proj_residual_ln(attn.reshape(N * T, E), p["self"]["o_w"],
                           p["self"]["o_b"], y2d, p["ln1_g"], p["ln1_b"])
    # cross-attention (reference passes no memory masks)
    q2 = linear(y2d, p["cross"]["q_w"], p["cross"]["q_b"], out_dtype=jnp.bfloat16)
    k2, v2 = fused_proj(mem2d, p["cross"]["kv_w"], p["cross"]["kv_b"], (E, E))
    attn = mha_attention(q2.reshape(N, T, E), k2.reshape(N, S, E),
                         v2.reshape(N, S, E), None, False, heads)
    y2d = proj_residual_ln(attn.reshape(N * T, E), p["cross"]["o_w"],
                           p["cross"]["o_b"], y2d, p["ln2_g"], p["ln2_b"])
    # feed-forward
    y2d = ffn_residual_ln(y2d, p["lin1_w"], p["lin1_b"], p["lin2_w"], p["lin2_b"],
                          p["ln3_g"], p["ln3_b"])
    return y2d


def transformer_forward(params, src, trg, cfg):
    E = cfg["embed_size"]
    H = cfg["heads"]
    S, N = src.shape
    T, _ = trg.shape

    # --- embeddings (batch-first) -------------------------------------------
    src_t = src.T                                    # (N, S)
    trg_t = trg.T                                    # (N, T)
    embed_src = (jnp.take(params["src_word_emb"], src_t, axis=0)
                 + params["src_pos_emb"][None, :S, :])
    embed_trg = (jnp.take(params["trg_word_emb"], trg_t, axis=0)
                 + params["trg_pos_emb"][None, :T, :])

    # additive key-padding biases, (N, 1, S/T); reference uses src_pad_idx for both
    src_kp = jnp.where(src_t == cfg["src_pad_idx"], NEG_BIG, 0.0
                       ).astype(jnp.float32)[:, None, :]
    trg_kp = jnp.where(trg_t == cfg["src_pad_idx"], NEG_BIG, 0.0
                       ).astype(jnp.float32)[:, None, :]

    # --- encoder --------------------------------------------------------------
    x2d = embed_src.reshape(N * S, E).astype(jnp.float32)
    for lp in params["enc_layers"]:
        x2d = encoder_layer(x2d, lp, H, N, S, src_kp)

    # --- binary bottleneck: ff1 -> relu -> sigmoid -> round -> ff2 ------------
    flat = x2d.reshape(N, S * E)                     # == permute(1,0,2).reshape(N,-1)
    mem2d = bottleneck(flat, params).reshape(N * S, E)

    # --- decoder --------------------------------------------------------------
    y2d = embed_trg.reshape(N * T, E).astype(jnp.float32)
    for lp in params["dec_layers"]:
        y2d = decoder_layer(y2d, mem2d, lp, H, N, T, S, trg_kp)

    # --- output projection (lane-densified: vocab padded to 128) --------------
    V = cfg["trg_vocab_size"]
    Vp = max(128, pl.cdiv(V, 128) * 128)
    w_pad = jnp.pad(params["fc_out_w"], ((0, 0), (0, Vp - V)))
    b_pad = jnp.pad(params["fc_out_b"], ((0, 0), (0, Vp - V)))
    out = linear(y2d, w_pad, b_pad)                  # (N*T, Vp) f32, lane-dense store
    out = out.reshape(N, T, Vp)[:, :, :V].transpose(1, 0, 2)   # (T, N, V)
    return out


# ----------------------------------------------------------------------------
# Deterministic parameter construction
# ----------------------------------------------------------------------------
def _dense(key, din, dout):
    w = jax.random.normal(key, (din, dout), jnp.float32) * 0.02
    b = jnp.zeros((1, dout), jnp.float32)
    return w, b


def _mha_params_self(key, E):
    ks = jax.random.split(key, 4)
    q_w, q_b = _dense(ks[0], E, E)
    k_w, k_b = _dense(ks[1], E, E)
    v_w, v_b = _dense(ks[2], E, E)
    o_w, o_b = _dense(ks[3], E, E)
    return {"qkv_w": jnp.concatenate([q_w, k_w, v_w], axis=1),
            "qkv_b": jnp.concatenate([q_b, k_b, v_b], axis=1),
            "o_w": o_w, "o_b": o_b}


def _mha_params_cross(key, E):
    ks = jax.random.split(key, 4)
    q_w, q_b = _dense(ks[0], E, E)
    k_w, k_b = _dense(ks[1], E, E)
    v_w, v_b = _dense(ks[2], E, E)
    o_w, o_b = _dense(ks[3], E, E)
    return {"q_w": q_w, "q_b": q_b,
            "kv_w": jnp.concatenate([k_w, v_w], axis=1),
            "kv_b": jnp.concatenate([k_b, v_b], axis=1),
            "o_w": o_w, "o_b": o_b}


def _layer_params(key, E, FF, decoder):
    n = 4 if decoder else 3
    ks = jax.random.split(key, n)
    p = {"self": _mha_params_self(ks[0], E)}
    idx = 1
    if decoder:
        p["cross"] = _mha_params_cross(ks[idx], E)
        idx += 1
    p["lin1_w"], p["lin1_b"] = _dense(ks[idx], E, FF); idx += 1
    p["lin2_w"], p["lin2_b"] = _dense(ks[idx], FF, E); idx += 1
    ones = jnp.ones((1, E), jnp.float32)
    zeros = jnp.zeros((1, E), jnp.float32)
    p["ln1_g"], p["ln1_b"] = ones, zeros
    p["ln2_g"], p["ln2_b"] = ones, zeros
    if decoder:
        p["ln3_g"], p["ln3_b"] = ones, zeros
    return p


def make_params(key, cfg):
    E = cfg["embed_size"]
    FF = cfg["forward_expansion"] * E
    L = cfg["max_length"]
    MID = cfg["mid_embedding_size"]
    nl = cfg["num_layers"]
    ks = jax.random.split(key, 8 + 2 * nl)
    p = {}
    p["src_word_emb"] = jax.random.normal(ks[0], (cfg["src_vocab_size"], E), jnp.float32) * 0.02
    p["src_pos_emb"] = jax.random.normal(ks[1], (L, E), jnp.float32) * 0.02
    p["trg_word_emb"] = jax.random.normal(ks[2], (cfg["trg_vocab_size"], E), jnp.float32) * 0.02
    p["trg_pos_emb"] = jax.random.normal(ks[3], (L, E), jnp.float32) * 0.02
    p["enc_layers"] = [_layer_params(ks[4 + i], E, FF, decoder=False)
                       for i in range(nl)]
    p["dec_layers"] = [_layer_params(ks[4 + nl + i], E, FF, decoder=True)
                       for i in range(nl)]
    base = 4 + 2 * nl
    p["ff1_w"], p["ff1_b"] = _dense(ks[base + 0], L * E, MID)
    p["ff2a_w"], p["ff2a_b"] = _dense(ks[base + 1], MID, MID)
    p["ff2b_w"], p["ff2b_b"] = _dense(ks[base + 2], MID, L * E)
    p["fc_out_w"], p["fc_out_b"] = _dense(ks[base + 3], E, cfg["trg_vocab_size"])
    return p


# ----------------------------------------------------------------------------
if __name__ == "__main__":
    cfg = dict(
        src_vocab_size=37,
        trg_vocab_size=41,
        src_pad_idx=0,
        trg_pad_idx=0,
        embed_size=32,
        num_layers=2,
        forward_expansion=4,
        heads=4,
        max_length=8,            # seq length must equal max_length (ff1 shape)
        mid_embedding_size=64,
    )
    N = 2
    S = cfg["max_length"]

    key = jax.random.PRNGKey(0)
    kp_key, ks_key, kt_key = jax.random.split(key, 3)
    params = make_params(kp_key, cfg)

    # token ids in [1, vocab) so no pad tokens (masks all-zero bias)
    src = jax.random.randint(ks_key, (S, N), 1, cfg["src_vocab_size"], dtype=jnp.int32)
    trg = jax.random.randint(kt_key, (S, N), 1, cfg["trg_vocab_size"], dtype=jnp.int32)

    fwd = jax.jit(functools.partial(transformer_forward, cfg=cfg))
    out = fwd(params, src, trg)
    out = jax.block_until_ready(out)
    assert out.shape == (S, N, cfg["trg_vocab_size"]), out.shape
    assert bool(jnp.all(jnp.isfinite(out)))
    print("KERNEL_OK")
</pallas_src>

<mosaic_0001>
module attributes {stable_mosaic.version = 11 : i64} {
  func.func @_split_proj_kernel(%arg0: memref<16x32xf32, #tpu.memory_space<vmem>>, %arg1: memref<32x96xf32, #tpu.memory_space<vmem>>, %arg2: memref<1x96xf32, #tpu.memory_space<vmem>>, %arg3: memref<16x32xbf16, #tpu.memory_space<vmem>>, %arg4: memref<16x32xbf16, #tpu.memory_space<vmem>>, %arg5: memref<16x32xbf16, #tpu.memory_space<vmem>>) attributes {dimension_semantics = [], scalar_prefetch = 0 : i64, scratch_operands = 0 : i64, tpu.core_type = #tpu.core_type<tc>} {
    %c0 = arith.constant 0 : index
    %c0_0 = arith.constant 0 : index
    %0 = vector.load %arg0[%c0, %c0_0] : memref<16x32xf32, #tpu.memory_space<vmem>>, vector<16x32xf32>
    %1 = arith.truncf %0 : vector<16x32xf32> to vector<16x32xbf16>
    %c0_1 = arith.constant 0 : index
    %c0_2 = arith.constant 0 : index
    %2 = vector.load %arg1[%c0_1, %c0_2] : memref<32x96xf32, #tpu.memory_space<vmem>>, vector<32x96xf32>
    %3 = arith.truncf %2 : vector<32x96xf32> to vector<32x96xbf16>
    %cst = arith.constant dense<0.000000e+00> : vector<16x96xf32>
    %4 = tpu.matmul %1, %3, %cst {dimension_numbers = #tpu.dot_dimension_numbers<[1], [0], [0], [1], [0, 0, 1, 1], [], []>} : vector<16x32xbf16>, vector<32x96xbf16>, vector<16x96xf32> -> vector<16x96xf32>
    %c0_3 = arith.constant 0 : index
    %c0_4 = arith.constant 0 : index
    %5 = vector.load %arg2[%c0_3, %c0_4] : memref<1x96xf32, #tpu.memory_space<vmem>>, vector<1x96xf32>
    %6 = vector.broadcast %5 : vector<1x96xf32> to vector<16x96xf32>
    %7 = arith.addf %4, %6 : vector<16x96xf32>
    %8 = vector.extract_strided_slice %7 {offsets = [0, 0], sizes = [16, 32], strides = [1, 1]} : vector<16x96xf32> to vector<16x32xf32>
    %9 = arith.truncf %8 : vector<16x32xf32> to vector<16x32xbf16>
    %c0_5 = arith.constant 0 : index
    %c0_6 = arith.constant 0 : index
    %10 = vector.load %arg3[%c0_5, %c0_6] : memref<16x32xbf16, #tpu.memory_space<vmem>>, vector<16x32xbf16>
    tpu.vector_store %arg3[%c0_5, %c0_6], %9 {strides = array<i32>} : memref<16x32xbf16, #tpu.memory_space<vmem>>, vector<16x32xbf16>,
    %11 = vector.extract_strided_slice %7 {offsets = [0, 32], sizes = [16, 32], strides = [1, 1]} : vector<16x96xf32> to vector<16x32xf32>
    %12 = arith.truncf %11 : vector<16x32xf32> to vector<16x32xbf16>
    %c0_7 = arith.constant 0 : index
    %c0_8 = arith.constant 0 : index
    %13 = vector.load %arg4[%c0_7, %c0_8] : memref<16x32xbf16, #tpu.memory_space<vmem>>, vector<16x32xbf16>
    tpu.vector_store %arg4[%c0_7, %c0_8], %12 {strides = array<i32>} : memref<16x32xbf16, #tpu.memory_space<vmem>>, vector<16x32xbf16>,
    %14 = vector.extract_strided_slice %7 {offsets = [0, 64], sizes = [16, 32], strides = [1, 1]} : vector<16x96xf32> to vector<16x32xf32>
    %15 = arith.truncf %14 : vector<16x32xf32> to vector<16x32xbf16>
    %c0_9 = arith.constant 0 : index
    %c0_10 = arith.constant 0 : index
    %16 = vector.load %arg5[%c0_9, %c0_10] : memref<16x32xbf16, #tpu.memory_space<vmem>>, vector<16x32xbf16>
    tpu.vector_store %arg5[%c0_9, %c0_10], %15 {strides = array<i32>} : memref<16x32xbf16, #tpu.memory_space<vmem>>, vector<16x32xbf16>,
    return
  }
}

module attributes {stable_mosaic.version = 11 : i64} {
  func.func @_mha_kernel(%arg0: memref<2x8x32xbf16, #tpu.memory_space<vmem>>, %arg1: memref<2x8x32xbf16, #tpu.memory_space<vmem>>, %arg2: memref<2x8x32xbf16, #tpu.memory_space<vmem>>, %arg3: memref<2x1x8xf32, #tpu.memory_space<vmem>>, %arg4: memref<2x8x32xbf16, #tpu.memory_space<vmem>>) attributes {dimension_semantics = [], scalar_prefetch = 0 : i64, scratch_operands = 0 : i64, tpu.core_type = #tpu.core_type<tc>} {
    %c0 = arith.constant 0 : index
    %c0_0 = arith.constant 0 : index
    %c0_1 = arith.constant 0 : index
    %0 = vector.load %arg0[%c0, %c0_0, %c0_1] : memref<2x8x32xbf16, #tpu.memory_space<vmem>>, vector<2x8x32xbf16>
    %c0_2 = arith.constant 0 : index
    %c0_3 = arith.constant 0 : index
    %c0_4 = arith.constant 0 : index
    %1 = vector.load %arg1[%c0_2, %c0_3, %c0_4] : memref<2x8x32xbf16, #tpu.memory_space<vmem>>, vector<2x8x32xbf16>
    %c0_5 = arith.constant 0 : index
    %c0_6 = arith.constant 0 : index
    %c0_7 = arith.constant 0 : index
    %2 = vector.load %arg2[%c0_5, %c0_6, %c0_7] : memref<2x8x32xbf16, #tpu.memory_space<vmem>>, vector<2x8x32xbf16>
    %3 = vector.extract_strided_slice %0 {offsets = [0, 0, 0], sizes = [2, 8, 8], strides = [1, 1, 1]} : vector<2x8x32xbf16> to vector<2x8x8xbf16>
    %4 = vector.extract_strided_slice %1 {offsets = [0, 0, 0], sizes = [2, 8, 8], strides = [1, 1, 1]} : vector<2x8x32xbf16> to vector<2x8x8xbf16>
    %5 = vector.extract_strided_slice %2 {offsets = [0, 0, 0], sizes = [2, 8, 8], strides = [1, 1, 1]} : vector<2x8x32xbf16> to vector<2x8x8xbf16>
    "tpu.trace_start"() <{level = 10 : i32, message = "bqd,bkd->bqk"}> : () -> ()
    %cst = arith.constant dense<0.000000e+00> : vector<2x8x8xf32>
    %6 = tpu.matmul %3, %4, %cst {dimension_numbers = #tpu.dot_dimension_numbers<[2], [2], [1], [1], [0, 0, 0, 1, 1, 1], [0], [0]>} : vector<2x8x8xbf16>, vector<2x8x8xbf16>, vector<2x8x8xf32> -> vector<2x8x8xf32>
    "tpu.trace_stop"() : () -> ()
    %cst_8 = arith.constant 0.353553385 : f32
    %7 = vector.broadcast %cst_8 : f32 to vector<2x8x8xf32>
    %8 = arith.mulf %6, %7 : vector<2x8x8xf32>
    %c0_9 = arith.constant 0 : index
    %c0_10 = arith.constant 0 : index
    %c0_11 = arith.constant 0 : index
    %9 = vector.load %arg3[%c0_9, %c0_10, %c0_11] : memref<2x1x8xf32, #tpu.memory_space<vmem>>, vector<2x1x8xf32>
    %10 = vector.broadcast %9 : vector<2x1x8xf32> to vector<2x8x8xf32>
    %11 = arith.addf %8, %10 : vector<2x8x8xf32>
    %cst_12 = arith.constant dense<0xFF800000> : vector<2x8xf32>
    %12 = vector.multi_reduction <maximumf>, %11, %cst_12 [2] : vector<2x8x8xf32> to vector<2x8xf32>
    %13 = vector.shape_cast %12 : vector<2x8xf32> to vector<2x8x1xf32>
    %14 = vector.broadcast %13 : vector<2x8x1xf32> to vector<2x8x8xf32>
    %15 = arith.subf %11, %14 : vector<2x8x8xf32>
    %16 = math.exp %15 : vector<2x8x8xf32>
    %cst_13 = arith.constant dense<0.000000e+00> : vector<2x8xf32>
    %17 = vector.multi_reduction <add>, %16, %cst_13 [2] : vector<2x8x8xf32> to vector<2x8xf32>
    %18 = vector.shape_cast %17 : vector<2x8xf32> to vector<2x8x1xf32>
    %19 = vector.broadcast %18 : vector<2x8x1xf32> to vector<2x8x8xf32>
    %20 = arith.divf %16, %19 : vector<2x8x8xf32>
    %21 = arith.truncf %20 : vector<2x8x8xf32> to vector<2x8x8xbf16>
    "tpu.trace_start"() <{level = 10 : i32, message = "bqk,bkd->bqd"}> : () -> ()
    %cst_14 = arith.constant dense<0.000000e+00> : vector<2x8x8xf32>
    %22 = tpu.matmul %21, %5, %cst_14 {dimension_numbers = #tpu.dot_dimension_numbers<[2], [1], [1], [2], [0, 0, 0, 1, 1, 2], [0], [0]>} : vector<2x8x8xbf16>, vector<2x8x8xbf16>, vector<2x8x8xf32> -> vector<2x8x8xf32>
    "tpu.trace_stop"() : () -> ()
    %23 = vector.extract_strided_slice %0 {offsets = [0, 0, 8], sizes = [2, 8, 8], strides = [1, 1, 1]} : vector<2x8x32xbf16> to vector<2x8x8xbf16>
    %24 = vector.extract_strided_slice %1 {offsets = [0, 0, 8], sizes = [2, 8, 8], strides = [1, 1, 1]} : vector<2x8x32xbf16> to vector<2x8x8xbf16>
    %25 = vector.extract_strided_slice %2 {offsets = [0, 0, 8], sizes = [2, 8, 8], strides = [1, 1, 1]} : vector<2x8x32xbf16> to vector<2x8x8xbf16>
    "tpu.trace_start"() <{level = 10 : i32, message = "bqd,bkd->bqk"}> : () -> ()
    %cst_15 = arith.constant dense<0.000000e+00> : vector<2x8x8xf32>
    %26 = tpu.matmul %23, %24, %cst_15 {dimension_numbers = #tpu.dot_dimension_numbers<[2], [2], [1], [1], [0, 0, 0, 1, 1, 1], [0], [0]>} : vector<2x8x8xbf16>, vector<2x8x8xbf16>, vector<2x8x8xf32> -> vector<2x8x8xf32>
    "tpu.trace_stop"() : () -> ()
    %cst_16 = arith.constant 0.353553385 : f32
    %27 = vector.broadcast %cst_16 : f32 to vector<2x8x8xf32>
    %28 = arith.mulf %26, %27 : vector<2x8x8xf32>
    %c0_17 = arith.constant 0 : index
    %c0_18 = arith.constant 0 : index
    %c0_19 = arith.constant 0 : index
    %29 = vector.load %arg3[%c0_17, %c0_18, %c0_19] : memref<2x1x8xf32, #tpu.memory_space<vmem>>, vector<2x1x8xf32>
    %30 = vector.broadcast %29 : vector<2x1x8xf32> to vector<2x8x8xf32>
    %31 = arith.addf %28, %30 : vector<2x8x8xf32>
    %cst_20 = arith.constant dense<0xFF800000> : vector<2x8xf32>
    %32 = vector.multi_reduction <maximumf>, %31, %cst_20 [2] : vector<2x8x8xf32> to vector<2x8xf32>
    %33 = vector.shape_cast %32 : vector<2x8xf32> to vector<2x8x1xf32>
    %34 = vector.broadcast %33 : vector<2x8x1xf32> to vector<2x8x8xf32>
    %35 = arith.subf %31, %34 : vector<2x8x8xf32>
    %36 = math.exp %35 : vector<2x8x8xf32>
    %cst_21 = arith.constant dense<0.000000e+00> : vector<2x8xf32>
    %37 = vector.multi_reduction <add>, %36, %cst_21 [2] : vector<2x8x8xf32> to vector<2x8xf32>
    %38 = vector.shape_cast %37 : vector<2x8xf32> to vector<2x8x1xf32>
    %39 = vector.broadcast %38 : vector<2x8x1xf32> to vector<2x8x8xf32>
    %40 = arith.divf %36, %39 : vector<2x8x8xf32>
    %41 = arith.truncf %40 : vector<2x8x8xf32> to vector<2x8x8xbf16>
    "tpu.trace_start"() <{level = 10 : i32, message = "bqk,bkd->bqd"}> : () -> ()
    %cst_22 = arith.constant dense<0.000000e+00> : vector<2x8x8xf32>
    %42 = tpu.matmul %41, %25, %cst_22 {dimension_numbers = #tpu.dot_dimension_numbers<[2], [1], [1], [2], [0, 0, 0, 1, 1, 2], [0], [0]>} : vector<2x8x8xbf16>, vector<2x8x8xbf16>, vector<2x8x8xf32> -> vector<2x8x8xf32>
    "tpu.trace_stop"() : () -> ()
    %43 = vector.extract_strided_slice %0 {offsets = [0, 0, 16], sizes = [2, 8, 8], strides = [1, 1, 1]} : vector<2x8x32xbf16> to vector<2x8x8xbf16>
    %44 = vector.extract_strided_slice %1 {offsets = [0, 0, 16], sizes = [2, 8, 8], strides = [1, 1, 1]} : vector<2x8x32xbf16> to vector<2x8x8xbf16>
    %45 = vector.extract_strided_slice %2 {offsets = [0, 0, 16], sizes = [2, 8, 8], strides = [1, 1, 1]} : vector<2x8x32xbf16> to vector<2x8x8xbf16>
    "tpu.trace_start"() <{level = 10 : i32, message = "bqd,bkd->bqk"}> : () -> ()
    %cst_23 = arith.constant dense<0.000000e+00> : vector<2x8x8xf32>
    %46 = tpu.matmul %43, %44, %cst_23 {dimension_numbers = #tpu.dot_dimension_numbers<[2], [2], [1], [1], [0, 0, 0, 1, 1, 1], [0], [0]>} : vector<2x8x8xbf16>, vector<2x8x8xbf16>, vector<2x8x8xf32> -> vector<2x8x8xf32>
    "tpu.trace_stop"() : () -> ()
    %cst_24 = arith.constant 0.353553385 : f32
    %47 = vector.broadcast %cst_24 : f32 to vector<2x8x8xf32>
    %48 = arith.mulf %46, %47 : vector<2x8x8xf32>
    %c0_25 = arith.constant 0 : index
    %c0_26 = arith.constant 0 : index
    %c0_27 = arith.constant 0 : index
    %49 = vector.load %arg3[%c0_25, %c0_26, %c0_27] : memref<2x1x8xf32, #tpu.memory_space<vmem>>, vector<2x1x8xf32>
    %50 = vector.broadcast %49 : vector<2x1x8xf32> to vector<2x8x8xf32>
    %51 = arith.addf %48, %50 : vector<2x8x8xf32>
    %cst_28 = arith.constant dense<0xFF800000> : vector<2x8xf32>
    %52 = vector.multi_reduction <maximumf>, %51, %cst_28 [2] : vector<2x8x8xf32> to vector<2x8xf32>
    %53 = vector.shape_cast %52 : vector<2x8xf32> to vector<2x8x1xf32>
    %54 = vector.broadcast %53 : vector<2x8x1xf32> to vector<2x8x8xf32>
    %55 = arith.subf %51, %54 : vector<2x8x8xf32>
    %56 = math.exp %55 : vector<2x8x8xf32>
    %cst_29 = arith.constant dense<0.000000e+00> : vector<2x8xf32>
    %57 = vector.multi_reduction <add>, %56, %cst_29 [2] : vector<2x8x8xf32> to vector<2x8xf32>
    %58 = vector.shape_cast %57 : vector<2x8xf32> to vector<2x8x1xf32>
    %59 = vector.broadcast %58 : vector<2x8x1xf32> to vector<2x8x8xf32>
    %60 = arith.divf %56, %59 : vector<2x8x8xf32>
    %61 = arith.truncf %60 : vector<2x8x8xf32> to vector<2x8x8xbf16>
    "tpu.trace_start"() <{level = 10 : i32, message = "bqk,bkd->bqd"}> : () -> ()
    %cst_30 = arith.constant dense<0.000000e+00> : vector<2x8x8xf32>
    %62 = tpu.matmul %61, %45, %cst_30 {dimension_numbers = #tpu.dot_dimension_numbers<[2], [1], [1], [2], [0, 0, 0, 1, 1, 2], [0], [0]>} : vector<2x8x8xbf16>, vector<2x8x8xbf16>, vector<2x8x8xf32> -> vector<2x8x8xf32>
    "tpu.trace_stop"() : () -> ()
    %63 = vector.extract_strided_slice %0 {offsets = [0, 0, 24], sizes = [2, 8, 8], strides = [1, 1, 1]} : vector<2x8x32xbf16> to vector<2x8x8xbf16>
    %64 = vector.extract_strided_slice %1 {offsets = [0, 0, 24], sizes = [2, 8, 8], strides = [1, 1, 1]} : vector<2x8x32xbf16> to vector<2x8x8xbf16>
    %65 = vector.extract_strided_slice %2 {offsets = [0, 0, 24], sizes = [2, 8, 8], strides = [1, 1, 1]} : vector<2x8x32xbf16> to vector<2x8x8xbf16>
    "tpu.trace_start"() <{level = 10 : i32, message = "bqd,bkd->bqk"}> : () -> ()
    %cst_31 = arith.constant dense<0.000000e+00> : vector<2x8x8xf32>
    %66 = tpu.matmul %63, %64, %cst_31 {dimension_numbers = #tpu.dot_dimension_numbers<[2], [2], [1], [1], [0, 0, 0, 1, 1, 1], [0], [0]>} : vector<2x8x8xbf16>, vector<2x8x8xbf16>, vector<2x8x8xf32> -> vector<2x8x8xf32>
    "tpu.trace_stop"() : () -> ()
    %cst_32 = arith.constant 0.353553385 : f32
    %67 = vector.broadcast %cst_32 : f32 to vector<2x8x8xf32>
    %68 = arith.mulf %66, %67 : vector<2x8x8xf32>
    %c0_33 = arith.constant 0 : index
    %c0_34 = arith.constant 0 : index
    %c0_35 = arith.constant 0 : index
    %69 = vector.load %arg3[%c0_33, %c0_34, %c0_35] : memref<2x1x8xf32, #tpu.memory_space<vmem>>, vector<2x1x8xf32>
    %70 = vector.broadcast %69 : vector<2x1x8xf32> to vector<2x8x8xf32>
    %71 = arith.addf %68, %70 : vector<2x8x8xf32>
    %cst_36 = arith.constant dense<0xFF800000> : vector<2x8xf32>
    %72 = vector.multi_reduction <maximumf>, %71, %cst_36 [2] : vector<2x8x8xf32> to vector<2x8xf32>
    %73 = vector.shape_cast %72 : vector<2x8xf32> to vector<2x8x1xf32>
    %74 = vector.broadcast %73 : vector<2x8x1xf32> to vector<2x8x8xf32>
    %75 = arith.subf %71, %74 : vector<2x8x8xf32>
    %76 = math.exp %75 : vector<2x8x8xf32>
    %cst_37 = arith.constant dense<0.000000e+00> : vector<2x8xf32>
    %77 = vector.multi_reduction <add>, %76, %cst_37 [2] : vector<2x8x8xf32> to vector<2x8xf32>
    %78 = vector.shape_cast %77 : vector<2x8xf32> to vector<2x8x1xf32>
    %79 = vector.broadcast %78 : vector<2x8x1xf32> to vector<2x8x8xf32>
    %80 = arith.divf %76, %79 : vector<2x8x8xf32>
    %81 = arith.truncf %80 : vector<2x8x8xf32> to vector<2x8x8xbf16>
    "tpu.trace_start"() <{level = 10 : i32, message = "bqk,bkd->bqd"}> : () -> ()
    %cst_38 = arith.constant dense<0.000000e+00> : vector<2x8x8xf32>
    %82 = tpu.matmul %81, %65, %cst_38 {dimension_numbers = #tpu.dot_dimension_numbers<[2], [1], [1], [2], [0, 0, 0, 1, 1, 2], [0], [0]>} : vector<2x8x8xbf16>, vector<2x8x8xbf16>, vector<2x8x8xf32> -> vector<2x8x8xf32>
    "tpu.trace_stop"() : () -> ()
    %83 = tpu.concatenate %22, %42, %62, %82 in 2 : vector<2x8x8xf32>, vector<2x8x8xf32>, vector<2x8x8xf32>, vector<2x8x8xf32> -> vector<2x8x32xf32>
    %84 = arith.truncf %83 : vector<2x8x32xf32> to vector<2x8x32xbf16>
    %c0_39 = arith.constant 0 : index
    %c0_40 = arith.constant 0 : index
    %c0_41 = arith.constant 0 : index
    %85 = vector.load %arg4[%c0_39, %c0_40, %c0_41] : memref<2x8x32xbf16, #tpu.memory_space<vmem>>, vector<2x8x32xbf16>
    tpu.vector_store %arg4[%c0_39, %c0_40, %c0_41], %84 {strides = array<i32>} : memref<2x8x32xbf16, #tpu.memory_space<vmem>>, vector<2x8x32xbf16>,
    return
  }
}

module attributes {stable_mosaic.version = 11 : i64} {
  func.func @_proj_res_ln_kernel(%arg0: memref<16x32xbf16, #tpu.memory_space<vmem>>, %arg1: memref<32x32xf32, #tpu.memory_space<vmem>>, %arg2: memref<1x32xf32, #tpu.memory_space<vmem>>, %arg3: memref<16x32xf32, #tpu.memory_space<vmem>>, %arg4: memref<1x32xf32, #tpu.memory_space<vmem>>, %arg5: memref<1x32xf32, #tpu.memory_space<vmem>>, %arg6: memref<16x32xf32, #tpu.memory_space<vmem>>) attributes {dimension_semantics = [], scalar_prefetch = 0 : i64, scratch_operands = 0 : i64, tpu.core_type = #tpu.core_type<tc>} {
    %c0 = arith.constant 0 : index
    %c0_0 = arith.constant 0 : index
    %0 = vector.load %arg0[%c0, %c0_0] : memref<16x32xbf16, #tpu.memory_space<vmem>>, vector<16x32xbf16>
    %c0_1 = arith.constant 0 : index
    %c0_2 = arith.constant 0 : index
    %1 = vector.load %arg1[%c0_1, %c0_2] : memref<32x32xf32, #tpu.memory_space<vmem>>, vector<32x32xf32>
    %2 = arith.truncf %1 : vector<32x32xf32> to vector<32x32xbf16>
    %cst = arith.constant dense<0.000000e+00> : vector<16x32xf32>
    %3 = tpu.matmul %0, %2, %cst {dimension_numbers = #tpu.dot_dimension_numbers<[1], [0], [0], [1], [0, 0, 1, 1], [], []>} : vector<16x32xbf16>, vector<32x32xbf16>, vector<16x32xf32> -> vector<16x32xf32>
    %c0_3 = arith.constant 0 : index
    %c0_4 = arith.constant 0 : index
    %4 = vector.load %arg2[%c0_3, %c0_4] : memref<1x32xf32, #tpu.memory_space<vmem>>, vector<1x32xf32>
    %5 = vector.broadcast %4 : vector<1x32xf32> to vector<16x32xf32>
    %6 = arith.addf %3, %5 : vector<16x32xf32>
    %c0_5 = arith.constant 0 : index
    %c0_6 = arith.constant 0 : index
    %7 = vector.load %arg3[%c0_5, %c0_6] : memref<16x32xf32, #tpu.memory_space<vmem>>, vector<16x32xf32>
    %8 = arith.addf %7, %6 : vector<16x32xf32>
    %cst_7 = arith.constant dense<0.000000e+00> : vector<16xf32>
    %9 = vector.multi_reduction <add>, %8, %cst_7 [1] : vector<16x32xf32> to vector<16xf32>
    %10 = vector.shape_cast %9 : vector<16xf32> to vector<16x1xf32>
    %cst_8 = arith.constant 3.200000e+01 : f32
    %11 = vector.broadcast %cst_8 : f32 to vector<16x1xf32>
    %12 = arith.divf %10, %11 : vector<16x1xf32>
    %13 = vector.broadcast %12 : vector<16x1xf32> to vector<16x32xf32>
    %14 = arith.subf %8, %13 : vector<16x32xf32>
    %15 = arith.mulf %14, %14 : vector<16x32xf32>
    %cst_9 = arith.constant dense<0.000000e+00> : vector<16xf32>
    %16 = vector.multi_reduction <add>, %15, %cst_9 [1] : vector<16x32xf32> to vector<16xf32>
    %17 = vector.shape_cast %16 : vector<16xf32> to vector<16x1xf32>
    %cst_10 = arith.constant 3.200000e+01 : f32
    %18 = vector.broadcast %cst_10 : f32 to vector<16x1xf32>
    %19 = arith.divf %17, %18 : vector<16x1xf32>
    %20 = vector.broadcast %12 : vector<16x1xf32> to vector<16x32xf32>
    %21 = arith.subf %8, %20 : vector<16x32xf32>
    %cst_11 = arith.constant 9.99999974E-6 : f32
    %22 = vector.broadcast %cst_11 : f32 to vector<16x1xf32>
    %23 = arith.addf %19, %22 : vector<16x1xf32>
    %24 = math.rsqrt %23 : vector<16x1xf32>
    %25 = vector.broadcast %24 : vector<16x1xf32> to vector<16x32xf32>
    %26 = arith.mulf %21, %25 : vector<16x32xf32>
    %c0_12 = arith.constant 0 : index
    %c0_13 = arith.constant 0 : index
    %27 = vector.load %arg4[%c0_12, %c0_13] : memref<1x32xf32, #tpu.memory_space<vmem>>, vector<1x32xf32>
    %28 = vector.broadcast %27 : vector<1x32xf32> to vector<16x32xf32>
    %29 = arith.mulf %26, %28 : vector<16x32xf32>
    %c0_14 = arith.constant 0 : index
    %c0_15 = arith.constant 0 : index
    %30 = vector.load %arg5[%c0_14, %c0_15] : memref<1x32xf32, #tpu.memory_space<vmem>>, vector<1x32xf32>
    %31 = vector.broadcast %30 : vector<1x32xf32> to vector<16x32xf32>
    %32 = arith.addf %29, %31 : vector<16x32xf32>
    %c0_16 = arith.constant 0 : index
    %c0_17 = arith.constant 0 : index
    %33 = vector.load %arg6[%c0_16, %c0_17] : memref<16x32xf32, #tpu.memory_space<vmem>>, vector<16x32xf32>
    tpu.vector_store %arg6[%c0_16, %c0_17], %32 {strides = array<i32>} : memref<16x32xf32, #tpu.memory_space<vmem>>, vector<16x32xf32>,
    return
  }
}

module attributes {stable_mosaic.version = 11 : i64} {
  func.func @_ffn_res_ln_kernel(%arg0: memref<16x32xf32, #tpu.memory_space<vmem>>, %arg1: memref<32x128xf32, #tpu.memory_space<vmem>>, %arg2: memref<1x128xf32, #tpu.memory_space<vmem>>, %arg3: memref<128x32xf32, #tpu.memory_space<vmem>>, %arg4: memref<1x32xf32, #tpu.memory_space<vmem>>, %arg5: memref<1x32xf32, #tpu.memory_space<vmem>>, %arg6: memref<1x32xf32, #tpu.memory_space<vmem>>, %arg7: memref<16x32xf32, #tpu.memory_space<vmem>>) attributes {dimension_semantics = [], scalar_prefetch = 0 : i64, scratch_operands = 0 : i64, tpu.core_type = #tpu.core_type<tc>} {
    %c0 = arith.constant 0 : index
    %c0_0 = arith.constant 0 : index
    %0 = vector.load %arg0[%c0, %c0_0] : memref<16x32xf32, #tpu.memory_space<vmem>>, vector<16x32xf32>
    %1 = arith.truncf %0 : vector<16x32xf32> to vector<16x32xbf16>
    %c0_1 = arith.constant 0 : index
    %c0_2 = arith.constant 0 : index
    %2 = vector.load %arg1[%c0_1, %c0_2] : memref<32x128xf32, #tpu.memory_space<vmem>>, vector<32x128xf32>
    %3 = arith.truncf %2 : vector<32x128xf32> to vector<32x128xbf16>
    %cst = arith.constant dense<0.000000e+00> : vector<16x128xf32>
    %4 = tpu.matmul %1, %3, %cst {dimension_numbers = #tpu.dot_dimension_numbers<[1], [0], [0], [1], [0, 0, 1, 1], [], []>} : vector<16x32xbf16>, vector<32x128xbf16>, vector<16x128xf32> -> vector<16x128xf32>
    %c0_3 = arith.constant 0 : index
    %c0_4 = arith.constant 0 : index
    %5 = vector.load %arg2[%c0_3, %c0_4] : memref<1x128xf32, #tpu.memory_space<vmem>>, vector<1x128xf32>
    %6 = vector.broadcast %5 : vector<1x128xf32> to vector<16x128xf32>
    %7 = arith.addf %4, %6 : vector<16x128xf32>
    %cst_5 = arith.constant 0.000000e+00 : f32
    %8 = vector.broadcast %cst_5 : f32 to vector<16x128xf32>
    %9 = arith.maximumf %7, %8 : vector<16x128xf32>
    %10 = arith.truncf %9 : vector<16x128xf32> to vector<16x128xbf16>
    %c0_6 = arith.constant 0 : index
    %c0_7 = arith.constant 0 : index
    %11 = vector.load %arg3[%c0_6, %c0_7] : memref<128x32xf32, #tpu.memory_space<vmem>>, vector<128x32xf32>
    %12 = arith.truncf %11 : vector<128x32xf32> to vector<128x32xbf16>
    %cst_8 = arith.constant dense<0.000000e+00> : vector<16x32xf32>
    %13 = tpu.matmul %10, %12, %cst_8 {dimension_numbers = #tpu.dot_dimension_numbers<[1], [0], [0], [1], [0, 0, 1, 1], [], []>} : vector<16x128xbf16>, vector<128x32xbf16>, vector<16x32xf32> -> vector<16x32xf32>
    %c0_9 = arith.constant 0 : index
    %c0_10 = arith.constant 0 : index
    %14 = vector.load %arg4[%c0_9, %c0_10] : memref<1x32xf32, #tpu.memory_space<vmem>>, vector<1x32xf32>
    %15 = vector.broadcast %14 : vector<1x32xf32> to vector<16x32xf32>
    %16 = arith.addf %13, %15 : vector<16x32xf32>
    %17 = arith.addf %0, %16 : vector<16x32xf32>
    %cst_11 = arith.constant dense<0.000000e+00> : vector<16xf32>
    %18 = vector.multi_reduction <add>, %17, %cst_11 [1] : vector<16x32xf32> to vector<16xf32>
    %19 = vector.shape_cast %18 : vector<16xf32> to vector<16x1xf32>
    %cst_12 = arith.constant 3.200000e+01 : f32
    %20 = vector.broadcast %cst_12 : f32 to vector<16x1xf32>
    %21 = arith.divf %19, %20 : vector<16x1xf32>
    %22 = vector.broadcast %21 : vector<16x1xf32> to vector<16x32xf32>
    %23 = arith.subf %17, %22 : vector<16x32xf32>
    %24 = arith.mulf %23, %23 : vector<16x32xf32>
    %cst_13 = arith.constant dense<0.000000e+00> : vector<16xf32>
    %25 = vector.multi_reduction <add>, %24, %cst_13 [1] : vector<16x32xf32> to vector<16xf32>
    %26 = vector.shape_cast %25 : vector<16xf32> to vector<16x1xf32>
    %cst_14 = arith.constant 3.200000e+01 : f32
    %27 = vector.broadcast %cst_14 : f32 to vector<16x1xf32>
    %28 = arith.divf %26, %27 : vector<16x1xf32>
    %29 = vector.broadcast %21 : vector<16x1xf32> to vector<16x32xf32>
    %30 = arith.subf %17, %29 : vector<16x32xf32>
    %cst_15 = arith.constant 9.99999974E-6 : f32
    %31 = vector.broadcast %cst_15 : f32 to vector<16x1xf32>
    %32 = arith.addf %28, %31 : vector<16x1xf32>
    %33 = math.rsqrt %32 : vector<16x1xf32>
    %34 = vector.broadcast %33 : vector<16x1xf32> to vector<16x32xf32>
    %35 = arith.mulf %30, %34 : vector<16x32xf32>
    %c0_16 = arith.constant 0 : index
    %c0_17 = arith.constant 0 : index
    %36 = vector.load %arg5[%c0_16, %c0_17] : memref<1x32xf32, #tpu.memory_space<vmem>>, vector<1x32xf32>
    %37 = vector.broadcast %36 : vector<1x32xf32> to vector<16x32xf32>
    %38 = arith.mulf %35, %37 : vector<16x32xf32>
    %c0_18 = arith.constant 0 : index
    %c0_19 = arith.constant 0 : index
    %39 = vector.load %arg6[%c0_18, %c0_19] : memref<1x32xf32, #tpu.memory_space<vmem>>, vector<1x32xf32>
    %40 = vector.broadcast %39 : vector<1x32xf32> to vector<16x32xf32>
    %41 = arith.addf %38, %40 : vector<16x32xf32>
    %c0_20 = arith.constant 0 : index
    %c0_21 = arith.constant 0 : index
    %42 = vector.load %arg7[%c0_20, %c0_21] : memref<16x32xf32, #tpu.memory_space<vmem>>, vector<16x32xf32>
    tpu.vector_store %arg7[%c0_20, %c0_21], %41 {strides = array<i32>} : memref<16x32xf32, #tpu.memory_space<vmem>>, vector<16x32xf32>,
    return
  }
}

module attributes {stable_mosaic.version = 11 : i64} {
  func.func @_bottleneck_kernel(%arg0: memref<2x256xf32, #tpu.memory_space<vmem>>, %arg1: memref<256x64xf32, #tpu.memory_space<vmem>>, %arg2: memref<1x64xf32, #tpu.memory_space<vmem>>, %arg3: memref<64x64xf32, #tpu.memory_space<vmem>>, %arg4: memref<1x64xf32, #tpu.memory_space<vmem>>, %arg5: memref<64x256xf32, #tpu.memory_space<vmem>>, %arg6: memref<1x256xf32, #tpu.memory_space<vmem>>, %arg7: memref<2x256xf32, #tpu.memory_space<vmem>>) attributes {dimension_semantics = [], scalar_prefetch = 0 : i64, scratch_operands = 0 : i64, tpu.core_type = #tpu.core_type<tc>} {
    %c0 = arith.constant 0 : index
    %c0_0 = arith.constant 0 : index
    %0 = vector.load %arg0[%c0, %c0_0] : memref<2x256xf32, #tpu.memory_space<vmem>>, vector<2x256xf32>
    %1 = arith.truncf %0 : vector<2x256xf32> to vector<2x256xbf16>
    %c0_1 = arith.constant 0 : index
    %c0_2 = arith.constant 0 : index
    %2 = vector.load %arg1[%c0_1, %c0_2] : memref<256x64xf32, #tpu.memory_space<vmem>>, vector<256x64xf32>
    %3 = arith.truncf %2 : vector<256x64xf32> to vector<256x64xbf16>
    %cst = arith.constant dense<0.000000e+00> : vector<2x64xf32>
    %4 = tpu.matmul %1, %3, %cst {dimension_numbers = #tpu.dot_dimension_numbers<[1], [0], [0], [1], [0, 0, 1, 1], [], []>} : vector<2x256xbf16>, vector<256x64xbf16>, vector<2x64xf32> -> vector<2x64xf32>
    %c0_3 = arith.constant 0 : index
    %c0_4 = arith.constant 0 : index
    %5 = vector.load %arg2[%c0_3, %c0_4] : memref<1x64xf32, #tpu.memory_space<vmem>>, vector<1x64xf32>
    %6 = vector.broadcast %5 : vector<1x64xf32> to vector<2x64xf32>
    %7 = arith.addf %4, %6 : vector<2x64xf32>
    %cst_5 = arith.constant 0.000000e+00 : f32
    %8 = vector.broadcast %cst_5 : f32 to vector<2x64xf32>
    %9 = arith.maximumf %7, %8 : vector<2x64xf32>
    %10 = arith.negf %9 : vector<2x64xf32>
    %11 = math.exp %10 : vector<2x64xf32>
    %cst_6 = arith.constant 1.000000e+00 : f32
    %12 = vector.broadcast %cst_6 : f32 to vector<2x64xf32>
    %13 = arith.addf %12, %11 : vector<2x64xf32>
    %14 = arith.divf %12, %13 : vector<2x64xf32>
    %15 = math.roundeven %14 : vector<2x64xf32>
    %16 = arith.truncf %15 : vector<2x64xf32> to vector<2x64xbf16>
    %c0_7 = arith.constant 0 : index
    %c0_8 = arith.constant 0 : index
    %17 = vector.load %arg3[%c0_7, %c0_8] : memref<64x64xf32, #tpu.memory_space<vmem>>, vector<64x64xf32>
    %18 = arith.truncf %17 : vector<64x64xf32> to vector<64x64xbf16>
    %cst_9 = arith.constant dense<0.000000e+00> : vector<2x64xf32>
    %19 = tpu.matmul %16, %18, %cst_9 {dimension_numbers = #tpu.dot_dimension_numbers<[1], [0], [0], [1], [0, 0, 1, 1], [], []>} : vector<2x64xbf16>, vector<64x64xbf16>, vector<2x64xf32> -> vector<2x64xf32>
    %c0_10 = arith.constant 0 : index
    %c0_11 = arith.constant 0 : index
    %20 = vector.load %arg4[%c0_10, %c0_11] : memref<1x64xf32, #tpu.memory_space<vmem>>, vector<1x64xf32>
    %21 = vector.broadcast %20 : vector<1x64xf32> to vector<2x64xf32>
    %22 = arith.addf %19, %21 : vector<2x64xf32>
    %cst_12 = arith.constant 0.000000e+00 : f32
    %23 = vector.broadcast %cst_12 : f32 to vector<2x64xf32>
    %24 = arith.maximumf %22, %23 : vector<2x64xf32>
    %25 = arith.truncf %24 : vector<2x64xf32> to vector<2x64xbf16>
    %c0_13 = arith.constant 0 : index
    %c0_14 = arith.constant 0 : index
    %26 = vector.load %arg5[%c0_13, %c0_14] : memref<64x256xf32, #tpu.memory_space<vmem>>, vector<64x256xf32>
    %27 = arith.truncf %26 : vector<64x256xf32> to vector<64x256xbf16>
    %cst_15 = arith.constant dense<0.000000e+00> : vector<2x256xf32>
    %28 = tpu.matmul %25, %27, %cst_15 {dimension_numbers = #tpu.dot_dimension_numbers<[1], [0], [0], [1], [0, 0, 1, 1], [], []>} : vector<2x64xbf16>, vector<64x256xbf16>, vector<2x256xf32> -> vector<2x256xf32>
    %c0_16 = arith.constant 0 : index
    %c0_17 = arith.constant 0 : index
    %29 = vector.load %arg6[%c0_16, %c0_17] : memref<1x256xf32, #tpu.memory_space<vmem>>, vector<1x256xf32>
    %30 = vector.broadcast %29 : vector<1x256xf32> to vector<2x256xf32>
    %31 = arith.addf %28, %30 : vector<2x256xf32>
    %c0_18 = arith.constant 0 : index
    %c0_19 = arith.constant 0 : index
    %32 = vector.load %arg7[%c0_18, %c0_19] : memref<2x256xf32, #tpu.memory_space<vmem>>, vector<2x256xf32>
    tpu.vector_store %arg7[%c0_18, %c0_19], %31 {strides = array<i32>} : memref<2x256xf32, #tpu.memory_space<vmem>>, vector<2x256xf32>,
    return
  }
}

module attributes {stable_mosaic.version = 11 : i64} {
  func.func @_split_proj_kernel(%arg0: memref<16x32xf32, #tpu.memory_space<vmem>>, %arg1: memref<32x64xf32, #tpu.memory_space<vmem>>, %arg2: memref<1x64xf32, #tpu.memory_space<vmem>>, %arg3: memref<16x32xbf16, #tpu.memory_space<vmem>>, %arg4: memref<16x32xbf16, #tpu.memory_space<vmem>>) attributes {dimension_semantics = [], scalar_prefetch = 0 : i64, scratch_operands = 0 : i64, tpu.core_type = #tpu.core_type<tc>} {
    %c0 = arith.constant 0 : index
    %c0_0 = arith.constant 0 : index
    %0 = vector.load %arg0[%c0, %c0_0] : memref<16x32xf32, #tpu.memory_space<vmem>>, vector<16x32xf32>
    %1 = arith.truncf %0 : vector<16x32xf32> to vector<16x32xbf16>
    %c0_1 = arith.constant 0 : index
    %c0_2 = arith.constant 0 : index
    %2 = vector.load %arg1[%c0_1, %c0_2] : memref<32x64xf32, #tpu.memory_space<vmem>>, vector<32x64xf32>
    %3 = arith.truncf %2 : vector<32x64xf32> to vector<32x64xbf16>
    %cst = arith.constant dense<0.000000e+00> : vector<16x64xf32>
    %4 = tpu.matmul %1, %3, %cst {dimension_numbers = #tpu.dot_dimension_numbers<[1], [0], [0], [1], [0, 0, 1, 1], [], []>} : vector<16x32xbf16>, vector<32x64xbf16>, vector<16x64xf32> -> vector<16x64xf32>
    %c0_3 = arith.constant 0 : index
    %c0_4 = arith.constant 0 : index
    %5 = vector.load %arg2[%c0_3, %c0_4] : memref<1x64xf32, #tpu.memory_space<vmem>>, vector<1x64xf32>
    %6 = vector.broadcast %5 : vector<1x64xf32> to vector<16x64xf32>
    %7 = arith.addf %4, %6 : vector<16x64xf32>
    %8 = vector.extract_strided_slice %7 {offsets = [0, 0], sizes = [16, 32], strides = [1, 1]} : vector<16x64xf32> to vector<16x32xf32>
    %9 = arith.truncf %8 : vector<16x32xf32> to vector<16x32xbf16>
    %c0_5 = arith.constant 0 : index
    %c0_6 = arith.constant 0 : index
    %10 = vector.load %arg3[%c0_5, %c0_6] : memref<16x32xbf16, #tpu.memory_space<vmem>>, vector<16x32xbf16>
    tpu.vector_store %arg3[%c0_5, %c0_6], %9 {strides = array<i32>} : memref<16x32xbf16, #tpu.memory_space<vmem>>, vector<16x32xbf16>,
    %11 = vector.extract_strided_slice %7 {offsets = [0, 32], sizes = [16, 32], strides = [1, 1]} : vector<16x64xf32> to vector<16x32xf32>
    %12 = arith.truncf %11 : vector<16x32xf32> to vector<16x32xbf16>
    %c0_7 = arith.constant 0 : index
    %c0_8 = arith.constant 0 : index
    %13 = vector.load %arg4[%c0_7, %c0_8] : memref<16x32xbf16, #tpu.memory_space<vmem>>, vector<16x32xbf16>
    tpu.vector_store %arg4[%c0_7, %c0_8], %12 {strides = array<i32>} : memref<16x32xbf16, #tpu.memory_space<vmem>>, vector<16x32xbf16>,
    return
  }
}

module attributes {stable_mosaic.version = 11 : i64} {
  func.func @_linear_kernel(%arg0: memref<16x32xf32, #tpu.memory_space<vmem>>, %arg1: memref<32x32xf32, #tpu.memory_space<vmem>>, %arg2: memref<1x32xf32, #tpu.memory_space<vmem>>, %arg3: memref<16x32xbf16, #tpu.memory_space<vmem>>) attributes {dimension_semantics = [], scalar_prefetch = 0 : i64, scratch_operands = 0 : i64, tpu.core_type = #tpu.core_type<tc>} {
    %c0 = arith.constant 0 : index
    %c0_0 = arith.constant 0 : index
    %0 = vector.load %arg0[%c0, %c0_0] : memref<16x32xf32, #tpu.memory_space<vmem>>, vector<16x32xf32>
    %1 = arith.truncf %0 : vector<16x32xf32> to vector<16x32xbf16>
    %c0_1 = arith.constant 0 : index
    %c0_2 = arith.constant 0 : index
    %2 = vector.load %arg1[%c0_1, %c0_2] : memref<32x32xf32, #tpu.memory_space<vmem>>, vector<32x32xf32>
    %3 = arith.truncf %2 : vector<32x32xf32> to vector<32x32xbf16>
    %cst = arith.constant dense<0.000000e+00> : vector<16x32xf32>
    %4 = tpu.matmul %1, %3, %cst {dimension_numbers = #tpu.dot_dimension_numbers<[1], [0], [0], [1], [0, 0, 1, 1], [], []>} : vector<16x32xbf16>, vector<32x32xbf16>, vector<16x32xf32> -> vector<16x32xf32>
    %c0_3 = arith.constant 0 : index
    %c0_4 = arith.constant 0 : index
    %5 = vector.load %arg2[%c0_3, %c0_4] : memref<1x32xf32, #tpu.memory_space<vmem>>, vector<1x32xf32>
    %6 = vector.broadcast %5 : vector<1x32xf32> to vector<16x32xf32>
    %7 = arith.addf %4, %6 : vector<16x32xf32>
    %8 = arith.truncf %7 : vector<16x32xf32> to vector<16x32xbf16>
    %c0_5 = arith.constant 0 : index
    %c0_6 = arith.constant 0 : index
    %9 = vector.load %arg3[%c0_5, %c0_6] : memref<16x32xbf16, #tpu.memory_space<vmem>>, vector<16x32xbf16>
    tpu.vector_store %arg3[%c0_5, %c0_6], %8 {strides = array<i32>} : memref<16x32xbf16, #tpu.memory_space<vmem>>, vector<16x32xbf16>,
    return
  }
}

module attributes {stable_mosaic.version = 11 : i64} {
  func.func @_mha_kernel(%arg0: memref<2x8x32xbf16, #tpu.memory_space<vmem>>, %arg1: memref<2x8x32xbf16, #tpu.memory_space<vmem>>, %arg2: memref<2x8x32xbf16, #tpu.memory_space<vmem>>, %arg3: memref<2x1x8xf32, #tpu.memory_space<vmem>>, %arg4: memref<2x8x32xbf16, #tpu.memory_space<vmem>>) attributes {dimension_semantics = [], scalar_prefetch = 0 : i64, scratch_operands = 0 : i64, tpu.core_type = #tpu.core_type<tc>} {
    %c0 = arith.constant 0 : index
    %c0_0 = arith.constant 0 : index
    %c0_1 = arith.constant 0 : index
    %0 = vector.load %arg0[%c0, %c0_0, %c0_1] : memref<2x8x32xbf16, #tpu.memory_space<vmem>>, vector<2x8x32xbf16>
    %c0_2 = arith.constant 0 : index
    %c0_3 = arith.constant 0 : index
    %c0_4 = arith.constant 0 : index
    %1 = vector.load %arg1[%c0_2, %c0_3, %c0_4] : memref<2x8x32xbf16, #tpu.memory_space<vmem>>, vector<2x8x32xbf16>
    %c0_5 = arith.constant 0 : index
    %c0_6 = arith.constant 0 : index
    %c0_7 = arith.constant 0 : index
    %2 = vector.load %arg2[%c0_5, %c0_6, %c0_7] : memref<2x8x32xbf16, #tpu.memory_space<vmem>>, vector<2x8x32xbf16>
    %3 = tpu.iota {dimensions = array<i32: 1>} : vector<2x8x8xi32>
    %4 = tpu.iota {dimensions = array<i32: 2>} : vector<2x8x8xi32>
    %5 = arith.cmpi sgt, %4, %3 : vector<2x8x8xi32>
    %cst = arith.constant -1.000000e+30 : f32
    %cst_8 = arith.constant 0.000000e+00 : f32
    %6 = vector.broadcast %cst : f32 to vector<2x8x8xf32>
    %7 = vector.broadcast %cst_8 : f32 to vector<2x8x8xf32>
    %8 = arith.select %5, %6, %7 : vector<2x8x8xi1>, vector<2x8x8xf32>
    %9 = vector.extract_strided_slice %0 {offsets = [0, 0, 0], sizes = [2, 8, 8], strides = [1, 1, 1]} : vector<2x8x32xbf16> to vector<2x8x8xbf16>
    %10 = vector.extract_strided_slice %1 {offsets = [0, 0, 0], sizes = [2, 8, 8], strides = [1, 1, 1]} : vector<2x8x32xbf16> to vector<2x8x8xbf16>
    %11 = vector.extract_strided_slice %2 {offsets = [0, 0, 0], sizes = [2, 8, 8], strides = [1, 1, 1]} : vector<2x8x32xbf16> to vector<2x8x8xbf16>
    "tpu.trace_start"() <{level = 10 : i32, message = "bqd,bkd->bqk"}> : () -> ()
    %cst_9 = arith.constant dense<0.000000e+00> : vector<2x8x8xf32>
    %12 = tpu.matmul %9, %10, %cst_9 {dimension_numbers = #tpu.dot_dimension_numbers<[2], [2], [1], [1], [0, 0, 0, 1, 1, 1], [0], [0]>} : vector<2x8x8xbf16>, vector<2x8x8xbf16>, vector<2x8x8xf32> -> vector<2x8x8xf32>
    "tpu.trace_stop"() : () -> ()
    %cst_10 = arith.constant 0.353553385 : f32
    %13 = vector.broadcast %cst_10 : f32 to vector<2x8x8xf32>
    %14 = arith.mulf %12, %13 : vector<2x8x8xf32>
    %c0_11 = arith.constant 0 : index
    %c0_12 = arith.constant 0 : index
    %c0_13 = arith.constant 0 : index
    %15 = vector.load %arg3[%c0_11, %c0_12, %c0_13] : memref<2x1x8xf32, #tpu.memory_space<vmem>>, vector<2x1x8xf32>
    %16 = vector.broadcast %15 : vector<2x1x8xf32> to vector<2x8x8xf32>
    %17 = arith.addf %14, %16 : vector<2x8x8xf32>
    %18 = arith.addf %17, %8 : vector<2x8x8xf32>
    %cst_14 = arith.constant dense<0xFF800000> : vector<2x8xf32>
    %19 = vector.multi_reduction <maximumf>, %18, %cst_14 [2] : vector<2x8x8xf32> to vector<2x8xf32>
    %20 = vector.shape_cast %19 : vector<2x8xf32> to vector<2x8x1xf32>
    %21 = vector.broadcast %20 : vector<2x8x1xf32> to vector<2x8x8xf32>
    %22 = arith.subf %18, %21 : vector<2x8x8xf32>
    %23 = math.exp %22 : vector<2x8x8xf32>
    %cst_15 = arith.constant dense<0.000000e+00> : vector<2x8xf32>
    %24 = vector.multi_reduction <add>, %23, %cst_15 [2] : vector<2x8x8xf32> to vector<2x8xf32>
    %25 = vector.shape_cast %24 : vector<2x8xf32> to vector<2x8x1xf32>
    %26 = vector.broadcast %25 : vector<2x8x1xf32> to vector<2x8x8xf32>
    %27 = arith.divf %23, %26 : vector<2x8x8xf32>
    %28 = arith.truncf %27 : vector<2x8x8xf32> to vector<2x8x8xbf16>
    "tpu.trace_start"() <{level = 10 : i32, message = "bqk,bkd->bqd"}> : () -> ()
    %cst_16 = arith.constant dense<0.000000e+00> : vector<2x8x8xf32>
    %29 = tpu.matmul %28, %11, %cst_16 {dimension_numbers = #tpu.dot_dimension_numbers<[2], [1], [1], [2], [0, 0, 0, 1, 1, 2], [0], [0]>} : vector<2x8x8xbf16>, vector<2x8x8xbf16>, vector<2x8x8xf32> -> vector<2x8x8xf32>
    "tpu.trace_stop"() : () -> ()
    %30 = vector.extract_strided_slice %0 {offsets = [0, 0, 8], sizes = [2, 8, 8], strides = [1, 1, 1]} : vector<2x8x32xbf16> to vector<2x8x8xbf16>
    %31 = vector.extract_strided_slice %1 {offsets = [0, 0, 8], sizes = [2, 8, 8], strides = [1, 1, 1]} : vector<2x8x32xbf16> to vector<2x8x8xbf16>
    %32 = vector.extract_strided_slice %2 {offsets = [0, 0, 8], sizes = [2, 8, 8], strides = [1, 1, 1]} : vector<2x8x32xbf16> to vector<2x8x8xbf16>
    "tpu.trace_start"() <{level = 10 : i32, message = "bqd,bkd->bqk"}> : () -> ()
    %cst_17 = arith.constant dense<0.000000e+00> : vector<2x8x8xf32>
    %33 = tpu.matmul %30, %31, %cst_17 {dimension_numbers = #tpu.dot_dimension_numbers<[2], [2], [1], [1], [0, 0, 0, 1, 1, 1], [0], [0]>} : vector<2x8x8xbf16>, vector<2x8x8xbf16>, vector<2x8x8xf32> -> vector<2x8x8xf32>
    "tpu.trace_stop"() : () -> ()
    %cst_18 = arith.constant 0.353553385 : f32
    %34 = vector.broadcast %cst_18 : f32 to vector<2x8x8xf32>
    %35 = arith.mulf %33, %34 : vector<2x8x8xf32>
    %c0_19 = arith.constant 0 : index
    %c0_20 = arith.constant 0 : index
    %c0_21 = arith.constant 0 : index
    %36 = vector.load %arg3[%c0_19, %c0_20, %c0_21] : memref<2x1x8xf32, #tpu.memory_space<vmem>>, vector<2x1x8xf32>
    %37 = vector.broadcast %36 : vector<2x1x8xf32> to vector<2x8x8xf32>
    %38 = arith.addf %35, %37 : vector<2x8x8xf32>
    %39 = arith.addf %38, %8 : vector<2x8x8xf32>
    %cst_22 = arith.constant dense<0xFF800000> : vector<2x8xf32>
    %40 = vector.multi_reduction <maximumf>, %39, %cst_22 [2] : vector<2x8x8xf32> to vector<2x8xf32>
    %41 = vector.shape_cast %40 : vector<2x8xf32> to vector<2x8x1xf32>
    %42 = vector.broadcast %41 : vector<2x8x1xf32> to vector<2x8x8xf32>
    %43 = arith.subf %39, %42 : vector<2x8x8xf32>
    %44 = math.exp %43 : vector<2x8x8xf32>
    %cst_23 = arith.constant dense<0.000000e+00> : vector<2x8xf32>
    %45 = vector.multi_reduction <add>, %44, %cst_23 [2] : vector<2x8x8xf32> to vector<2x8xf32>
    %46 = vector.shape_cast %45 : vector<2x8xf32> to vector<2x8x1xf32>
    %47 = vector.broadcast %46 : vector<2x8x1xf32> to vector<2x8x8xf32>
    %48 = arith.divf %44, %47 : vector<2x8x8xf32>
    %49 = arith.truncf %48 : vector<2x8x8xf32> to vector<2x8x8xbf16>
    "tpu.trace_start"() <{level = 10 : i32, message = "bqk,bkd->bqd"}> : () -> ()
    %cst_24 = arith.constant dense<0.000000e+00> : vector<2x8x8xf32>
    %50 = tpu.matmul %49, %32, %cst_24 {dimension_numbers = #tpu.dot_dimension_numbers<[2], [1], [1], [2], [0, 0, 0, 1, 1, 2], [0], [0]>} : vector<2x8x8xbf16>, vector<2x8x8xbf16>, vector<2x8x8xf32> -> vector<2x8x8xf32>
    "tpu.trace_stop"() : () -> ()
    %51 = vector.extract_strided_slice %0 {offsets = [0, 0, 16], sizes = [2, 8, 8], strides = [1, 1, 1]} : vector<2x8x32xbf16> to vector<2x8x8xbf16>
    %52 = vector.extract_strided_slice %1 {offsets = [0, 0, 16], sizes = [2, 8, 8], strides = [1, 1, 1]} : vector<2x8x32xbf16> to vector<2x8x8xbf16>
    %53 = vector.extract_strided_slice %2 {offsets = [0, 0, 16], sizes = [2, 8, 8], strides = [1, 1, 1]} : vector<2x8x32xbf16> to vector<2x8x8xbf16>
    "tpu.trace_start"() <{level = 10 : i32, message = "bqd,bkd->bqk"}> : () -> ()
    %cst_25 = arith.constant dense<0.000000e+00> : vector<2x8x8xf32>
    %54 = tpu.matmul %51, %52, %cst_25 {dimension_numbers = #tpu.dot_dimension_numbers<[2], [2], [1], [1], [0, 0, 0, 1, 1, 1], [0], [0]>} : vector<2x8x8xbf16>, vector<2x8x8xbf16>, vector<2x8x8xf32> -> vector<2x8x8xf32>
    "tpu.trace_stop"() : () -> ()
    %cst_26 = arith.constant 0.353553385 : f32
    %55 = vector.broadcast %cst_26 : f32 to vector<2x8x8xf32>
    %56 = arith.mulf %54, %55 : vector<2x8x8xf32>
    %c0_27 = arith.constant 0 : index
    %c0_28 = arith.constant 0 : index
    %c0_29 = arith.constant 0 : index
    %57 = vector.load %arg3[%c0_27, %c0_28, %c0_29] : memref<2x1x8xf32, #tpu.memory_space<vmem>>, vector<2x1x8xf32>
    %58 = vector.broadcast %57 : vector<2x1x8xf32> to vector<2x8x8xf32>
    %59 = arith.addf %56, %58 : vector<2x8x8xf32>
    %60 = arith.addf %59, %8 : vector<2x8x8xf32>
    %cst_30 = arith.constant dense<0xFF800000> : vector<2x8xf32>
    %61 = vector.multi_reduction <maximumf>, %60, %cst_30 [2] : vector<2x8x8xf32> to vector<2x8xf32>
    %62 = vector.shape_cast %61 : vector<2x8xf32> to vector<2x8x1xf32>
    %63 = vector.broadcast %62 : vector<2x8x1xf32> to vector<2x8x8xf32>
    %64 = arith.subf %60, %63 : vector<2x8x8xf32>
    %65 = math.exp %64 : vector<2x8x8xf32>
    %cst_31 = arith.constant dense<0.000000e+00> : vector<2x8xf32>
    %66 = vector.multi_reduction <add>, %65, %cst_31 [2] : vector<2x8x8xf32> to vector<2x8xf32>
    %67 = vector.shape_cast %66 : vector<2x8xf32> to vector<2x8x1xf32>
    %68 = vector.broadcast %67 : vector<2x8x1xf32> to vector<2x8x8xf32>
    %69 = arith.divf %65, %68 : vector<2x8x8xf32>
    %70 = arith.truncf %69 : vector<2x8x8xf32> to vector<2x8x8xbf16>
    "tpu.trace_start"() <{level = 10 : i32, message = "bqk,bkd->bqd"}> : () -> ()
    %cst_32 = arith.constant dense<0.000000e+00> : vector<2x8x8xf32>
    %71 = tpu.matmul %70, %53, %cst_32 {dimension_numbers = #tpu.dot_dimension_numbers<[2], [1], [1], [2], [0, 0, 0, 1, 1, 2], [0], [0]>} : vector<2x8x8xbf16>, vector<2x8x8xbf16>, vector<2x8x8xf32> -> vector<2x8x8xf32>
    "tpu.trace_stop"() : () -> ()
    %72 = vector.extract_strided_slice %0 {offsets = [0, 0, 24], sizes = [2, 8, 8], strides = [1, 1, 1]} : vector<2x8x32xbf16> to vector<2x8x8xbf16>
    %73 = vector.extract_strided_slice %1 {offsets = [0, 0, 24], sizes = [2, 8, 8], strides = [1, 1, 1]} : vector<2x8x32xbf16> to vector<2x8x8xbf16>
    %74 = vector.extract_strided_slice %2 {offsets = [0, 0, 24], sizes = [2, 8, 8], strides = [1, 1, 1]} : vector<2x8x32xbf16> to vector<2x8x8xbf16>
    "tpu.trace_start"() <{level = 10 : i32, message = "bqd,bkd->bqk"}> : () -> ()
    %cst_33 = arith.constant dense<0.000000e+00> : vector<2x8x8xf32>
    %75 = tpu.matmul %72, %73, %cst_33 {dimension_numbers = #tpu.dot_dimension_numbers<[2], [2], [1], [1], [0, 0, 0, 1, 1, 1], [0], [0]>} : vector<2x8x8xbf16>, vector<2x8x8xbf16>, vector<2x8x8xf32> -> vector<2x8x8xf32>
    "tpu.trace_stop"() : () -> ()
    %cst_34 = arith.constant 0.353553385 : f32
    %76 = vector.broadcast %cst_34 : f32 to vector<2x8x8xf32>
    %77 = arith.mulf %75, %76 : vector<2x8x8xf32>
    %c0_35 = arith.constant 0 : index
    %c0_36 = arith.constant 0 : index
    %c0_37 = arith.constant 0 : index
    %78 = vector.load %arg3[%c0_35, %c0_36, %c0_37] : memref<2x1x8xf32, #tpu.memory_space<vmem>>, vector<2x1x8xf32>
    %79 = vector.broadcast %78 : vector<2x1x8xf32> to vector<2x8x8xf32>
    %80 = arith.addf %77, %79 : vector<2x8x8xf32>
    %81 = arith.addf %80, %8 : vector<2x8x8xf32>
    %cst_38 = arith.constant dense<0xFF800000> : vector<2x8xf32>
    %82 = vector.multi_reduction <maximumf>, %81, %cst_38 [2] : vector<2x8x8xf32> to vector<2x8xf32>
    %83 = vector.shape_cast %82 : vector<2x8xf32> to vector<2x8x1xf32>
    %84 = vector.broadcast %83 : vector<2x8x1xf32> to vector<2x8x8xf32>
    %85 = arith.subf %81, %84 : vector<2x8x8xf32>
    %86 = math.exp %85 : vector<2x8x8xf32>
    %cst_39 = arith.constant dense<0.000000e+00> : vector<2x8xf32>
    %87 = vector.multi_reduction <add>, %86, %cst_39 [2] : vector<2x8x8xf32> to vector<2x8xf32>
    %88 = vector.shape_cast %87 : vector<2x8xf32> to vector<2x8x1xf32>
    %89 = vector.broadcast %88 : vector<2x8x1xf32> to vector<2x8x8xf32>
    %90 = arith.divf %86, %89 : vector<2x8x8xf32>
    %91 = arith.truncf %90 : vector<2x8x8xf32> to vector<2x8x8xbf16>
    "tpu.trace_start"() <{level = 10 : i32, message = "bqk,bkd->bqd"}> : () -> ()
    %cst_40 = arith.constant dense<0.000000e+00> : vector<2x8x8xf32>
    %92 = tpu.matmul %91, %74, %cst_40 {dimension_numbers = #tpu.dot_dimension_numbers<[2], [1], [1], [2], [0, 0, 0, 1, 1, 2], [0], [0]>} : vector<2x8x8xbf16>, vector<2x8x8xbf16>, vector<2x8x8xf32> -> vector<2x8x8xf32>
    "tpu.trace_stop"() : () -> ()
    %93 = tpu.concatenate %29, %50, %71, %92 in 2 : vector<2x8x8xf32>, vector<2x8x8xf32>, vector<2x8x8xf32>, vector<2x8x8xf32> -> vector<2x8x32xf32>
    %94 = arith.truncf %93 : vector<2x8x32xf32> to vector<2x8x32xbf16>
    %c0_41 = arith.constant 0 : index
    %c0_42 = arith.constant 0 : index
    %c0_43 = arith.constant 0 : index
    %95 = vector.load %arg4[%c0_41, %c0_42, %c0_43] : memref<2x8x32xbf16, #tpu.memory_space<vmem>>, vector<2x8x32xbf16>
    tpu.vector_store %arg4[%c0_41, %c0_42, %c0_43], %94 {strides = array<i32>} : memref<2x8x32xbf16, #tpu.memory_space<vmem>>, vector<2x8x32xbf16>,
    return
  }
}

module attributes {stable_mosaic.version = 11 : i64} {
  func.func @_mha_kernel(%arg0: memref<2x8x32xbf16, #tpu.memory_space<vmem>>, %arg1: memref<2x8x32xbf16, #tpu.memory_space<vmem>>, %arg2: memref<2x8x32xbf16, #tpu.memory_space<vmem>>, %arg3: memref<2x8x32xbf16, #tpu.memory_space<vmem>>) attributes {dimension_semantics = [], scalar_prefetch = 0 : i64, scratch_operands = 0 : i64, tpu.core_type = #tpu.core_type<tc>} {
    %c0 = arith.constant 0 : index
    %c0_0 = arith.constant 0 : index
    %c0_1 = arith.constant 0 : index
    %0 = vector.load %arg0[%c0, %c0_0, %c0_1] : memref<2x8x32xbf16, #tpu.memory_space<vmem>>, vector<2x8x32xbf16>
    %c0_2 = arith.constant 0 : index
    %c0_3 = arith.constant 0 : index
    %c0_4 = arith.constant 0 : index
    %1 = vector.load %arg1[%c0_2, %c0_3, %c0_4] : memref<2x8x32xbf16, #tpu.memory_space<vmem>>, vector<2x8x32xbf16>
    %c0_5 = arith.constant 0 : index
    %c0_6 = arith.constant 0 : index
    %c0_7 = arith.constant 0 : index
    %2 = vector.load %arg2[%c0_5, %c0_6, %c0_7] : memref<2x8x32xbf16, #tpu.memory_space<vmem>>, vector<2x8x32xbf16>
    %3 = vector.extract_strided_slice %0 {offsets = [0, 0, 0], sizes = [2, 8, 8], strides = [1, 1, 1]} : vector<2x8x32xbf16> to vector<2x8x8xbf16>
    %4 = vector.extract_strided_slice %1 {offsets = [0, 0, 0], sizes = [2, 8, 8], strides = [1, 1, 1]} : vector<2x8x32xbf16> to vector<2x8x8xbf16>
    %5 = vector.extract_strided_slice %2 {offsets = [0, 0, 0], sizes = [2, 8, 8], strides = [1, 1, 1]} : vector<2x8x32xbf16> to vector<2x8x8xbf16>
    "tpu.trace_start"() <{level = 10 : i32, message = "bqd,bkd->bqk"}> : () -> ()
    %cst = arith.constant dense<0.000000e+00> : vector<2x8x8xf32>
    %6 = tpu.matmul %3, %4, %cst {dimension_numbers = #tpu.dot_dimension_numbers<[2], [2], [1], [1], [0, 0, 0, 1, 1, 1], [0], [0]>} : vector<2x8x8xbf16>, vector<2x8x8xbf16>, vector<2x8x8xf32> -> vector<2x8x8xf32>
    "tpu.trace_stop"() : () -> ()
    %cst_8 = arith.constant 0.353553385 : f32
    %7 = vector.broadcast %cst_8 : f32 to vector<2x8x8xf32>
    %8 = arith.mulf %6, %7 : vector<2x8x8xf32>
    %cst_9 = arith.constant dense<0xFF800000> : vector<2x8xf32>
    %9 = vector.multi_reduction <maximumf>, %8, %cst_9 [2] : vector<2x8x8xf32> to vector<2x8xf32>
    %10 = vector.shape_cast %9 : vector<2x8xf32> to vector<2x8x1xf32>
    %11 = vector.broadcast %10 : vector<2x8x1xf32> to vector<2x8x8xf32>
    %12 = arith.subf %8, %11 : vector<2x8x8xf32>
    %13 = math.exp %12 : vector<2x8x8xf32>
    %cst_10 = arith.constant dense<0.000000e+00> : vector<2x8xf32>
    %14 = vector.multi_reduction <add>, %13, %cst_10 [2] : vector<2x8x8xf32> to vector<2x8xf32>
    %15 = vector.shape_cast %14 : vector<2x8xf32> to vector<2x8x1xf32>
    %16 = vector.broadcast %15 : vector<2x8x1xf32> to vector<2x8x8xf32>
    %17 = arith.divf %13, %16 : vector<2x8x8xf32>
    %18 = arith.truncf %17 : vector<2x8x8xf32> to vector<2x8x8xbf16>
    "tpu.trace_start"() <{level = 10 : i32, message = "bqk,bkd->bqd"}> : () -> ()
    %cst_11 = arith.constant dense<0.000000e+00> : vector<2x8x8xf32>
    %19 = tpu.matmul %18, %5, %cst_11 {dimension_numbers = #tpu.dot_dimension_numbers<[2], [1], [1], [2], [0, 0, 0, 1, 1, 2], [0], [0]>} : vector<2x8x8xbf16>, vector<2x8x8xbf16>, vector<2x8x8xf32> -> vector<2x8x8xf32>
    "tpu.trace_stop"() : () -> ()
    %20 = vector.extract_strided_slice %0 {offsets = [0, 0, 8], sizes = [2, 8, 8], strides = [1, 1, 1]} : vector<2x8x32xbf16> to vector<2x8x8xbf16>
    %21 = vector.extract_strided_slice %1 {offsets = [0, 0, 8], sizes = [2, 8, 8], strides = [1, 1, 1]} : vector<2x8x32xbf16> to vector<2x8x8xbf16>
    %22 = vector.extract_strided_slice %2 {offsets = [0, 0, 8], sizes = [2, 8, 8], strides = [1, 1, 1]} : vector<2x8x32xbf16> to vector<2x8x8xbf16>
    "tpu.trace_start"() <{level = 10 : i32, message = "bqd,bkd->bqk"}> : () -> ()
    %cst_12 = arith.constant dense<0.000000e+00> : vector<2x8x8xf32>
    %23 = tpu.matmul %20, %21, %cst_12 {dimension_numbers = #tpu.dot_dimension_numbers<[2], [2], [1], [1], [0, 0, 0, 1, 1, 1], [0], [0]>} : vector<2x8x8xbf16>, vector<2x8x8xbf16>, vector<2x8x8xf32> -> vector<2x8x8xf32>
    "tpu.trace_stop"() : () -> ()
    %cst_13 = arith.constant 0.353553385 : f32
    %24 = vector.broadcast %cst_13 : f32 to vector<2x8x8xf32>
    %25 = arith.mulf %23, %24 : vector<2x8x8xf32>
    %cst_14 = arith.constant dense<0xFF800000> : vector<2x8xf32>
    %26 = vector.multi_reduction <maximumf>, %25, %cst_14 [2] : vector<2x8x8xf32> to vector<2x8xf32>
    %27 = vector.shape_cast %26 : vector<2x8xf32> to vector<2x8x1xf32>
    %28 = vector.broadcast %27 : vector<2x8x1xf32> to vector<2x8x8xf32>
    %29 = arith.subf %25, %28 : vector<2x8x8xf32>
    %30 = math.exp %29 : vector<2x8x8xf32>
    %cst_15 = arith.constant dense<0.000000e+00> : vector<2x8xf32>
    %31 = vector.multi_reduction <add>, %30, %cst_15 [2] : vector<2x8x8xf32> to vector<2x8xf32>
    %32 = vector.shape_cast %31 : vector<2x8xf32> to vector<2x8x1xf32>
    %33 = vector.broadcast %32 : vector<2x8x1xf32> to vector<2x8x8xf32>
    %34 = arith.divf %30, %33 : vector<2x8x8xf32>
    %35 = arith.truncf %34 : vector<2x8x8xf32> to vector<2x8x8xbf16>
    "tpu.trace_start"() <{level = 10 : i32, message = "bqk,bkd->bqd"}> : () -> ()
    %cst_16 = arith.constant dense<0.000000e+00> : vector<2x8x8xf32>
    %36 = tpu.matmul %35, %22, %cst_16 {dimension_numbers = #tpu.dot_dimension_numbers<[2], [1], [1], [2], [0, 0, 0, 1, 1, 2], [0], [0]>} : vector<2x8x8xbf16>, vector<2x8x8xbf16>, vector<2x8x8xf32> -> vector<2x8x8xf32>
    "tpu.trace_stop"() : () -> ()
    %37 = vector.extract_strided_slice %0 {offsets = [0, 0, 16], sizes = [2, 8, 8], strides = [1, 1, 1]} : vector<2x8x32xbf16> to vector<2x8x8xbf16>
    %38 = vector.extract_strided_slice %1 {offsets = [0, 0, 16], sizes = [2, 8, 8], strides = [1, 1, 1]} : vector<2x8x32xbf16> to vector<2x8x8xbf16>
    %39 = vector.extract_strided_slice %2 {offsets = [0, 0, 16], sizes = [2, 8, 8], strides = [1, 1, 1]} : vector<2x8x32xbf16> to vector<2x8x8xbf16>
    "tpu.trace_start"() <{level = 10 : i32, message = "bqd,bkd->bqk"}> : () -> ()
    %cst_17 = arith.constant dense<0.000000e+00> : vector<2x8x8xf32>
    %40 = tpu.matmul %37, %38, %cst_17 {dimension_numbers = #tpu.dot_dimension_numbers<[2], [2], [1], [1], [0, 0, 0, 1, 1, 1], [0], [0]>} : vector<2x8x8xbf16>, vector<2x8x8xbf16>, vector<2x8x8xf32> -> vector<2x8x8xf32>
    "tpu.trace_stop"() : () -> ()
    %cst_18 = arith.constant 0.353553385 : f32
    %41 = vector.broadcast %cst_18 : f32 to vector<2x8x8xf32>
    %42 = arith.mulf %40, %41 : vector<2x8x8xf32>
    %cst_19 = arith.constant dense<0xFF800000> : vector<2x8xf32>
    %43 = vector.multi_reduction <maximumf>, %42, %cst_19 [2] : vector<2x8x8xf32> to vector<2x8xf32>
    %44 = vector.shape_cast %43 : vector<2x8xf32> to vector<2x8x1xf32>
    %45 = vector.broadcast %44 : vector<2x8x1xf32> to vector<2x8x8xf32>
    %46 = arith.subf %42, %45 : vector<2x8x8xf32>
    %47 = math.exp %46 : vector<2x8x8xf32>
    %cst_20 = arith.constant dense<0.000000e+00> : vector<2x8xf32>
    %48 = vector.multi_reduction <add>, %47, %cst_20 [2] : vector<2x8x8xf32> to vector<2x8xf32>
    %49 = vector.shape_cast %48 : vector<2x8xf32> to vector<2x8x1xf32>
    %50 = vector.broadcast %49 : vector<2x8x1xf32> to vector<2x8x8xf32>
    %51 = arith.divf %47, %50 : vector<2x8x8xf32>
    %52 = arith.truncf %51 : vector<2x8x8xf32> to vector<2x8x8xbf16>
    "tpu.trace_start"() <{level = 10 : i32, message = "bqk,bkd->bqd"}> : () -> ()
    %cst_21 = arith.constant dense<0.000000e+00> : vector<2x8x8xf32>
    %53 = tpu.matmul %52, %39, %cst_21 {dimension_numbers = #tpu.dot_dimension_numbers<[2], [1], [1], [2], [0, 0, 0, 1, 1, 2], [0], [0]>} : vector<2x8x8xbf16>, vector<2x8x8xbf16>, vector<2x8x8xf32> -> vector<2x8x8xf32>
    "tpu.trace_stop"() : () -> ()
    %54 = vector.extract_strided_slice %0 {offsets = [0, 0, 24], sizes = [2, 8, 8], strides = [1, 1, 1]} : vector<2x8x32xbf16> to vector<2x8x8xbf16>
    %55 = vector.extract_strided_slice %1 {offsets = [0, 0, 24], sizes = [2, 8, 8], strides = [1, 1, 1]} : vector<2x8x32xbf16> to vector<2x8x8xbf16>
    %56 = vector.extract_strided_slice %2 {offsets = [0, 0, 24], sizes = [2, 8, 8], strides = [1, 1, 1]} : vector<2x8x32xbf16> to vector<2x8x8xbf16>
    "tpu.trace_start"() <{level = 10 : i32, message = "bqd,bkd->bqk"}> : () -> ()
    %cst_22 = arith.constant dense<0.000000e+00> : vector<2x8x8xf32>
    %57 = tpu.matmul %54, %55, %cst_22 {dimension_numbers = #tpu.dot_dimension_numbers<[2], [2], [1], [1], [0, 0, 0, 1, 1, 1], [0], [0]>} : vector<2x8x8xbf16>, vector<2x8x8xbf16>, vector<2x8x8xf32> -> vector<2x8x8xf32>
    "tpu.trace_stop"() : () -> ()
    %cst_23 = arith.constant 0.353553385 : f32
    %58 = vector.broadcast %cst_23 : f32 to vector<2x8x8xf32>
    %59 = arith.mulf %57, %58 : vector<2x8x8xf32>
    %cst_24 = arith.constant dense<0xFF800000> : vector<2x8xf32>
    %60 = vector.multi_reduction <maximumf>, %59, %cst_24 [2] : vector<2x8x8xf32> to vector<2x8xf32>
    %61 = vector.shape_cast %60 : vector<2x8xf32> to vector<2x8x1xf32>
    %62 = vector.broadcast %61 : vector<2x8x1xf32> to vector<2x8x8xf32>
    %63 = arith.subf %59, %62 : vector<2x8x8xf32>
    %64 = math.exp %63 : vector<2x8x8xf32>
    %cst_25 = arith.constant dense<0.000000e+00> : vector<2x8xf32>
    %65 = vector.multi_reduction <add>, %64, %cst_25 [2] : vector<2x8x8xf32> to vector<2x8xf32>
    %66 = vector.shape_cast %65 : vector<2x8xf32> to vector<2x8x1xf32>
    %67 = vector.broadcast %66 : vector<2x8x1xf32> to vector<2x8x8xf32>
    %68 = arith.divf %64, %67 : vector<2x8x8xf32>
    %69 = arith.truncf %68 : vector<2x8x8xf32> to vector<2x8x8xbf16>
    "tpu.trace_start"() <{level = 10 : i32, message = "bqk,bkd->bqd"}> : () -> ()
    %cst_26 = arith.constant dense<0.000000e+00> : vector<2x8x8xf32>
    %70 = tpu.matmul %69, %56, %cst_26 {dimension_numbers = #tpu.dot_dimension_numbers<[2], [1], [1], [2], [0, 0, 0, 1, 1, 2], [0], [0]>} : vector<2x8x8xbf16>, vector<2x8x8xbf16>, vector<2x8x8xf32> -> vector<2x8x8xf32>
    "tpu.trace_stop"() : () -> ()
    %71 = tpu.concatenate %19, %36, %53, %70 in 2 : vector<2x8x8xf32>, vector<2x8x8xf32>, vector<2x8x8xf32>, vector<2x8x8xf32> -> vector<2x8x32xf32>
    %72 = arith.truncf %71 : vector<2x8x32xf32> to vector<2x8x32xbf16>
    %c0_27 = arith.constant 0 : index
    %c0_28 = arith.constant 0 : index
    %c0_29 = arith.constant 0 : index
    %73 = vector.load %arg3[%c0_27, %c0_28, %c0_29] : memref<2x8x32xbf16, #tpu.memory_space<vmem>>, vector<2x8x32xbf16>
    tpu.vector_store %arg3[%c0_27, %c0_28, %c0_29], %72 {strides = array<i32>} : memref<2x8x32xbf16, #tpu.memory_space<vmem>>, vector<2x8x32xbf16>,
    return
  }
}

module attributes {stable_mosaic.version = 11 : i64} {
  func.func @_linear_kernel(%arg0: memref<16x32xf32, #tpu.memory_space<vmem>>, %arg1: memref<32x128xf32, #tpu.memory_space<vmem>>, %arg2: memref<1x128xf32, #tpu.memory_space<vmem>>, %arg3: memref<16x128xf32, #tpu.memory_space<vmem>>) attributes {dimension_semantics = [], scalar_prefetch = 0 : i64, scratch_operands = 0 : i64, tpu.core_type = #tpu.core_type<tc>} {
    %c0 = arith.constant 0 : index
    %c0_0 = arith.constant 0 : index
    %0 = vector.load %arg0[%c0, %c0_0] : memref<16x32xf32, #tpu.memory_space<vmem>>, vector<16x32xf32>
    %1 = arith.truncf %0 : vector<16x32xf32> to vector<16x32xbf16>
    %c0_1 = arith.constant 0 : index
    %c0_2 = arith.constant 0 : index
    %2 = vector.load %arg1[%c0_1, %c0_2] : memref<32x128xf32, #tpu.memory_space<vmem>>, vector<32x128xf32>
    %3 = arith.truncf %2 : vector<32x128xf32> to vector<32x128xbf16>
    %cst = arith.constant dense<0.000000e+00> : vector<16x128xf32>
    %4 = tpu.matmul %1, %3, %cst {dimension_numbers = #tpu.dot_dimension_numbers<[1], [0], [0], [1], [0, 0, 1, 1], [], []>} : vector<16x32xbf16>, vector<32x128xbf16>, vector<16x128xf32> -> vector<16x128xf32>
    %c0_3 = arith.constant 0 : index
    %c0_4 = arith.constant 0 : index
    %5 = vector.load %arg2[%c0_3, %c0_4] : memref<1x128xf32, #tpu.memory_space<vmem>>, vector<1x128xf32>
    %6 = vector.broadcast %5 : vector<1x128xf32> to vector<16x128xf32>
    %7 = arith.addf %4, %6 : vector<16x128xf32>
    %c0_5 = arith.constant 0 : index
    %c0_6 = arith.constant 0 : index
    %8 = vector.load %arg3[%c0_5, %c0_6] : memref<16x128xf32, #tpu.memory_space<vmem>>, vector<16x128xf32>
    tpu.vector_store %arg3[%c0_5, %c0_6], %7 {strides = array<i32>} : memref<16x128xf32, #tpu.memory_space<vmem>>, vector<16x128xf32>,
    return
  }
}

</mosaic_0001>

<bundles_post_ra>
// kernel: transformer_forward.28
= control target key start
LH: loop header
LB: loop body
LE: loop exit
PB: predicated region body
PF: predicated region fallthrough
CT: control target
= control target key end

     0   :  { %v167_v0 = vmov 0.0   ;;  %vm168_vm0 = vmmov 0   ;;  %vm44_vm1 = vcmask 261120   ;;  %s247_s1 = inlined_call_operand.vmem [shape: f32[32,32], index: 1, kind: input, shape index: {}]   ;;  %s248_s0 = inlined_call_operand.vmem [shape: bf16[16,32], index: 0, kind: input, shape index: {}]   ;;  %s249_s2 = inlined_call_operand.vmem [shape: f32[1,32], index: 2, kind: input, shape index: {}]   ;;  %s250_s3 = inlined_call_operand.vmem [shape: f32[16,32], index: 3, kind: input, shape index: {}]   ;;  %s251_s4 = inlined_call_operand.vmem [shape: f32[1,32], index: 4, kind: input, shape index: {}]   ;;  %s252_s5 = inlined_call_operand.vmem [shape: f32[1,32], index: 5, kind: input, shape index: {}]   ;;  %s253_s6 = inlined_call_operand.vmem [shape: f32[16,32], index: 6, kind: output, shape index: {}]  }
   0x1   :  { %152 = vmatprep.subr.bf16.mxu0 %v167_v0  ;;  %v26_v1 = vld [vmem:[%s247_s1] sm:$0xff]  ;;  %v27_v2 = vld [vmem:[%s247_s1 + $0x8] sm:$0xff]  ;;  %v28_v3 = vld [vmem:[%s247_s1 + $0x10] sm:$0xff]  ;;  %156 = vmatprep.mubr.msk.bf16.mxu0 %vm168_vm0, %v167_v0 }
   0x2   :  { %v30_v4 = vpack.c.bf16 %v27_v2, %v26_v1  ;;  %v29_v5 = vld [vmem:[%s247_s1 + $0x18] sm:$0xff]  ;;  %v162_v7 = vld [vmem:[%s248_s0] sm:$0xff]   ;;  %v90_v14 = vld [vmem:[%s250_s3 + $0x8] sm:$0xff] }
   0x3   :  { %v31_v6 = vpack.c.bf16 %v29_v5, %v28_v3  ;;  %v144_v8 = vld [vmem:[%s249_s2] ss:$0 sm:$0xff] }
   0x4   :  { %153 = vmatpush3.bf16.msra.mxu0 %v30_v4  ;;  %v89_v10 = vld [vmem:[%s250_s3] sm:$0xff] }
   0x5   :  { %154 = vmatprep.subr.bf16.mxu0 %v167_v0  ;;  %v147_v38 = vld [vmem:[%s251_s4] ss:$0 sm:$0xff] }
   0x6   :  { %v148_v40 = vld [vmem:[%s252_s5] ss:$0 sm:$0xff] }
   0x8   :  { %155 = vmatpush3.bf16.msra.mxu0 %v31_v6 }
   0xb   :  { %157 = vmatmul.mubr.msk.bf16.vlgmr.msra.gmra.mrb[0].mxu0 %vm44_vm1, %v162_v7 }
  0xde   :  { %v82_v9 = vpop.f32.mrb[0].mxu0 }
  0xdf   :  { %v83_v11 = vadd.f32 %v144_v8, %v82_v9  ;;  %v158_v12 = vpop.f32.mrb[1].mxu0 }
  0xe0   :  { %v85_v13 = vpop.f32.mrb[2].mxu0 }
  0xe1   :  { %v86_v15 = vadd.f32 %v144_v8, %v85_v13  ;;  %v159_v16 = vpop.f32.mrb[3].mxu0  ;;  %v91_v17 = vadd.f32 %v89_v10, %v83_v11 }
  0xe3   :  { %v93_v18 = vsel %vm44_vm1, %v91_v17, 0.0  ;;  %v92_v19 = vadd.f32 %v90_v14, %v86_v15 }
  0xe4   :  { %94 = vadd.xlane.f32.xlu0 %v93_v18 }
  0xe5   :  { %v96_v20 = vsel %vm44_vm1, %v92_v19, 0.0 }
  0xe8   :  { %97 = vadd.xlane.f32.xlu0 %v96_v20 }
 0x171   :  { %v95_v21 = vpop.xlane.xlu0 %94 }
 0x172   :  { %v100_v22 = vmul.f32 0.03125, %v95_v21 }
 0x174   :  { %v102_v23 = vsub.f32 %v91_v17, %v100_v22 }
 0x175   :  { %v98_v24 = vpop.xlane.xlu0 %97 }
 0x176   :  { %v101_v25 = vmul.f32 0.03125, %v98_v24  ;;  %v104_v26 = vmul.f32 %v102_v23, %v102_v23 }
 0x178   :  { %v103_v27 = vsub.f32 %v92_v19, %v101_v25  ;;  %v106_v28 = vsel %vm44_vm1, %v104_v26, 0.0 }
 0x179   :  { %107 = vadd.xlane.f32.xlu1 %v106_v28 }
 0x17a   :  { %v105_v29 = vmul.f32 %v103_v27, %v103_v27 }
 0x17c   :  { %v109_v30 = vsel %vm44_vm1, %v105_v29, 0.0 }
 0x17d   :  { %110 = vadd.xlane.f32.xlu1 %v109_v30 }
 0x206   :  { %v108_v31 = vpop.xlane.xlu1 %107 }
 0x207   :  { %v112_v32 = vmul.f32 0.03125, %v108_v31 }
 0x209   :  { %v114_v33 = vadd.f32 1e-05, %v112_v32 }
 0x20a   :  { %v111_v34 = vpop.xlane.xlu1 %110 }
 0x20b   :  { %163 = vrsqrt.f32 %v114_v33  ;;  %v113_v35 = vmul.f32 0.03125, %v111_v34 }
 0x20d   :  { %v115_v36 = vadd.f32 1e-05, %v113_v35 }
 0x20f   :  { %165 = vrsqrt.f32 %v115_v36 }
 0x215   :  { %v164_v37 = vpop.eup %163 }
 0x216   :  { %v118_v39 = vmul.f32 %v164_v37, %v102_v23 }
 0x218   :  { %v127_v41 = vmul.f32 %v147_v38, %v118_v39 }
 0x219   :  { %v166_v42 = vpop.eup %165 }
 0x21a   :  { %v136_v43 = vadd.f32 %v148_v40, %v127_v41  ;;  %v119_v44 = vmul.f32 %v166_v42, %v103_v27 }
 0x21c   :  { %138 = vst.msk [vmem:[%s253_s6] sm:$0xff] %vm44_vm1, %v136_v43  ;;  %v128_v45 = vmul.f32 %v147_v38, %v119_v44 }
 0x21e   :  { %v137_v46 = vadd.f32 %v148_v40, %v128_v45 }
 0x220   :  { %139 = vst.msk [vmem:[%s253_s6 + $0x8] sm:$0xff] %vm44_vm1, %v137_v46 }

// kernel: transformer_forward.26
= control target key start
LH: loop header
LB: loop body
LE: loop exit
PB: predicated region body
PF: predicated region fallthrough
CT: control target
= control target key end

     0   :  { %v139_v0 = vmov 0.0   ;;  %vm140_vm0 = vmmov 0   ;;  %vm34_vm1 = vcmask 261120   ;;  %vm87_vm2 = vcmask 257024   ;;  %s141_s7 = smov 64   ;;  %s142_s8 = smov 96   ;;  %s218_s1 = inlined_call_operand.vmem [shape: f32[32,96], index: 1, kind: input, shape index: {}]   ;;  %s219_s0 = inlined_call_operand.vmem [shape: f32[16,32], index: 0, kind: input, shape index: {}]   ;;  %s220_s2 = inlined_call_operand.vmem [shape: f32[1,96], index: 2, kind: input, shape index: {}]   ;;  %s221_s3 = inlined_call_operand.vmem [shape: bf16[16,32], index: 3, kind: output, shape index: {0}]   ;;  %s222_s5 = inlined_call_operand.vmem [shape: bf16[16,32], index: 5, kind: output, shape index: {2}]   ;;  %s223_s4 = inlined_call_operand.vmem [shape: bf16[16,32], index: 4, kind: output, shape index: {1}]  }
   0x1   :  { %127 = vmatprep.subr.bf16.mxu0 %v139_v0  ;;  %v21_v1 = vld [vmem:[%s218_s1] sm:$0xff]  ;;  %v22_v2 = vld [vmem:[%s218_s1 + $0x8] sm:$0xff]  ;;  %v23_v3 = vld [vmem:[%s218_s1 + $0x10] sm:$0xff]  ;;  %131 = vmatprep.mubr.msk.bf16.mxu0 %vm140_vm0, %v139_v0 }
   0x2   :  { %v25_v4 = vpack.c.bf16 %v22_v2, %v21_v1  ;;  %v24_v5 = vld [vmem:[%s218_s1 + $0x18] sm:$0xff]  ;;  %v18_v7 = vld [vmem:[%s219_s0] sm:$0xff]  ;;  %v19_v8 = vld [vmem:[%s219_s0 + $0x8] sm:$0xff] }
   0x3   :  { %v26_v6 = vpack.c.bf16 %v24_v5, %v23_v3  ;;  %v20_v9 = vpack.c.bf16 %v19_v8, %v18_v7  ;;  %v118_v10 = vld [vmem:[%s220_s2] ss:$0 sm:$0xff] }
   0x4   :  { %128 = vmatpush3.bf16.msra.mxu0 %v25_v4 }
   0x5   :  { %129 = vmatprep.subr.bf16.mxu0 %v139_v0 }
   0x8   :  { %130 = vmatpush3.bf16.msra.mxu0 %v26_v6 }
   0xb   :  { %132 = vmatmul.mubr.msk.bf16.vlgmr.msra.gmra.mrb[0].mxu0 %vm34_vm1, %v20_v9 }
  0xde   :  { %v72_v11 = vpop.f32.mrb[0].mxu0 }
  0xdf   :  { %v73_v12 = vadd.f32 %v118_v10, %v72_v11  ;;  %v133_v13 = vpop.f32.mrb[1].mxu0 }
  0xe0   :  { %v75_v14 = vpop.f32.mrb[2].mxu0 }
  0xe1   :  { %v122_v15 = vpack.c.bf16 %v73_v12, %v73_v12  ;;  %v76_v16 = vadd.f32 %v118_v10, %v75_v14  ;;  %v134_v17 = vpop.f32.mrb[3].mxu0 }
  0xe3   :  { %88 = vst.msk [vmem:[%s221_s3] sm:$0xf] %vm87_vm2, %v122_v15  ;;  %v123_v18 = vpack.c.bf16 %v76_v16, %v76_v16  ;;  %98 = vrot.lane.b32.xlu1 %v122_v15, %s141_s7  ;;  %90 = vrot.lane.b32.xlu0 %v122_v15, %s142_s8 }
  0xe5   :  { %89 = vst.msk [vmem:[%s221_s3 + $0x4] sm:$0xf] %vm87_vm2, %v123_v18 }
  0xe7   :  { %100 = vrot.lane.b32.xlu1 %v123_v18, %s141_s7  ;;  %92 = vrot.lane.b32.xlu0 %v123_v18, %s142_s8 }
 0x155   :  { %v99_v19 = vpop.permute.xlu1 %98  ;;  %v91_v20 = vpop.permute.xlu0 %90 }
 0x156   :  { %104 = vst.msk [vmem:[%s222_s5] sm:$0xf] %vm87_vm2, %v99_v19  ;;  %96 = vst.msk [vmem:[%s223_s4] sm:$0xf] %vm87_vm2, %v91_v20 }
 0x159   :  { %v101_v21 = vpop.permute.xlu1 %100  ;;  %v93_v22 = vpop.permute.xlu0 %92 }
 0x15a   :  { %105 = vst.msk [vmem:[%s222_s5 + $0x4] sm:$0xf] %vm87_vm2, %v101_v21  ;;  %97 = vst.msk [vmem:[%s223_s4 + $0x4] sm:$0xf] %vm87_vm2, %v93_v22 }

// kernel: transformer_forward.29
= control target key start
LH: loop header
LB: loop body
LE: loop exit
PB: predicated region body
PF: predicated region fallthrough
CT: control target
= control target key end

     0   :  { %v267_v0 = vmov 0.0   ;;  %vm268_vm0 = vmmov 0   ;;  %vm43_vm1 = vcmask 261120   ;;  %s408_s1 = inlined_call_operand.vmem [shape: f32[32,128], index: 1, kind: input, shape index: {}]   ;;  %s409_s3 = inlined_call_operand.vmem [shape: f32[128,32], index: 3, kind: input, shape index: {}]   ;;  %s410_s0 = inlined_call_operand.vmem [shape: f32[16,32], index: 0, kind: input, shape index: {}]   ;;  %s411_s2 = inlined_call_operand.vmem [shape: f32[1,128], index: 2, kind: input, shape index: {}]   ;;  %s412_s4 = inlined_call_operand.vmem [shape: f32[1,32], index: 4, kind: input, shape index: {}]   ;;  %s413_s5 = inlined_call_operand.vmem [shape: f32[1,32], index: 5, kind: input, shape index: {}]   ;;  %s414_s6 = inlined_call_operand.vmem [shape: f32[1,32], index: 6, kind: input, shape index: {}]   ;;  %s415_s7 = inlined_call_operand.vmem [shape: f32[16,32], index: 7, kind: output, shape index: {}]  }
   0x1   :  { %233 = vmatprep.subr.bf16.mxu0 %v267_v0  ;;  %v30_v1 = vld [vmem:[%s408_s1] sm:$0xff]  ;;  %v31_v2 = vld [vmem:[%s408_s1 + $0x8] sm:$0xff]  ;;  %v32_v3 = vld [vmem:[%s408_s1 + $0x10] sm:$0xff]  ;;  %237 = vmatprep.mubr.msk.bf16.mxu0 %vm268_vm0, %v267_v0 }
   0x2   :  { %v34_v4 = vpack.c.bf16 %v31_v2, %v30_v1  ;;  %v33_v5 = vld [vmem:[%s408_s1 + $0x18] sm:$0xff]  ;;  %241 = vmatprep.subr.bf16.mxu1 %v267_v0  ;;  %257 = vmatprep.mubr.msk.bf16.mxu1 %vm268_vm0, %v267_v0  ;;  %v91_v6 = vld [vmem:[%s409_s3] sm:$0xff]  ;;  %v92_v7 = vld [vmem:[%s409_s3 + $0x8] sm:$0xff] }
   0x3   :  { %v93_v8 = vld [vmem:[%s409_s3 + $0x10] sm:$0xff]  ;;  %v35_v9 = vpack.c.bf16 %v33_v5, %v32_v3  ;;  %v333_v10 = vld [vmem:[%s410_s0] sm:$0xff]  ;;  %v338_v11 = vld [vmem:[%s410_s0 + $0x8] sm:$0xff]  ;;  %v107_v12 = vpack.c.bf16 %v92_v7, %v91_v6 }
   0x4   :  { %234 = vmatpush3.bf16.msra.mxu0 %v34_v4  ;;  %v94_v13 = vld [vmem:[%s409_s3 + $0x18] sm:$0xff]  ;;  %v29_v15 = vpack.c.bf16 %v338_v11, %v333_v10  ;;  %v95_v16 = vld [vmem:[%s409_s3 + $0x20] sm:$0xff]  ;;  %v96_v17 = vld [vmem:[%s409_s3 + $0x28] sm:$0xff] }
   0x5   :  { %235 = vmatprep.subr.bf16.mxu0 %v267_v0  ;;  %242 = vmatpush3.bf16.msra.mxu1 %v107_v12  ;;  %v108_v14 = vpack.c.bf16 %v94_v13, %v93_v8  ;;  %v109_v18 = vpack.c.bf16 %v96_v17, %v95_v16  ;;  %v97_v19 = vld [vmem:[%s409_s3 + $0x30] sm:$0xff]  ;;  %v98_v20 = vld [vmem:[%s409_s3 + $0x38] sm:$0xff]  ;;  %v99_v22 = vld [vmem:[%s409_s3 + $0x40] sm:$0xff] }
   0x6   :  { %243 = vmatprep.subr.bf16.mxu1 %v267_v0  ;;  %v110_v21 = vpack.c.bf16 %v98_v20, %v97_v19  ;;  %v100_v23 = vld [vmem:[%s409_s3 + $0x48] sm:$0xff]  ;;  %v101_v25 = vld [vmem:[%s409_s3 + $0x50] sm:$0xff]  ;;  %v102_v26 = vld [vmem:[%s409_s3 + $0x58] sm:$0xff] }
   0x7   :  { %v111_v24 = vpack.c.bf16 %v100_v23, %v99_v22  ;;  %v112_v27 = vpack.c.bf16 %v102_v26, %v101_v25  ;;  %v103_v28 = vld [vmem:[%s409_s3 + $0x60] sm:$0xff]  ;;  %v104_v29 = vld [vmem:[%s409_s3 + $0x68] sm:$0xff]  ;;  %v105_v31 = vld [vmem:[%s409_s3 + $0x70] sm:$0xff] }
   0x8   :  { %236 = vmatpush3.bf16.msra.mxu0 %v35_v9  ;;  %v113_v30 = vpack.c.bf16 %v104_v29, %v103_v28  ;;  %v106_v32 = vld [vmem:[%s409_s3 + $0x78] sm:$0xff]  ;;  %v216_v34 = vld [vmem:[%s411_s2] ss:$0 sm:$0xff] }
   0x9   :  { %244 = vmatpush3.bf16.msra.mxu1 %v108_v14  ;;  %v114_v33 = vpack.c.bf16 %v106_v32, %v105_v31  ;;  %v218_v44 = vld [vmem:[%s412_s4] ss:$0 sm:$0xff] }
   0xa   :  { %245 = vmatprep.subr.bf16.mxu1 %v267_v0  ;;  %v219_v8 = vld [vmem:[%s413_s5] ss:$0 sm:$0xff] }
   0xb   :  { %238 = vmatmul.mubr.msk.bf16.vlgmr.msra.gmra.mrb[0].mxu0 %vm43_vm1, %v29_v15 }
   0xd   :  { %246 = vmatpush3.bf16.msra.mxu1 %v109_v18 }
   0xe   :  { %247 = vmatprep.subr.bf16.mxu1 %v267_v0 }
  0x11   :  { %248 = vmatpush3.bf16.msra.mxu1 %v110_v21 }
  0x12   :  { %249 = vmatprep.subr.bf16.mxu1 %v267_v0 }
  0x15   :  { %250 = vmatpush3.bf16.msra.mxu1 %v111_v24 }
  0x16   :  { %251 = vmatprep.subr.bf16.mxu1 %v267_v0 }
  0x19   :  { %252 = vmatpush3.bf16.msra.mxu1 %v112_v27 }
  0x1a   :  { %253 = vmatprep.subr.bf16.mxu1 %v267_v0 }
  0x1d   :  { %254 = vmatpush3.bf16.msra.mxu1 %v113_v30 }
  0x1e   :  { %255 = vmatprep.subr.bf16.mxu1 %v267_v0 }
  0x21   :  { %256 = vmatpush3.bf16.msra.mxu1 %v114_v33 }
  0xde   :  { %v81_v35 = vpop.f32.mrb[0].mxu0 }
  0xdf   :  { %v82_v36 = vadd.f32 %v216_v34, %v81_v35  ;;  %v239_v37 = vpop.f32.mrb[1].mxu0 }
  0xe0   :  { %v84_v38 = vpop.f32.mrb[2].mxu0 }
  0xe1   :  { %v85_v39 = vadd.f32 %v216_v34, %v84_v38  ;;  %v240_v40 = vpop.f32.mrb[3].mxu0  ;;  %v88_v41 = vmax.f32 %v82_v36, 0.0 }
  0xe3   :  { %v89_v42 = vmax.f32 %v85_v39, 0.0 }
  0xe5   :  { %v90_v43 = vpack.c.bf16 %v89_v42, %v88_v41 }
  0xe7   :  { %258 = vmatmul.mubr.bf16.vlgmr.msra.gmra.mrb[0].mxu1 %v90_v43 }
 0x1ba   :  { %v156_v45 = vpop.f32.mrb[0].mxu1 }
 0x1bb   :  { %v157_v46 = vadd.f32 %v218_v44, %v156_v45  ;;  %v259_v47 = vpop.f32.mrb[1].mxu1 }
 0x1bc   :  { %v159_v48 = vpop.f32.mrb[2].mxu1 }
 0x1bd   :  { %v160_v49 = vadd.f32 %v218_v44, %v159_v48  ;;  %v260_v50 = vpop.f32.mrb[3].mxu1  ;;  %v163_v51 = vadd.f32 %v157_v46, %v333_v10  ;;  %v220_v10 = vld [vmem:[%s414_s6] ss:$0 sm:$0xff] }
 0x1bf   :  { %v165_v52 = vsel %vm43_vm1, %v163_v51, 0.0  ;;  %v164_v53 = vadd.f32 %v160_v49, %v338_v11 }
 0x1c0   :  { %166 = vadd.xlane.f32.xlu0 %v165_v52 }
 0x1c1   :  { %v168_v54 = vsel %vm43_vm1, %v164_v53, 0.0 }
 0x1c4   :  { %169 = vadd.xlane.f32.xlu0 %v168_v54 }
 0x24d   :  { %v167_v55 = vpop.xlane.xlu0 %166 }
 0x24e   :  { %v172_v56 = vmul.f32 0.03125, %v167_v55 }
 0x250   :  { %v174_v57 = vsub.f32 %v163_v51, %v172_v56 }
 0x251   :  { %v170_v58 = vpop.xlane.xlu0 %169 }
 0x252   :  { %v173_v59 = vmul.f32 0.03125, %v170_v58  ;;  %v176_v60 = vmul.f32 %v174_v57, %v174_v57 }
 0x254   :  { %v175_v61 = vsub.f32 %v164_v53, %v173_v59  ;;  %v178_v62 = vsel %vm43_vm1, %v176_v60, 0.0 }
 0x255   :  { %179 = vadd.xlane.f32.xlu1 %v178_v62 }
 0x256   :  { %v177_v63 = vmul.f32 %v175_v61, %v175_v61 }
 0x258   :  { %v181_v0 = vsel %vm43_vm1, %v177_v63, 0.0 }
 0x259   :  { %182 = vadd.xlane.f32.xlu1 %v181_v0 }
 0x2e2   :  { %v180_v1 = vpop.xlane.xlu1 %179 }
 0x2e3   :  { %v184_v2 = vmul.f32 0.03125, %v180_v1 }
 0x2e5   :  { %v186_v3 = vadd.f32 1e-05, %v184_v2 }
 0x2e6   :  { %v183_v4 = vpop.xlane.xlu1 %182 }
 0x2e7   :  { %263 = vrsqrt.f32 %v186_v3  ;;  %v185_v5 = vmul.f32 0.03125, %v183_v4 }
 0x2e9   :  { %v187_v6 = vadd.f32 1e-05, %v185_v5 }
 0x2eb   :  { %265 = vrsqrt.f32 %v187_v6 }
 0x2f1   :  { %v264_v7 = vpop.eup %263 }
 0x2f2   :  { %v190_v9 = vmul.f32 %v264_v7, %v174_v57 }
 0x2f4   :  { %v199_v11 = vmul.f32 %v219_v8, %v190_v9 }
 0x2f5   :  { %v266_v12 = vpop.eup %265 }
 0x2f6   :  { %v208_v13 = vadd.f32 %v220_v10, %v199_v11  ;;  %v191_v14 = vmul.f32 %v266_v12, %v175_v61 }
 0x2f8   :  { %210 = vst.msk [vmem:[%s415_s7] sm:$0xff] %vm43_vm1, %v208_v13  ;;  %v200_v15 = vmul.f32 %v219_v8, %v191_v14 }
 0x2fa   :  { %v209_v16 = vadd.f32 %v220_v10, %v200_v15 }
 0x2fc   :  { %211 = vst.msk [vmem:[%s415_s7 + $0x8] sm:$0xff] %vm43_vm1, %v209_v16 }

// kernel: transformer_forward.27
= control target key start
LH: loop header
LB: loop body
LE: loop exit
PB: predicated region body
PF: predicated region fallthrough
CT: control target
= control target key end

     0   :  { %vm24_vm0 = vcmask 64512   ;;  %v1244_v0 = vmov 0.0   ;;  %vm1245_vm1 = vmmov 0   ;;  %s1246_s22 = smov 120   ;;  %vm162_vm2 = vcmask 1043456   ;;  %s1248_s29 = smov 104   ;;  %s1485_s1 = inlined_call_operand.vmem [shape: bf16[2,8,32], index: 1, kind: input, shape index: {}]   ;;  %s1486_s0 = inlined_call_operand.vmem [shape: bf16[2,8,32], index: 0, kind: input, shape index: {}]   ;;  %s1487_s3 = inlined_call_operand.vmem [shape: f32[2,1,8], index: 3, kind: input, shape index: {}]   ;;  %s1488_s2 = inlined_call_operand.vmem [shape: bf16[2,8,32], index: 2, kind: input, shape index: {}]   ;;  %s1489_s4 = inlined_call_operand.vmem [shape: bf16[2,8,32], index: 4, kind: output, shape index: {}]  }
   0x1   :  { %1087 = vmatprep.subr.bf16.mxu0 %v1244_v0  ;;  %v20_v1 = vld [vmem:[%s1485_s1] sm:$0xf]  ;;  %1093 = vmatprep.subr.bf16.mxu1 %v1244_v0  ;;  %v21_v2 = vld [vmem:[%s1485_s1 + $0x4] sm:$0xf]  ;;  %s1249_s30 = smov 8   ;;  %s1250_s5 = smov 16  }
   0x2   :  { %v29_v3 = vsel %vm24_vm0, %v20_v1, 0  ;;  %v75_v4 = vsel %vm24_vm0, %v21_v2, 0  ;;  %1089 = vmatprep.mubr.msk.bf16.mxu0 %vm1245_vm1, %v1244_v0  ;;  %1095 = vmatprep.mubr.msk.bf16.mxu1 %vm1245_vm1, %v1244_v0  ;;  %v18_v5 = vld [vmem:[%s1486_s0] sm:$0xf]  ;;  %v19_v6 = vld [vmem:[%s1486_s0 + $0x4] sm:$0xf]  ;;  %v1305_v7 = vcombine.low %v21_v2, %v21_v2  ;;  %v1323_v24 = vcombine.low %v20_v1, %v20_v1 }
   0x3   :  { %1088 = vmatpush3.bf16.xpose.msra.mxu0 %v29_v3  ;;  %1094 = vmatpush3.bf16.xpose.msra.mxu1 %v75_v4  ;;  %v1312_v10 = vld [vmem:[%s1487_s3] ss:$0 sm:$0xff]  ;;  %v1317_v11 = vld [vmem:[%s1487_s3 + $0x1] ss:$0 sm:$0xff]  ;;  %v1329_v35 = vcombine.low %v18_v5, %v18_v5  ;;  %v1340_v38 = vcombine.low %v19_v6, %v19_v6  ;;  %v23_v39 = vld [vmem:[%s1488_s2 + $0x4] sm:$0xf] }
   0x4   :  { %1099 = vmatprep.subr.bf16.mxu0 %v1244_v0  ;;  %1105 = vmatprep.subr.bf16.mxu1 %v1244_v0  ;;  %v1334_v36 = vld [vmem:[%s1488_s2] sm:$0xf]  ;;  %v210_v40 = vsel %vm162_vm2, %v23_v39, 0  ;;  %s1247_s2 = smov 112   ;;  %s1251_s6 = smov 24   ;;  %vm1010_vm3 = vcmask 130048  }
   0x5   :  { %316 = vrot.lane.b32.xlu1 %v1305_v7, %s1246_s22  ;;  %v164_v37 = vsel %vm162_vm2, %v1334_v36, 0  ;;  %vm1013_vm4 = vcmask 195584   ;;  %vm1018_vm5 = vcmask 257024  }
   0xa   :  { %1090 = vmatmul.mubr.msk.bf16.vlgmr.msra.gmra.mrb[0].mxu0 %vm24_vm0, %v18_v5  ;;  %1096 = vmatmul.mubr.msk.bf16.vlgmr.msra.gmra.mrb[0].mxu1 %vm24_vm0, %v19_v6 }
   0xb   :  { %1101 = vmatprep.mubr.msk.bf16.mxu0 %vm1245_vm1, %v1244_v0  ;;  %1107 = vmatprep.mubr.msk.bf16.mxu1 %vm1245_vm1, %v1244_v0 }
   0xc   :  { %1100 = vmatpush3.bf16.msra.mxu0 %v164_v37  ;;  %1106 = vmatpush3.bf16.msra.mxu1 %v210_v40 }
   0xd   :  { %1111 = vmatprep.subr.bf16.mxu0 %v1244_v0  ;;  %1117 = vmatprep.subr.bf16.mxu1 %v1244_v0 }
  0x77   :  { %v317_v41 = vpop.permute.xlu1 %316 }
  0x78   :  { %v322_v53 = vsel %vm24_vm0, %v317_v41, 0 }
  0xdd   :  { %v65_v8 = vpop.f32.mrb[0].mxu0  ;;  %v111_v9 = vpop.f32.mrb[0].mxu1 }
  0xde   :  { %v117_v12 = vmul.f32 0.35355338, %v65_v8  ;;  %v1091_v13 = vpop.f32.mrb[1].mxu0  ;;  %v118_v14 = vmul.f32 0.35355338, %v111_v9  ;;  %v1097_v15 = vpop.f32.mrb[1].mxu1 }
  0xdf   :  { %v68_v16 = vpop.f32.mrb[2].mxu0  ;;  %v114_v17 = vpop.f32.mrb[2].mxu1 }
  0xe0   :  { %v1092_v18 = vpop.f32.mrb[3].mxu0  ;;  %v1098_v19 = vpop.f32.mrb[3].mxu1  ;;  %v133_v20 = vadd.f32 %v1312_v10, %v117_v12  ;;  %v134_v21 = vadd.f32 %v1317_v11, %v118_v14  ;;  %v1374_v17 = vcombine.low %v23_v39, %v23_v39 }
  0xe2   :  { %v135_v22 = vsel %vm24_vm0, %v133_v20, -inf  ;;  %v138_v23 = vsel %vm24_vm0, %v134_v21, -inf }
  0xe3   :  { %136 = vmax.xlane.f32.xlu0 %v135_v22 }
  0xe7   :  { %139 = vmax.xlane.f32.xlu0 %v138_v23 }
  0xfd   :  { %260 = vrot.lane.b32.xlu0 %v1323_v24, %s1246_s22 }
 0x170   :  { %v137_v25 = vpop.xlane.xlu0 %136 }
 0x171   :  { %v141_v26 = vsub.f32 %v133_v20, %v137_v25 }
 0x173   :  { %v143_v27 = vmul.f32 1.442695, %v141_v26 }
 0x174   :  { %v140_v28 = vpop.xlane.xlu0 %139 }
 0x175   :  { %1212 = vpow2.f32 %v143_v27  ;;  %v142_v29 = vsub.f32 %v134_v21, %v140_v28 }
 0x177   :  { %v145_v30 = vmul.f32 1.442695, %v142_v29  ;;  %v1388_v29 = vcombine.low %v1334_v36, %v1334_v36 }
 0x178   :  { %v261_v45 = vpop.permute.xlu0 %260 }
 0x179   :  { %1214 = vpow2.f32 %v145_v30  ;;  %v266_v47 = vsel %vm24_vm0, %v261_v45, 0 }
 0x17f   :  { %v1213_v31 = vpop.eup %1212 }
 0x180   :  { %v147_v32 = vsel %vm24_vm0, %v1213_v31, 0.0 }
 0x181   :  { %148 = vadd.xlane.f32.xlu1 %v147_v32 }
 0x183   :  { %v1215_v33 = vpop.eup %1214 }
 0x184   :  { %v150_v34 = vsel %vm24_vm0, %v1215_v33, 0.0 }
 0x185   :  { %151 = vadd.xlane.f32.xlu1 %v150_v34 }
 0x196   :  { %255 = vrot.lane.b32.xlu1 %v1329_v35, %s1246_s22 }
 0x19a   :  { %311 = vrot.lane.b32.xlu1 %v1340_v38, %s1246_s22 }
 0x20e   :  { %v149_v42 = vpop.xlane.xlu1 %148 }
 0x20f   :  { %1216 = vrcp.f32 %v149_v42 }
 0x212   :  { %v152_v43 = vpop.xlane.xlu1 %151 }
 0x213   :  { %1218 = vrcp.f32 %v152_v43 }
 0x216   :  { %v256_v52 = vpop.permute.xlu1 %255 }
 0x219   :  { %v1217_v44 = vpop.eup %1216 }
 0x21a   :  { %v154_v46 = vmul.f32 %v1217_v44, %v1213_v31  ;;  %v312_v54 = vpop.permute.xlu1 %311 }
 0x21c   :  { %v157_v48 = vpack.c.bf16 %v154_v46, %v154_v46 }
 0x21d   :  { %v1219_v49 = vpop.eup %1218 }
 0x21e   :  { %v156_v50 = vmul.f32 %v1219_v49, %v1215_v33  ;;  %1102 = vmatmul.mubr.msk.bf16.vlgmr.msra.gmra.mrb[4].mxu0 %vm24_vm0, %v157_v48 }
 0x21f   :  { %1112 = vmatpush3.bf16.xpose.msra.mxu0 %v266_v47  ;;  %1113 = vmatprep.mubr.msk.bf16.mxu0 %vm1245_vm1, %v1244_v0 }
 0x220   :  { %v158_v51 = vpack.c.bf16 %v156_v50, %v156_v50  ;;  %1123 = vmatprep.subr.bf16.mxu0 %v1244_v0 }
 0x222   :  { %1108 = vmatmul.mubr.msk.bf16.vlgmr.msra.gmra.mrb[4].mxu1 %vm24_vm0, %v158_v51 }
 0x223   :  { %1118 = vmatpush3.bf16.xpose.msra.mxu1 %v322_v53  ;;  %1119 = vmatprep.mubr.msk.bf16.mxu1 %vm1245_vm1, %v1244_v0 }
 0x224   :  { %1129 = vmatprep.subr.bf16.mxu1 %v1244_v0 }
 0x226   :  { %1114 = vmatmul.mubr.msk.bf16.vlgmr.msra.gmra.mrb[8].mxu0 %vm24_vm0, %v256_v52 }
 0x227   :  { %1125 = vmatprep.mubr.msk.bf16.mxu0 %vm1245_vm1, %v1244_v0 }
 0x22a   :  { %1120 = vmatmul.mubr.msk.bf16.vlgmr.msra.gmra.mrb[8].mxu1 %vm24_vm0, %v312_v54 }
 0x22b   :  { %1131 = vmatprep.mubr.msk.bf16.mxu1 %vm1245_vm1, %v1244_v0 }
 0x2f1   :  { %v1366_v55 = vpop.f32.mrb[4].mxu0 }
 0x2f2   :  { %v1103_v56 = vpop.f32.mrb[5].mxu0 }
 0x2f3   :  { %v203_v57 = vpop.f32.mrb[6].mxu0 }
 0x2f4   :  { %v1104_v58 = vpop.f32.mrb[7].mxu0 }
 0x2f5   :  { %v1368_v59 = vpop.f32.mrb[4].mxu1 }
 0x2f6   :  { %v1109_v60 = vpop.f32.mrb[5].mxu1 }
 0x2f7   :  { %v249_v61 = vpop.f32.mrb[6].mxu1 }
 0x2f8   :  { %v1110_v62 = vpop.f32.mrb[7].mxu1 }
 0x2f9   :  { %v302_v63 = vpop.f32.mrb[8].mxu0 }
 0x2fa   :  { %v364_v1 = vmul.f32 0.35355338, %v302_v63  ;;  %v1115_v2 = vpop.f32.mrb[9].mxu0 }
 0x2fb   :  { %v305_v3 = vpop.f32.mrb[10].mxu0 }
 0x2fc   :  { %v1116_v4 = vpop.f32.mrb[11].mxu0  ;;  %v380_v5 = vadd.f32 %v1312_v10, %v364_v1 }
 0x2fd   :  { %v358_v6 = vpop.f32.mrb[8].mxu1 }
 0x2fe   :  { %v365_v8 = vmul.f32 0.35355338, %v358_v6  ;;  %v1121_v9 = vpop.f32.mrb[9].mxu1  ;;  %v382_v12 = vsel %vm24_vm0, %v380_v5, -inf }
 0x2ff   :  { %v361_v13 = vpop.f32.mrb[10].mxu1  ;;  %383 = vmax.xlane.f32.xlu0 %v382_v12 }
 0x300   :  { %v1122_v14 = vpop.f32.mrb[11].mxu1  ;;  %v381_v15 = vadd.f32 %v1317_v11, %v365_v8 }
 0x302   :  { %v385_v16 = vsel %vm24_vm0, %v381_v15, -inf }
 0x303   :  { %386 = vmax.xlane.f32.xlu1 %v385_v16 }
 0x314   :  { %460 = vrot.lane.b32.xlu1 %v1374_v17, %s1246_s22 }
 0x318   :  { %510 = vrot.lane.b32.xlu1 %v1323_v24, %s1247_s2 }
 0x31c   :  { %560 = vrot.lane.b32.xlu1 %v1305_v7, %s1247_s2 }
 0x320   :  { %558 = vrot.lane.b32.xlu1 %v1340_v38, %s1247_s2 }
 0x38c   :  { %v384_v18 = vpop.xlane.xlu0 %383 }
 0x38d   :  { %v388_v19 = vsub.f32 %v380_v5, %v384_v18 }
 0x38f   :  { %v390_v20 = vmul.f32 1.442695, %v388_v19 }
 0x390   :  { %v387_v21 = vpop.xlane.xlu1 %386 }
 0x391   :  { %1220 = vpow2.f32 %v390_v20  ;;  %v389_v22 = vsub.f32 %v381_v15, %v387_v21 }
 0x393   :  { %v392_v23 = vmul.f32 1.442695, %v389_v22 }
 0x394   :  { %v461_v30 = vpop.permute.xlu1 %460 }
 0x395   :  { %1222 = vpow2.f32 %v392_v23  ;;  %v466_v31 = vsel %vm162_vm2, %v461_v30, 0 }
 0x396   :  { %1130 = vmatpush3.bf16.msra.mxu1 %v466_v31 }
 0x397   :  { %1141 = vmatprep.subr.bf16.mxu1 %v1244_v0 }
 0x398   :  { %v511_v37 = vpop.permute.xlu1 %510 }
 0x399   :  { %v516_v45 = vsel %vm24_vm0, %v511_v37, 0 }
 0x39b   :  { %v1221_v25 = vpop.eup %1220 }
 0x39c   :  { %v394_v26 = vsel %vm24_vm0, %v1221_v25, 0.0  ;;  %v561_v43 = vpop.permute.xlu1 %560 }
 0x39d   :  { %395 = vadd.xlane.f32.xlu0 %v394_v26  ;;  %v566_v46 = vsel %vm24_vm0, %v561_v43, 0 }
 0x39f   :  { %v1223_v27 = vpop.eup %1222 }
 0x3a0   :  { %v397_v28 = vsel %vm24_vm0, %v1223_v27, 0.0  ;;  %v559_v49 = vpop.permute.xlu1 %558 }
 0x3a1   :  { %398 = vadd.xlane.f32.xlu0 %v397_v28 }
 0x3b7   :  { %409 = vrot.lane.b32.xlu0 %v1388_v29, %s1246_s22 }
 0x3bb   :  { %508 = vrot.lane.b32.xlu0 %v1329_v35, %s1247_s2 }
 0x42a   :  { %v396_v32 = vpop.xlane.xlu0 %395 }
 0x42b   :  { %1224 = vrcp.f32 %v396_v32 }
 0x42e   :  { %v399_v33 = vpop.xlane.xlu0 %398 }
 0x42f   :  { %1226 = vrcp.f32 %v399_v33 }
 0x432   :  { %v410_v34 = vpop.permute.xlu0 %409 }
 0x433   :  { %v415_v36 = vsel %vm162_vm2, %v410_v34, 0 }
 0x434   :  { %1124 = vmatpush3.bf16.msra.mxu0 %v415_v36 }
 0x435   :  { %v1225_v39 = vpop.eup %1224  ;;  %1135 = vmatprep.subr.bf16.mxu0 %v1244_v0 }
 0x436   :  { %v401_v40 = vmul.f32 %v1225_v39, %v1221_v25  ;;  %v509_v48 = vpop.permute.xlu0 %508 }
 0x438   :  { %v404_v41 = vpack.c.bf16 %v401_v40, %v401_v40 }
 0x439   :  { %v1227_v42 = vpop.eup %1226 }
 0x43a   :  { %v403_v44 = vmul.f32 %v1227_v42, %v1223_v27  ;;  %1126 = vmatmul.mubr.msk.bf16.vlgmr.msra.gmra.mrb[12].mxu0 %vm24_vm0, %v404_v41 }
 0x43b   :  { %1137 = vmatprep.mubr.msk.bf16.mxu0 %vm1245_vm1, %v1244_v0 }
 0x43c   :  { %v405_v47 = vpack.c.bf16 %v403_v44, %v403_v44 }
 0x43d   :  { %1136 = vmatpush3.bf16.xpose.msra.mxu0 %v516_v45 }
 0x43e   :  { %1132 = vmatmul.mubr.msk.bf16.vlgmr.msra.gmra.mrb[12].mxu1 %vm24_vm0, %v405_v47  ;;  %1147 = vmatprep.subr.bf16.mxu0 %v1244_v0 }
 0x43f   :  { %1142 = vmatpush3.bf16.xpose.msra.mxu1 %v566_v46  ;;  %1143 = vmatprep.mubr.msk.bf16.mxu1 %vm1245_vm1, %v1244_v0 }
 0x440   :  { %1153 = vmatprep.subr.bf16.mxu1 %v1244_v0 }
 0x444   :  { %1138 = vmatmul.mubr.msk.bf16.vlgmr.msra.gmra.mrb[16].mxu0 %vm24_vm0, %v509_v48 }
 0x445   :  { %1149 = vmatprep.mubr.msk.bf16.mxu0 %vm1245_vm1, %v1244_v0 }
 0x446   :  { %1144 = vmatmul.mubr.msk.bf16.vlgmr.msra.gmra.mrb[16].mxu1 %vm24_vm0, %v559_v49 }
 0x447   :  { %1155 = vmatprep.mubr.msk.bf16.mxu1 %vm1245_vm1, %v1244_v0 }
 0x50d   :  { %v1414_v50 = vpop.f32.mrb[12].mxu0 }
 0x50e   :  { %v1127_v51 = vpop.f32.mrb[13].mxu0 }
 0x50f   :  { %v454_v52 = vpop.f32.mrb[14].mxu0 }
 0x510   :  { %v1128_v53 = vpop.f32.mrb[15].mxu0 }
 0x511   :  { %v1416_v54 = vpop.f32.mrb[12].mxu1 }
 0x512   :  { %v1191_v56 = vpack.i.bf16 %v1416_v54, %v1414_v50  ;;  %v1133_v57 = vpop.f32.mrb[13].mxu1 }
 0x513   :  { %v505_v58 = vpop.f32.mrb[14].mxu1 }
 0x514   :  { %v1134_v60 = vpop.f32.mrb[15].mxu1 }
 0x517   :  { %v552_v61 = vpop.f32.mrb[16].mxu0 }
 0x518   :  { %v608_v62 = vmul.f32 0.35355338, %v552_v61  ;;  %v1139_v63 = vpop.f32.mrb[17].mxu0 }
 0x519   :  { %v555_v1 = vpop.f32.mrb[18].mxu0  ;;  %v602_v2 = vpop.f32.mrb[16].mxu1 }
 0x51a   :  { %v609_v3 = vmul.f32 0.35355338, %v602_v2  ;;  %v1140_v4 = vpop.f32.mrb[19].mxu0  ;;  %v1145_v5 = vpop.f32.mrb[17].mxu1  ;;  %v624_v6 = vadd.f32 %v1312_v10, %v608_v62 }
 0x51b   :  { %v605_v8 = vpop.f32.mrb[18].mxu1 }
 0x51c   :  { %v1146_v9 = vpop.f32.mrb[19].mxu1  ;;  %v626_v12 = vsel %vm24_vm0, %v624_v6, -inf  ;;  %v625_v13 = vadd.f32 %v1317_v11, %v609_v3 }
 0x51d   :  { %627 = vmax.xlane.f32.xlu0 %v626_v12 }
 0x51e   :  { %v629_v14 = vsel %vm24_vm0, %v625_v13, -inf }
 0x51f   :  { %630 = vmax.xlane.f32.xlu1 %v629_v14 }
 0x530   :  { %698 = vrot.lane.b32.xlu1 %v1374_v17, %s1247_s2 }
 0x534   :  { %748 = vrot.lane.b32.xlu1 %v1323_v24, %s1248_s29 }
 0x538   :  { %798 = vrot.lane.b32.xlu1 %v1305_v7, %s1248_s29 }
 0x53c   :  { %796 = vrot.lane.b32.xlu1 %v1340_v38, %s1248_s29 }
 0x5aa   :  { %v628_v15 = vpop.xlane.xlu0 %627 }
 0x5ab   :  { %v632_v16 = vsub.f32 %v624_v6, %v628_v15 }
 0x5ac   :  { %v631_v18 = vpop.xlane.xlu1 %630 }
 0x5ad   :  { %v634_v19 = vmul.f32 1.442695, %v632_v16  ;;  %v633_v20 = vsub.f32 %v625_v13, %v631_v18 }
 0x5af   :  { %1228 = vpow2.f32 %v634_v19  ;;  %v636_v21 = vmul.f32 1.442695, %v633_v20 }
 0x5b0   :  { %v699_v7 = vpop.permute.xlu1 %698 }
 0x5b1   :  { %1230 = vpow2.f32 %v636_v21  ;;  %v704_v26 = vsel %vm162_vm2, %v699_v7, 0 }
 0x5b2   :  { %1154 = vmatpush3.bf16.msra.mxu1 %v704_v26 }
 0x5b3   :  { %1165 = vmatprep.subr.bf16.mxu1 %v1244_v0 }
 0x5b4   :  { %v749_v31 = vpop.permute.xlu1 %748 }
 0x5b5   :  { %v754_v40 = vsel %vm24_vm0, %v749_v31, 0 }
 0x5b8   :  { %v799_v37 = vpop.permute.xlu1 %798 }
 0x5b9   :  { %v1229_v22 = vpop.eup %1228 }
 0x5ba   :  { %v638_v23 = vsel %vm24_vm0, %v1229_v22, 0.0 }
 0x5bb   :  { %v1231_v25 = vpop.eup %1230  ;;  %639 = vadd.xlane.f32.xlu0 %v638_v23 }
 0x5bc   :  { %v641_v24 = vsel %vm24_vm0, %v1231_v25, 0.0  ;;  %v797_v43 = vpop.permute.xlu1 %796 }
 0x5bf   :  { %642 = vadd.xlane.f32.xlu0 %v641_v24 }
 0x5d5   :  { %650 = vrot.lane.b32.xlu0 %v1388_v29, %s1247_s2 }
 0x5d9   :  { %746 = vrot.lane.b32.xlu0 %v1329_v35, %s1248_s29  ;;  %v804_v35 = vsel %vm24_vm0, %v799_v37, 0 }
 0x648   :  { %v640_v38 = vpop.xlane.xlu0 %639 }
 0x649   :  { %1232 = vrcp.f32 %v640_v38 }
 0x64c   :  { %v643_v27 = vpop.xlane.xlu0 %642 }
 0x64d   :  { %1234 = vrcp.f32 %v643_v27 }
 0x650   :  { %v651_v28 = vpop.permute.xlu0 %650 }
 0x651   :  { %v656_v30 = vsel %vm162_vm2, %v651_v28, 0 }
 0x652   :  { %1148 = vmatpush3.bf16.msra.mxu0 %v656_v30 }
 0x653   :  { %v1233_v32 = vpop.eup %1232  ;;  %1159 = vmatprep.subr.bf16.mxu0 %v1244_v0 }
 0x654   :  { %v645_v33 = vmul.f32 %v1233_v32, %v1229_v22  ;;  %v747_v42 = vpop.permute.xlu0 %746 }
 0x656   :  { %v648_v34 = vpack.c.bf16 %v645_v33, %v645_v33 }
 0x657   :  { %v1235_v36 = vpop.eup %1234 }
 0x658   :  { %v647_v39 = vmul.f32 %v1235_v36, %v1231_v25  ;;  %1150 = vmatmul.mubr.msk.bf16.vlgmr.msra.gmra.mrb[20].mxu0 %vm24_vm0, %v648_v34 }
 0x659   :  { %1161 = vmatprep.mubr.msk.bf16.mxu0 %vm1245_vm1, %v1244_v0 }
 0x65a   :  { %v649_v41 = vpack.c.bf16 %v647_v39, %v647_v39 }
 0x65b   :  { %1160 = vmatpush3.bf16.xpose.msra.mxu0 %v754_v40 }
 0x65c   :  { %1156 = vmatmul.mubr.msk.bf16.vlgmr.msra.gmra.mrb[20].mxu1 %vm24_vm0, %v649_v41  ;;  %1171 = vmatprep.subr.bf16.mxu0 %v1244_v0 }
 0x65d   :  { %1166 = vmatpush3.bf16.xpose.msra.mxu1 %v804_v35  ;;  %1167 = vmatprep.mubr.msk.bf16.mxu1 %vm1245_vm1, %v1244_v0 }
 0x65e   :  { %1177 = vmatprep.subr.bf16.mxu1 %v1244_v0 }
 0x662   :  { %1162 = vmatmul.mubr.msk.bf16.vlgmr.msra.gmra.mrb[24].mxu0 %vm24_vm0, %v747_v42 }
 0x663   :  { %1173 = vmatprep.mubr.msk.bf16.mxu0 %vm1245_vm1, %v1244_v0 }
 0x664   :  { %1168 = vmatmul.mubr.msk.bf16.vlgmr.msra.gmra.mrb[24].mxu1 %vm24_vm0, %v797_v43 }
 0x665   :  { %1179 = vmatprep.mubr.msk.bf16.mxu1 %vm1245_vm1, %v1244_v0 }
 0x72b   :  { %v692_v44 = vpop.f32.mrb[20].mxu0 }
 0x72c   :  { %v1151_v45 = vpop.f32.mrb[21].mxu0 }
 0x72d   :  { %v695_v46 = vpop.f32.mrb[22].mxu0 }
 0x72e   :  { %v1152_v47 = vpop.f32.mrb[23].mxu0 }
 0x72f   :  { %v740_v48 = vpop.f32.mrb[20].mxu1 }
 0x730   :  { %v1196_v49 = vpack.i.bf16 %v740_v48, %v692_v44  ;;  %v1157_v51 = vpop.f32.mrb[21].mxu1 }
 0x731   :  { %v743_v52 = vpop.f32.mrb[22].mxu1 }
 0x732   :  { %v1158_v53 = vpop.f32.mrb[23].mxu1 }
 0x735   :  { %v790_v57 = vpop.f32.mrb[24].mxu0 }
 0x736   :  { %v846_v58 = vmul.f32 0.35355338, %v790_v57  ;;  %v1163_v60 = vpop.f32.mrb[25].mxu0 }
 0x737   :  { %v793_v61 = vpop.f32.mrb[26].mxu0  ;;  %v840_v62 = vpop.f32.mrb[24].mxu1 }
 0x738   :  { %v847_v63 = vmul.f32 0.35355338, %v840_v62  ;;  %v1164_v1 = vpop.f32.mrb[27].mxu0  ;;  %v1169_v2 = vpop.f32.mrb[25].mxu1  ;;  %v862_v3 = vadd.f32 %v1312_v10, %v846_v58 }
 0x739   :  { %v843_v0 = vpop.f32.mrb[26].mxu1 }
 0x73a   :  { %v1170_v4 = vpop.f32.mrb[27].mxu1  ;;  %v864_v5 = vsel %vm24_vm0, %v862_v3, -inf  ;;  %v863_v6 = vadd.f32 %v1317_v11, %v847_v63 }
 0x73b   :  { %865 = vmax.xlane.f32.xlu0 %v864_v5 }
 0x73c   :  { %v867_v8 = vsel %vm24_vm0, %v863_v6, -inf }
 0x73d   :  { %868 = vmax.xlane.f32.xlu1 %v867_v8 }
 0x74e   :  { %936 = vrot.lane.b32.xlu1 %v1374_v17, %s1248_s29 }
 0x752   :  { %1192 = vrot.lane.b32.xlu1 %v1191_v56, %s1249_s30 }
 0x756   :  { %1197 = vrot.lane.b32.xlu1 %v1196_v49, %s1250_s5 }
 0x7c8   :  { %v866_v10 = vpop.xlane.xlu0 %865 }
 0x7c9   :  { %v870_v9 = vsub.f32 %v862_v3, %v866_v10 }
 0x7ca   :  { %v869_v12 = vpop.xlane.xlu1 %868 }
 0x7cb   :  { %v872_v13 = vmul.f32 1.442695, %v870_v9  ;;  %v871_v14 = vsub.f32 %v863_v6, %v869_v12 }
 0x7cd   :  { %1236 = vpow2.f32 %v872_v13  ;;  %v874_v11 = vmul.f32 1.442695, %v871_v14 }
 0x7ce   :  { %v937_v15 = vpop.permute.xlu1 %936 }
 0x7cf   :  { %1238 = vpow2.f32 %v874_v11  ;;  %v942_v16 = vsel %vm162_vm2, %v937_v15, 0 }
 0x7d0   :  { %1178 = vmatpush3.bf16.msra.mxu1 %v942_v16 }
 0x7d2   :  { %v1193_v36 = vpop.permute.xlu1 %1192 }
 0x7d3   :  { %v1195_v39 = vunpack.i.h.bf16 %v1193_v36  ;;  %v1194_v40 = vunpack.i.l.bf16 %v1193_v36 }
 0x7d5   :  { %v1009_v43 = vsel %vm24_vm0, %v1368_v59, %v1195_v39  ;;  %v1008_v44 = vsel %vm24_vm0, %v1366_v55, %v1194_v40 }
 0x7d6   :  { %v1198_v37 = vpop.permute.xlu1 %1197 }
 0x7d7   :  { %v1237_v17 = vpop.eup %1236  ;;  %v1200_v35 = vunpack.i.h.bf16 %v1198_v37  ;;  %v1199_v41 = vunpack.i.l.bf16 %v1198_v37 }
 0x7d8   :  { %v876_v18 = vsel %vm24_vm0, %v1237_v17, 0.0 }
 0x7d9   :  { %v1239_v19 = vpop.eup %1238  ;;  %877 = vadd.xlane.f32.xlu0 %v876_v18  ;;  %v1012_v47 = vsel %vm1010_vm3, %v1009_v43, %v1200_v35  ;;  %v1011_v48 = vsel %vm1010_vm3, %v1008_v44, %v1199_v41 }
 0x7da   :  { %v879_v50 = vsel %vm24_vm0, %v1239_v19, 0.0 }
 0x7dd   :  { %880 = vadd.xlane.f32.xlu0 %v879_v50 }
 0x7f3   :  { %888 = vrot.lane.b32.xlu0 %v1388_v29, %s1248_s29 }
 0x866   :  { %v878_v54 = vpop.xlane.xlu0 %877 }
 0x867   :  { %1240 = vrcp.f32 %v878_v54 }
 0x86a   :  { %v881_v56 = vpop.xlane.xlu0 %880 }
 0x86b   :  { %1242 = vrcp.f32 %v881_v56 }
 0x86e   :  { %v889_v20 = vpop.permute.xlu0 %888 }
 0x86f   :  { %v894_v21 = vsel %vm162_vm2, %v889_v20, 0 }
 0x870   :  { %1172 = vmatpush3.bf16.msra.mxu0 %v894_v21 }
 0x871   :  { %v1241_v22 = vpop.eup %1240 }
 0x872   :  { %v883_v23 = vmul.f32 %v1241_v22, %v1237_v17 }
 0x874   :  { %v886_v25 = vpack.c.bf16 %v883_v23, %v883_v23 }
 0x875   :  { %v1243_v24 = vpop.eup %1242 }
 0x876   :  { %v885_v7 = vmul.f32 %v1243_v24, %v1239_v19  ;;  %1174 = vmatmul.mubr.msk.bf16.vlgmr.msra.gmra.mrb[28].mxu0 %vm24_vm0, %v886_v25 }
 0x878   :  { %v887_v26 = vpack.c.bf16 %v885_v7, %v885_v7 }
 0x87a   :  { %1180 = vmatmul.mubr.msk.bf16.vlgmr.msra.gmra.mrb[28].mxu1 %vm24_vm0, %v887_v26 }
 0x949   :  { %v930_v38 = vpop.f32.mrb[28].mxu0 }
 0x94a   :  { %v1175_v29 = vpop.f32.mrb[29].mxu0 }
 0x94b   :  { %v933_v27 = vpop.f32.mrb[30].mxu0 }
 0x94c   :  { %v1176_v28 = vpop.f32.mrb[31].mxu0 }
 0x94d   :  { %v978_v30 = vpop.f32.mrb[28].mxu1 }
 0x94e   :  { %v1201_v31 = vpack.i.bf16 %v978_v30, %v930_v38  ;;  %v1181_v32 = vpop.f32.mrb[29].mxu1 }
 0x94f   :  { %v981_v33 = vpop.f32.mrb[30].mxu1 }
 0x950   :  { %v1182_v34 = vpop.f32.mrb[31].mxu1  ;;  %1202 = vrot.lane.b32.xlu0 %v1201_v31, %s1251_s6 }
 0x9c2   :  { %v1203_v42 = vpop.permute.xlu0 %1202 }
 0x9c3   :  { %v1205_v45 = vunpack.i.h.bf16 %v1203_v42  ;;  %v1204_v46 = vunpack.i.l.bf16 %v1203_v42 }
 0x9c5   :  { %v1015_v49 = vsel %vm1013_vm4, %v1012_v47, %v1205_v45  ;;  %v1014_v51 = vsel %vm1013_vm4, %v1011_v48, %v1204_v46 }
 0x9c6   :  { %v1017_v52 = vpack.c.bf16 %v1015_v49, %v1015_v49  ;;  %v1016_v53 = vpack.c.bf16 %v1014_v51, %v1014_v51 }
 0x9c8   :  { %1020 = vst.msk [vmem:[%s1489_s4 + $0x4] sm:$0xf] %vm1018_vm5, %v1017_v52  ;;  %1019 = vst.msk [vmem:[%s1489_s4] sm:$0xf] %vm1018_vm5, %v1016_v53 }

// kernel: transformer_forward.39
= control target key start
LH: loop header
LB: loop body
LE: loop exit
PB: predicated region body
PF: predicated region fallthrough
CT: control target
= control target key end

     0   :  { %v125_v0 = vmov 0.0   ;;  %vm126_vm0 = vmmov 0   ;;  %vm33_vm1 = vcmask 261120   ;;  %vm86_vm2 = vcmask 257024   ;;  %s186_s1 = inlined_call_operand.vmem [shape: f32[32,64], index: 1, kind: input, shape index: {}]   ;;  %s187_s0 = inlined_call_operand.vmem [shape: f32[16,32], index: 0, kind: input, shape index: {}]   ;;  %s188_s2 = inlined_call_operand.vmem [shape: f32[1,64], index: 2, kind: input, shape index: {}]   ;;  %s189_s3 = inlined_call_operand.vmem [shape: bf16[16,32], index: 3, kind: output, shape index: {0}]   ;;  %s190_s4 = inlined_call_operand.vmem [shape: bf16[16,32], index: 4, kind: output, shape index: {1}]  }
   0x1   :  { %114 = vmatprep.subr.bf16.mxu0 %v125_v0  ;;  %v20_v1 = vld [vmem:[%s186_s1] sm:$0xff]  ;;  %v21_v2 = vld [vmem:[%s186_s1 + $0x8] sm:$0xff]  ;;  %v22_v3 = vld [vmem:[%s186_s1 + $0x10] sm:$0xff]  ;;  %118 = vmatprep.mubr.msk.bf16.mxu0 %vm126_vm0, %v125_v0 }
   0x2   :  { %v24_v4 = vpack.c.bf16 %v21_v2, %v20_v1  ;;  %v23_v5 = vld [vmem:[%s186_s1 + $0x18] sm:$0xff]  ;;  %v17_v7 = vld [vmem:[%s187_s0] sm:$0xff]  ;;  %v18_v8 = vld [vmem:[%s187_s0 + $0x8] sm:$0xff]  ;;  %s127_s0 = smov 96  }
   0x3   :  { %v25_v6 = vpack.c.bf16 %v23_v5, %v22_v3  ;;  %v19_v9 = vpack.c.bf16 %v18_v8, %v17_v7  ;;  %v105_v10 = vld [vmem:[%s188_s2] ss:$0 sm:$0xff] }
   0x4   :  { %115 = vmatpush3.bf16.msra.mxu0 %v24_v4 }
   0x5   :  { %116 = vmatprep.subr.bf16.mxu0 %v125_v0 }
   0x8   :  { %117 = vmatpush3.bf16.msra.mxu0 %v25_v6 }
   0xb   :  { %119 = vmatmul.mubr.msk.bf16.vlgmr.msra.gmra.mrb[0].mxu0 %vm33_vm1, %v19_v9 }
  0xde   :  { %v71_v11 = vpop.f32.mrb[0].mxu0 }
  0xdf   :  { %v72_v12 = vadd.f32 %v105_v10, %v71_v11  ;;  %v120_v13 = vpop.f32.mrb[1].mxu0 }
  0xe0   :  { %v74_v14 = vpop.f32.mrb[2].mxu0 }
  0xe1   :  { %v109_v15 = vpack.c.bf16 %v72_v12, %v72_v12  ;;  %v75_v16 = vadd.f32 %v105_v10, %v74_v14  ;;  %v121_v17 = vpop.f32.mrb[3].mxu0 }
  0xe3   :  { %87 = vst.msk [vmem:[%s189_s3] sm:$0xf] %vm86_vm2, %v109_v15  ;;  %v110_v18 = vpack.c.bf16 %v75_v16, %v75_v16  ;;  %89 = vrot.lane.b32.xlu0 %v109_v15, %s127_s0 }
  0xe5   :  { %88 = vst.msk [vmem:[%s189_s3 + $0x4] sm:$0xf] %vm86_vm2, %v110_v18 }
  0xe7   :  { %91 = vrot.lane.b32.xlu0 %v110_v18, %s127_s0 }
 0x155   :  { %v90_v19 = vpop.permute.xlu0 %89 }
 0x156   :  { %95 = vst.msk [vmem:[%s190_s4] sm:$0xf] %vm86_vm2, %v90_v19 }
 0x159   :  { %v92_v20 = vpop.permute.xlu0 %91 }
 0x15a   :  { %96 = vst.msk [vmem:[%s190_s4 + $0x4] sm:$0xf] %vm86_vm2, %v92_v20 }

// kernel: transformer_forward.34
= control target key start
LH: loop header
LB: loop body
LE: loop exit
PB: predicated region body
PF: predicated region fallthrough
CT: control target
= control target key end

     0   :  { %v360_v55 = vmov 0.0   ;;  %vm361_vm0 = vmmov 0   ;;  %vm164_vm1 = vcmask 523264   ;;  %s588_s1 = inlined_call_operand.vmem [shape: f32[256,64], index: 1, kind: input, shape index: {}]   ;;  %s589_s0 = inlined_call_operand.vmem [shape: f32[2,256], index: 0, kind: input, shape index: {}]   ;;  %s590_s3 = inlined_call_operand.vmem [shape: f32[64,64], index: 3, kind: input, shape index: {}]   ;;  %s591_s5 = inlined_call_operand.vmem [shape: f32[64,256], index: 5, kind: input, shape index: {}]   ;;  %s592_s2 = inlined_call_operand.vmem [shape: f32[1,64], index: 2, kind: input, shape index: {}]   ;;  %s593_s4 = inlined_call_operand.vmem [shape: f32[1,64], index: 4, kind: input, shape index: {}]   ;;  %s594_s6 = inlined_call_operand.vmem [shape: f32[1,256], index: 6, kind: input, shape index: {}]   ;;  %s595_s7 = inlined_call_operand.vmem [shape: f32[2,256], index: 7, kind: output, shape index: {}]  }
   0x1   :  { %v57_v0 = vld [vmem:[%s588_s1 + $0x80] sm:$0xff]  ;;  %v58_v1 = vld [vmem:[%s588_s1 + $0x88] sm:$0xff]  ;;  %v59_v5 = vld [vmem:[%s588_s1 + $0x90] sm:$0xff]  ;;  %340 = vmatprep.subr.bf16.mxu1 %v360_v55  ;;  %348 = vmatprep.mubr.msk.bf16.mxu1 %vm361_vm0, %v360_v55 }
   0x2   :  { %v41_v2 = vld [vmem:[%s588_s1] sm:$0xff]  ;;  %v81_v3 = vpack.c.bf16 %v58_v1, %v57_v0  ;;  %v42_v4 = vld [vmem:[%s588_s1 + $0x8] sm:$0xff]  ;;  %v60_v6 = vld [vmem:[%s588_s1 + $0x98] sm:$0xff] }
   0x3   :  { %v73_v7 = vpack.c.bf16 %v42_v4, %v41_v2  ;;  %v82_v8 = vpack.c.bf16 %v60_v6, %v59_v5  ;;  %v43_v9 = vld [vmem:[%s588_s1 + $0x10] sm:$0xff]  ;;  %v44_v10 = vld [vmem:[%s588_s1 + $0x18] sm:$0xff]  ;;  %v61_v11 = vld [vmem:[%s588_s1 + $0xa0] sm:$0xff] }
   0x4   :  { %313 = vmatprep.subr.bf16.mxu0 %v81_v3  ;;  %v62_v12 = vld [vmem:[%s588_s1 + $0xa8] sm:$0xff]  ;;  %v74_v13 = vpack.c.bf16 %v44_v10, %v43_v9  ;;  %v45_v15 = vld [vmem:[%s588_s1 + $0x20] sm:$0xff]  ;;  %v63_v17 = vld [vmem:[%s588_s1 + $0xb0] sm:$0xff] }
   0x5   :  { %314 = vmatpush3.bf16.msra.mxu0 %v73_v7  ;;  %v83_v14 = vpack.c.bf16 %v62_v12, %v61_v11  ;;  %v46_v16 = vld [vmem:[%s588_s1 + $0x28] sm:$0xff]  ;;  %v64_v18 = vld [vmem:[%s588_s1 + $0xb8] sm:$0xff]  ;;  %v47_v21 = vld [vmem:[%s588_s1 + $0x30] sm:$0xff] }
   0x6   :  { %315 = vmatprep.subr.bf16.mxu0 %v82_v8  ;;  %v75_v19 = vpack.c.bf16 %v46_v16, %v45_v15  ;;  %v84_v20 = vpack.c.bf16 %v64_v18, %v63_v17  ;;  %v48_v22 = vld [vmem:[%s588_s1 + $0x38] sm:$0xff]  ;;  %v65_v23 = vld [vmem:[%s588_s1 + $0xc0] sm:$0xff]  ;;  %v66_v24 = vld [vmem:[%s588_s1 + $0xc8] sm:$0xff] }
   0x7   :  { %v306_v25 = vld.sshfl [vmem:[%s589_s0] sm:$0x33 pattern:$0x76325410]  ;;  %v76_v27 = vpack.c.bf16 %v48_v22, %v47_v21  ;;  %v85_v28 = vpack.c.bf16 %v66_v24, %v65_v23  ;;  %v50_v30 = vld [vmem:[%s588_s1 + $0x48] sm:$0xff]  ;;  %v67_v32 = vld [vmem:[%s588_s1 + $0xd0] sm:$0xff] }
   0x8   :  { %v36_v26 = vcombine.high %v306_v25, %v306_v25  ;;  %v49_v29 = vld [vmem:[%s588_s1 + $0x40] sm:$0xff]  ;;  %v68_v33 = vld [vmem:[%s588_s1 + $0xd8] sm:$0xff]  ;;  %v51_v36 = vld [vmem:[%s588_s1 + $0x50] sm:$0xff]  ;;  %v39_v51 = vpack.c.bf16 %v306_v25, %v306_v25 }
   0x9   :  { %316 = vmatpush3.bf16.msra.mxu0 %v74_v13  ;;  %v77_v34 = vpack.c.bf16 %v50_v30, %v49_v29  ;;  %v86_v35 = vpack.c.bf16 %v68_v33, %v67_v32  ;;  %v52_v37 = vld [vmem:[%s588_s1 + $0x58] sm:$0xff]  ;;  %v69_v38 = vld [vmem:[%s588_s1 + $0xe0] sm:$0xff]  ;;  %v70_v39 = vld [vmem:[%s588_s1 + $0xe8] sm:$0xff] }
   0xa   :  { %317 = vmatprep.subr.bf16.mxu0 %v83_v14  ;;  %v40_v31 = vpack.c.bf16 %v36_v26, %v36_v26  ;;  %v78_v40 = vpack.c.bf16 %v52_v37, %v51_v36  ;;  %v87_v41 = vpack.c.bf16 %v70_v39, %v69_v38  ;;  %v53_v42 = vld [vmem:[%s588_s1 + $0x60] sm:$0xff]  ;;  %v54_v43 = vld [vmem:[%s588_s1 + $0x68] sm:$0xff]  ;;  %v71_v44 = vld [vmem:[%s588_s1 + $0xf0] sm:$0xff]  ;;  %v362_v39 = vmov 0  }
   0xb   :  { %v72_v45 = vld [vmem:[%s588_s1 + $0xf8] sm:$0xff]  ;;  %v79_v46 = vpack.c.bf16 %v54_v43, %v53_v42  ;;  %v55_v48 = vld [vmem:[%s588_s1 + $0x70] sm:$0xff]  ;;  %v145_v52 = vld [vmem:[%s590_s3] sm:$0xff] }
   0xc   :  { %128 = vmatprep.mubr.bf16.mxu0 %v40_v31  ;;  %v88_v47 = vpack.c.bf16 %v72_v45, %v71_v44  ;;  %v56_v49 = vld [vmem:[%s588_s1 + $0x78] sm:$0xff]  ;;  %v146_v53 = vld [vmem:[%s590_s3 + $0x8] sm:$0xff]  ;;  %v147_v56 = vld [vmem:[%s590_s3 + $0x10] sm:$0xff] }
   0xd   :  { %318 = vmatpush3.bf16.msra.mxu0 %v75_v19  ;;  %v80_v50 = vpack.c.bf16 %v56_v49, %v55_v48  ;;  %v153_v54 = vpack.c.bf16 %v146_v53, %v145_v52  ;;  %v148_v57 = vld [vmem:[%s590_s3 + $0x18] sm:$0xff]  ;;  %v149_v59 = vld [vmem:[%s590_s3 + $0x20] sm:$0xff]  ;;  %v150_v60 = vld [vmem:[%s590_s3 + $0x28] sm:$0xff]  ;;  %v236_v48 = vlaneseq }
   0xe   :  { %319 = vmatprep.subr.bf16.mxu0 %v84_v20  ;;  %v154_v58 = vpack.c.bf16 %v148_v57, %v147_v56  ;;  %v155_v61 = vpack.c.bf16 %v150_v60, %v149_v59  ;;  %v151_v62 = vld [vmem:[%s590_s3 + $0x30] sm:$0xff]  ;;  %v152_v63 = vld [vmem:[%s590_s3 + $0x38] sm:$0xff]  ;;  %v211_v1 = vld [vmem:[%s591_s5 + $0x8] sm:$0xff] }
   0xf   :  { %341 = vmatpush3.bf16.msra.mxu1 %v153_v54  ;;  %v156_v0 = vpack.c.bf16 %v152_v63, %v151_v62  ;;  %v213_v2 = vld [vmem:[%s591_s5 + $0x18] sm:$0xff]  ;;  %v307_v5 = vld [vmem:[%s592_s2] ss:$0 sm:$0xff]  ;;  %v212_v16 = vld [vmem:[%s591_s5 + $0x10] sm:$0xff]  ;;  %v237_v49 = vshrl.u32 %v236_v48, 7 }
  0x10   :  { %342 = vmatprep.subr.bf16.mxu1 %v360_v55  ;;  %v227_v3 = vpack.c.bf16 %v213_v2, %v211_v1  ;;  %v210_v15 = vld [vmem:[%s591_s5] sm:$0xff]  ;;  %v215_v18 = vld [vmem:[%s591_s5 + $0x28] sm:$0xff]  ;;  %v217_v19 = vld [vmem:[%s591_s5 + $0x38] sm:$0xff] }
  0x11   :  { %320 = vmatpush3.bf16.msra.mxu0 %v76_v27  ;;  %v226_v21 = vpack.c.bf16 %v212_v16, %v210_v15  ;;  %v229_v23 = vpack.c.bf16 %v217_v19, %v215_v18  ;;  %v214_v24 = vld [vmem:[%s591_s5 + $0x20] sm:$0xff]  ;;  %v216_v25 = vld [vmem:[%s591_s5 + $0x30] sm:$0xff]  ;;  %v219_v26 = vld [vmem:[%s591_s5 + $0x48] sm:$0xff]  ;;  %v242_v52 = vsub.s32 1, %v237_v49 }
  0x12   :  { %321 = vmatprep.subr.bf16.mxu0 %v85_v28  ;;  %v221_v27 = vld [vmem:[%s591_s5 + $0x58] sm:$0xff]  ;;  %v228_v28 = vpack.c.bf16 %v216_v25, %v214_v24  ;;  %v218_v30 = vld [vmem:[%s591_s5 + $0x40] sm:$0xff]  ;;  %v220_v31 = vld [vmem:[%s591_s5 + $0x50] sm:$0xff] }
  0x13   :  { %343 = vmatpush3.bf16.msra.mxu1 %v154_v58  ;;  %v231_v29 = vpack.c.bf16 %v221_v27, %v219_v26  ;;  %v230_v32 = vpack.c.bf16 %v220_v31, %v218_v30  ;;  %v223_v33 = vld [vmem:[%s591_s5 + $0x68] sm:$0xff]  ;;  %v222_v36 = vld [vmem:[%s591_s5 + $0x60] sm:$0xff]  ;;  %v224_v37 = vld [vmem:[%s591_s5 + $0x70] sm:$0xff] }
  0x14   :  { %344 = vmatprep.subr.bf16.mxu1 %v360_v55  ;;  %v232_v38 = vpack.c.bf16 %v224_v37, %v222_v36 }
  0x15   :  { %322 = vmatpush3.bf16.msra.mxu0 %v77_v34  ;;  %v225_v34 = vld [vmem:[%s591_s5 + $0x78] sm:$0xff] }
  0x16   :  { %323 = vmatprep.subr.bf16.mxu0 %v86_v35  ;;  %v233_v35 = vpack.c.bf16 %v225_v34, %v223_v33 }
  0x17   :  { %345 = vmatpush3.bf16.msra.mxu1 %v155_v61 }
  0x18   :  { %346 = vmatprep.subr.bf16.mxu1 %v360_v55 }
  0x19   :  { %324 = vmatpush3.bf16.msra.mxu0 %v78_v40  ;;  %v309_v40 = vld [vmem:[%s593_s4] ss:$0 sm:$0xff] }
  0x1a   :  { %325 = vmatprep.subr.bf16.mxu0 %v87_v41 }
  0x1b   :  { %347 = vmatpush3.bf16.msra.mxu1 %v156_v0 }
  0x1c   :  { %249 = vmatprep.subr.bf16.mxu1 %v227_v3 }
  0x1d   :  { %326 = vmatpush3.bf16.msra.mxu0 %v79_v46 }
  0x1e   :  { %327 = vmatprep.subr.bf16.mxu0 %v88_v47 }
  0x21   :  { %328 = vmatpush3.bf16.msra.mxu0 %v80_v50  ;;  %v238_v50 = vsub.s32 0, %v237_v49 }
  0x24   :  { %129 = vmatmul.mubr.bf16.vlgmr.msra.gmra.mrb[0].mxu0 %v39_v51  ;;  %v234_v51 = vld [vmem:[%s594_s6] sm:$0x3] }
  0x25   :  { %v239_v53 = vrot.slane %v234_v51, %v238_v50  ;;  %v243_v54 = vrot.slane %v234_v51, %v242_v52 }
  0xf7   :  { %v329_v4 = vpop.f32.mrb[0].mxu0 }
  0xf8   :  { %v330_v6 = vpop.f32.mrb[1].mxu0 }
  0xf9   :  { %v331_v7 = vadd.f32 %v330_v6, %v329_v4  ;;  %v332_v8 = vpop.f32.mrb[2].mxu0 }
  0xfa   :  { %v333_v9 = vpop.f32.mrb[3].mxu0 }
  0xfb   :  { %v131_v10 = vadd.f32 %v331_v7, %v307_v5 }
  0xfd   :  { %v136_v11 = vmax.f32 %v131_v10, 0.0 }
  0xff   :  { %v308_v12 = vmul.f32 -1.442695, %v136_v11 }
 0x101   :  { %356 = vpow2.f32 %v308_v12 }
 0x10b   :  { %v357_v13 = vpop.eup %356 }
 0x10c   :  { %v140_v14 = vadd.f32 1.0, %v357_v13 }
 0x10e   :  { %358 = vrcp.f32 %v140_v14 }
 0x118   :  { %v359_v17 = vpop.eup %358 }
 0x119   :  { %v352_v20 = vround.rtne.f32 %v359_v17 }
 0x11b   :  { %v144_v22 = vpack.c.bf16 %v352_v20, %v352_v20 }
 0x11d   :  { %349 = vmatmul.mubr.msk.bf16.vlgmr.msra.gmra.mrb[0].mxu1 %vm164_vm1, %v144_v22 }
 0x11e   :  { %250 = vmatpush1.bf16.msra.mxu1 %v226_v21  ;;  %281 = vmatprep.mubr.bf16.mxu1 %v362_v39 }
 0x11f   :  { %251 = vmatprep.subr.bf16.mxu1 %v229_v23 }
 0x122   :  { %252 = vmatpush1.bf16.msra.mxu1 %v228_v28 }
 0x123   :  { %253 = vmatprep.subr.bf16.mxu1 %v231_v29 }
 0x126   :  { %254 = vmatpush1.bf16.msra.mxu1 %v230_v32 }
 0x127   :  { %255 = vmatprep.subr.bf16.mxu1 %v233_v35 }
 0x12a   :  { %256 = vmatpush1.bf16.msra.mxu1 %v232_v38 }
 0x1f0   :  { %v202_v41 = vpop.f32.mrb[0].mxu1 }
 0x1f1   :  { %v203_v42 = vadd.f32 %v309_v40, %v202_v41  ;;  %v350_v43 = vpop.f32.mrb[1].mxu1 }
 0x1f2   :  { %v205_v44 = vpop.f32.mrb[2].mxu1 }
 0x1f3   :  { %v208_v45 = vmax.f32 %v203_v42, 0.0  ;;  %v351_v46 = vpop.f32.mrb[3].mxu1 }
 0x1f5   :  { %v209_v47 = vpack.c.bf16 %v208_v45, %v208_v45 }
 0x1f7   :  { %311 = vmatmul.mubr.msk.bf16.vlgmr.msra.gmra.mrb[4].mxu1 %vm164_vm1, %v209_v47 }
 0x2ca   :  { %v283_v55 = vpop.f32.mrb[4].mxu1 }
 0x2cb   :  { %v284_v56 = vadd.f32 %v283_v55, %v239_v53  ;;  %v285_v57 = vpop.f32.mrb[5].mxu1 }
 0x2cc   :  { %v286_v58 = vadd.f32 %v285_v57, %v243_v54  ;;  %v287_v59 = vpop.f32.mrb[6].mxu1 }
 0x2cd   :  { %v288_v60 = vpop.f32.mrb[7].mxu1 }
 0x2ce   :  { %v292_v61 = vcombine.low %v284_v56, %v286_v58 }
 0x2d0   :  { %312 = vst.sshfl [vmem:[%s595_s7] sm:$0x33 pattern:$0x76325410] %v292_v61 }

// kernel: transformer_forward.38
= control target key start
LH: loop header
LB: loop body
LE: loop exit
PB: predicated region body
PF: predicated region fallthrough
CT: control target
= control target key end

     0   :  { %v110_v0 = vmov 0.0   ;;  %vm111_vm0 = vmmov 0   ;;  %vm31_vm1 = vcmask 261120   ;;  %vm84_vm2 = vcmask 257024   ;;  %s159_s1 = inlined_call_operand.vmem [shape: f32[32,32], index: 1, kind: input, shape index: {}]   ;;  %s160_s0 = inlined_call_operand.vmem [shape: f32[16,32], index: 0, kind: input, shape index: {}]   ;;  %s161_s2 = inlined_call_operand.vmem [shape: f32[1,32], index: 2, kind: input, shape index: {}]   ;;  %s162_s3 = inlined_call_operand.vmem [shape: bf16[16,32], index: 3, kind: output, shape index: {}]  }
   0x1   :  { %100 = vmatprep.subr.bf16.mxu0 %v110_v0  ;;  %v18_v1 = vld [vmem:[%s159_s1] sm:$0xff]  ;;  %v19_v2 = vld [vmem:[%s159_s1 + $0x8] sm:$0xff]  ;;  %v20_v3 = vld [vmem:[%s159_s1 + $0x10] sm:$0xff]  ;;  %104 = vmatprep.mubr.msk.bf16.mxu0 %vm111_vm0, %v110_v0 }
   0x2   :  { %v22_v4 = vpack.c.bf16 %v19_v2, %v18_v1  ;;  %v21_v5 = vld [vmem:[%s159_s1 + $0x18] sm:$0xff]  ;;  %v15_v7 = vld [vmem:[%s160_s0] sm:$0xff]  ;;  %v16_v8 = vld [vmem:[%s160_s0 + $0x8] sm:$0xff] }
   0x3   :  { %v23_v6 = vpack.c.bf16 %v21_v5, %v20_v3  ;;  %v17_v9 = vpack.c.bf16 %v16_v8, %v15_v7  ;;  %v91_v10 = vld [vmem:[%s161_s2] ss:$0 sm:$0xff] }
   0x4   :  { %101 = vmatpush3.bf16.msra.mxu0 %v22_v4 }
   0x5   :  { %102 = vmatprep.subr.bf16.mxu0 %v110_v0 }
   0x8   :  { %103 = vmatpush3.bf16.msra.mxu0 %v23_v6 }
   0xb   :  { %105 = vmatmul.mubr.msk.bf16.vlgmr.msra.gmra.mrb[0].mxu0 %vm31_vm1, %v17_v9 }
  0xde   :  { %v69_v11 = vpop.f32.mrb[0].mxu0 }
  0xdf   :  { %v70_v12 = vadd.f32 %v91_v10, %v69_v11  ;;  %v106_v13 = vpop.f32.mrb[1].mxu0 }
  0xe0   :  { %v72_v14 = vpop.f32.mrb[2].mxu0 }
  0xe1   :  { %v95_v15 = vpack.c.bf16 %v70_v12, %v70_v12  ;;  %v73_v16 = vadd.f32 %v91_v10, %v72_v14  ;;  %v107_v17 = vpop.f32.mrb[3].mxu0 }
  0xe3   :  { %85 = vst.msk [vmem:[%s162_s3] sm:$0xf] %vm84_vm2, %v95_v15  ;;  %v96_v18 = vpack.c.bf16 %v73_v16, %v73_v16 }
  0xe5   :  { %86 = vst.msk [vmem:[%s162_s3 + $0x4] sm:$0xf] %vm84_vm2, %v96_v18 }

// kernel: transformer_forward.51
= control target key start
LH: loop header
LB: loop body
LE: loop exit
PB: predicated region body
PF: predicated region fallthrough
CT: control target
= control target key end

     0   :  { %v97_v0 = vmov 0.0   ;;  %vm98_vm0 = vmmov 0   ;;  %vm31_vm1 = vcmask 261120   ;;  %s146_s1 = inlined_call_operand.vmem [shape: f32[32,128], index: 1, kind: input, shape index: {}]   ;;  %s147_s0 = inlined_call_operand.vmem [shape: f32[16,32], index: 0, kind: input, shape index: {}]   ;;  %s148_s2 = inlined_call_operand.vmem [shape: f32[1,128], index: 2, kind: input, shape index: {}]   ;;  %s149_s3 = inlined_call_operand.vmem [shape: f32[16,128], index: 3, kind: output, shape index: {}]  }
   0x1   :  { %87 = vmatprep.subr.bf16.mxu0 %v97_v0  ;;  %v18_v1 = vld [vmem:[%s146_s1] sm:$0xff]  ;;  %v19_v2 = vld [vmem:[%s146_s1 + $0x8] sm:$0xff]  ;;  %v20_v3 = vld [vmem:[%s146_s1 + $0x10] sm:$0xff]  ;;  %91 = vmatprep.mubr.msk.bf16.mxu0 %vm98_vm0, %v97_v0 }
   0x2   :  { %v22_v4 = vpack.c.bf16 %v19_v2, %v18_v1  ;;  %v21_v5 = vld [vmem:[%s146_s1 + $0x18] sm:$0xff]  ;;  %v15_v7 = vld [vmem:[%s147_s0] sm:$0xff]  ;;  %v16_v8 = vld [vmem:[%s147_s0 + $0x8] sm:$0xff] }
   0x3   :  { %v23_v6 = vpack.c.bf16 %v21_v5, %v20_v3  ;;  %v17_v9 = vpack.c.bf16 %v16_v8, %v15_v7  ;;  %v82_v10 = vld [vmem:[%s148_s2] ss:$0 sm:$0xff] }
   0x4   :  { %88 = vmatpush3.bf16.msra.mxu0 %v22_v4 }
   0x5   :  { %89 = vmatprep.subr.bf16.mxu0 %v97_v0 }
   0x8   :  { %90 = vmatpush3.bf16.msra.mxu0 %v23_v6 }
   0xb   :  { %92 = vmatmul.mubr.msk.bf16.vlgmr.msra.gmra.mrb[0].mxu0 %vm31_vm1, %v17_v9 }
  0xde   :  { %v69_v11 = vpop.f32.mrb[0].mxu0 }
  0xdf   :  { %v70_v12 = vadd.f32 %v82_v10, %v69_v11  ;;  %v93_v13 = vpop.f32.mrb[1].mxu0 }
  0xe0   :  { %v72_v14 = vpop.f32.mrb[2].mxu0 }
  0xe1   :  { %76 = vst [vmem:[%s149_s3] sm:$0xff] %v70_v12  ;;  %v73_v15 = vadd.f32 %v82_v10, %v72_v14  ;;  %v94_v16 = vpop.f32.mrb[3].mxu0 }
  0xe3   :  { %77 = vst [vmem:[%s149_s3 + $0x8] sm:$0xff] %v73_v15 }

// kernel: transformer_forward.40
= control target key start
LH: loop header
LB: loop body
LE: loop exit
PB: predicated region body
PF: predicated region fallthrough
CT: control target
= control target key end

     0   :  { %vm21_vm0 = vcmask 64512   ;;  %v1169_v0 = vmov 0.0   ;;  %vm1170_vm1 = vmmov 0   ;;  %s1171_s19 = smov 120   ;;  %vm143_vm2 = vcmask 1043456   ;;  %s1173_s23 = smov 104   ;;  %s1387_s1 = inlined_call_operand.vmem [shape: bf16[2,8,32], index: 1, kind: input, shape index: {}]   ;;  %s1388_s0 = inlined_call_operand.vmem [shape: bf16[2,8,32], index: 0, kind: input, shape index: {}]   ;;  %s1389_s2 = inlined_call_operand.vmem [shape: bf16[2,8,32], index: 2, kind: input, shape index: {}]   ;;  %s1390_s3 = inlined_call_operand.vmem [shape: bf16[2,8,32], index: 3, kind: output, shape index: {}]  }
   0x1   :  { %1012 = vmatprep.subr.bf16.mxu0 %v1169_v0  ;;  %v17_v1 = vld [vmem:[%s1387_s1] sm:$0xf]  ;;  %1018 = vmatprep.subr.bf16.mxu1 %v1169_v0  ;;  %v18_v2 = vld [vmem:[%s1387_s1 + $0x4] sm:$0xf]  ;;  %s1174_s24 = smov 8   ;;  %s1175_s25 = smov 16  }
   0x2   :  { %v26_v3 = vsel %vm21_vm0, %v17_v1, 0  ;;  %v72_v4 = vsel %vm21_vm0, %v18_v2, 0  ;;  %1014 = vmatprep.mubr.msk.bf16.mxu0 %vm1170_vm1, %v1169_v0  ;;  %1020 = vmatprep.mubr.msk.bf16.mxu1 %vm1170_vm1, %v1169_v0  ;;  %v15_v5 = vld [vmem:[%s1388_s0] sm:$0xf]  ;;  %v16_v6 = vld [vmem:[%s1388_s0 + $0x4] sm:$0xf]  ;;  %v1225_v7 = vcombine.low %v18_v2, %v18_v2  ;;  %v1231_v20 = vcombine.low %v17_v1, %v17_v1 }
   0x3   :  { %1013 = vmatpush3.bf16.xpose.msra.mxu0 %v26_v3  ;;  %1019 = vmatpush3.bf16.xpose.msra.mxu1 %v72_v4  ;;  %v1237_v31 = vcombine.low %v15_v5, %v15_v5  ;;  %v1242_v32 = vld [vmem:[%s1389_s2] sm:$0xf]  ;;  %v1248_v34 = vcombine.low %v16_v6, %v16_v6  ;;  %v20_v35 = vld [vmem:[%s1389_s2 + $0x4] sm:$0xf]  ;;  %s1172_s2 = smov 112   ;;  %s1176_s26 = smov 24  }
   0x4   :  { %1024 = vmatprep.subr.bf16.mxu0 %v1169_v0  ;;  %1030 = vmatprep.subr.bf16.mxu1 %v1169_v0  ;;  %v145_v33 = vsel %vm143_vm2, %v1242_v32, 0  ;;  %v191_v36 = vsel %vm143_vm2, %v20_v35, 0  ;;  %vm943_vm3 = vcmask 130048   ;;  %vm946_vm4 = vcmask 195584  }
   0x5   :  { %297 = vrot.lane.b32.xlu1 %v1225_v7, %s1171_s19  ;;  %vm951_vm5 = vcmask 257024  }
   0xa   :  { %1015 = vmatmul.mubr.msk.bf16.vlgmr.msra.gmra.mrb[0].mxu0 %vm21_vm0, %v15_v5  ;;  %1021 = vmatmul.mubr.msk.bf16.vlgmr.msra.gmra.mrb[0].mxu1 %vm21_vm0, %v16_v6 }
   0xb   :  { %1026 = vmatprep.mubr.msk.bf16.mxu0 %vm1170_vm1, %v1169_v0  ;;  %1032 = vmatprep.mubr.msk.bf16.mxu1 %vm1170_vm1, %v1169_v0 }
   0xc   :  { %1025 = vmatpush3.bf16.msra.mxu0 %v145_v33  ;;  %1031 = vmatpush3.bf16.msra.mxu1 %v191_v36 }
   0xd   :  { %1036 = vmatprep.subr.bf16.mxu0 %v1169_v0  ;;  %1042 = vmatprep.subr.bf16.mxu1 %v1169_v0 }
  0x77   :  { %v298_v37 = vpop.permute.xlu1 %297 }
  0x78   :  { %v303_v49 = vsel %vm21_vm0, %v298_v37, 0 }
  0xdd   :  { %v62_v8 = vpop.f32.mrb[0].mxu0  ;;  %v108_v9 = vpop.f32.mrb[0].mxu1 }
  0xde   :  { %v114_v10 = vmul.f32 0.35355338, %v62_v8  ;;  %v1016_v11 = vpop.f32.mrb[1].mxu0  ;;  %v115_v12 = vmul.f32 0.35355338, %v108_v9  ;;  %v1022_v13 = vpop.f32.mrb[1].mxu1  ;;  %v1280_v9 = vcombine.low %v20_v35, %v20_v35 }
  0xdf   :  { %v65_v14 = vpop.f32.mrb[2].mxu0  ;;  %v111_v15 = vpop.f32.mrb[2].mxu1 }
  0xe0   :  { %v1017_v16 = vpop.f32.mrb[3].mxu0  ;;  %v1023_v17 = vpop.f32.mrb[3].mxu1  ;;  %v116_v18 = vsel %vm21_vm0, %v114_v10, -inf  ;;  %v119_v19 = vsel %vm21_vm0, %v115_v12, -inf }
  0xe1   :  { %117 = vmax.xlane.f32.xlu0 %v116_v18 }
  0xe5   :  { %120 = vmax.xlane.f32.xlu0 %v119_v19 }
  0xfb   :  { %241 = vrot.lane.b32.xlu0 %v1231_v20, %s1171_s19 }
 0x16e   :  { %v118_v21 = vpop.xlane.xlu0 %117 }
 0x16f   :  { %v122_v22 = vsub.f32 %v114_v10, %v118_v21  ;;  %v1294_v21 = vcombine.low %v1242_v32, %v1242_v32 }
 0x171   :  { %v124_v23 = vmul.f32 1.442695, %v122_v22 }
 0x172   :  { %v121_v24 = vpop.xlane.xlu0 %120 }
 0x173   :  { %1137 = vpow2.f32 %v124_v23  ;;  %v123_v25 = vsub.f32 %v115_v12, %v121_v24 }
 0x175   :  { %v126_v26 = vmul.f32 1.442695, %v123_v25 }
 0x176   :  { %v242_v41 = vpop.permute.xlu0 %241 }
 0x177   :  { %1139 = vpow2.f32 %v126_v26  ;;  %v247_v43 = vsel %vm21_vm0, %v242_v41, 0 }
 0x17d   :  { %v1138_v27 = vpop.eup %1137 }
 0x17e   :  { %v128_v28 = vsel %vm21_vm0, %v1138_v27, 0.0 }
 0x17f   :  { %129 = vadd.xlane.f32.xlu1 %v128_v28 }
 0x181   :  { %v1140_v29 = vpop.eup %1139 }
 0x182   :  { %v131_v30 = vsel %vm21_vm0, %v1140_v29, 0.0 }
 0x183   :  { %132 = vadd.xlane.f32.xlu1 %v131_v30 }
 0x194   :  { %236 = vrot.lane.b32.xlu1 %v1237_v31, %s1171_s19 }
 0x198   :  { %292 = vrot.lane.b32.xlu1 %v1248_v34, %s1171_s19 }
 0x20c   :  { %v130_v38 = vpop.xlane.xlu1 %129 }
 0x20d   :  { %1141 = vrcp.f32 %v130_v38 }
 0x210   :  { %v133_v39 = vpop.xlane.xlu1 %132 }
 0x211   :  { %1143 = vrcp.f32 %v133_v39 }
 0x214   :  { %v237_v48 = vpop.permute.xlu1 %236 }
 0x217   :  { %v1142_v40 = vpop.eup %1141 }
 0x218   :  { %v135_v42 = vmul.f32 %v1142_v40, %v1138_v27  ;;  %v293_v50 = vpop.permute.xlu1 %292 }
 0x21a   :  { %v138_v44 = vpack.c.bf16 %v135_v42, %v135_v42 }
 0x21b   :  { %v1144_v45 = vpop.eup %1143 }
 0x21c   :  { %v137_v46 = vmul.f32 %v1144_v45, %v1140_v29  ;;  %1027 = vmatmul.mubr.msk.bf16.vlgmr.msra.gmra.mrb[4].mxu0 %vm21_vm0, %v138_v44 }
 0x21d   :  { %1037 = vmatpush3.bf16.xpose.msra.mxu0 %v247_v43  ;;  %1038 = vmatprep.mubr.msk.bf16.mxu0 %vm1170_vm1, %v1169_v0 }
 0x21e   :  { %v139_v47 = vpack.c.bf16 %v137_v46, %v137_v46  ;;  %1048 = vmatprep.subr.bf16.mxu0 %v1169_v0 }
 0x220   :  { %1033 = vmatmul.mubr.msk.bf16.vlgmr.msra.gmra.mrb[4].mxu1 %vm21_vm0, %v139_v47 }
 0x221   :  { %1043 = vmatpush3.bf16.xpose.msra.mxu1 %v303_v49  ;;  %1044 = vmatprep.mubr.msk.bf16.mxu1 %vm1170_vm1, %v1169_v0 }
 0x222   :  { %1054 = vmatprep.subr.bf16.mxu1 %v1169_v0 }
 0x224   :  { %1039 = vmatmul.mubr.msk.bf16.vlgmr.msra.gmra.mrb[8].mxu0 %vm21_vm0, %v237_v48 }
 0x225   :  { %1050 = vmatprep.mubr.msk.bf16.mxu0 %vm1170_vm1, %v1169_v0 }
 0x228   :  { %1045 = vmatmul.mubr.msk.bf16.vlgmr.msra.gmra.mrb[8].mxu1 %vm21_vm0, %v293_v50 }
 0x229   :  { %1056 = vmatprep.mubr.msk.bf16.mxu1 %vm1170_vm1, %v1169_v0 }
 0x2ef   :  { %v1274_v51 = vpop.f32.mrb[4].mxu0 }
 0x2f0   :  { %v1028_v52 = vpop.f32.mrb[5].mxu0 }
 0x2f1   :  { %v184_v53 = vpop.f32.mrb[6].mxu0 }
 0x2f2   :  { %v1029_v54 = vpop.f32.mrb[7].mxu0 }
 0x2f3   :  { %v1276_v55 = vpop.f32.mrb[4].mxu1 }
 0x2f4   :  { %v1034_v56 = vpop.f32.mrb[5].mxu1 }
 0x2f5   :  { %v230_v57 = vpop.f32.mrb[6].mxu1 }
 0x2f6   :  { %v1035_v58 = vpop.f32.mrb[7].mxu1 }
 0x2f7   :  { %v283_v59 = vpop.f32.mrb[8].mxu0 }
 0x2f8   :  { %v345_v60 = vmul.f32 0.35355338, %v283_v59  ;;  %v1040_v61 = vpop.f32.mrb[9].mxu0 }
 0x2f9   :  { %v286_v62 = vpop.f32.mrb[10].mxu0 }
 0x2fa   :  { %v1041_v63 = vpop.f32.mrb[11].mxu0  ;;  %v347_v1 = vsel %vm21_vm0, %v345_v60, -inf }
 0x2fb   :  { %v339_v2 = vpop.f32.mrb[8].mxu1  ;;  %348 = vmax.xlane.f32.xlu0 %v347_v1 }
 0x2fc   :  { %v346_v3 = vmul.f32 0.35355338, %v339_v2  ;;  %v1046_v4 = vpop.f32.mrb[9].mxu1 }
 0x2fd   :  { %v342_v5 = vpop.f32.mrb[10].mxu1 }
 0x2fe   :  { %v1047_v6 = vpop.f32.mrb[11].mxu1  ;;  %v350_v8 = vsel %vm21_vm0, %v346_v3, -inf }
 0x2ff   :  { %351 = vmax.xlane.f32.xlu1 %v350_v8 }
 0x310   :  { %425 = vrot.lane.b32.xlu1 %v1280_v9, %s1171_s19 }
 0x314   :  { %475 = vrot.lane.b32.xlu1 %v1231_v20, %s1172_s2 }
 0x318   :  { %525 = vrot.lane.b32.xlu1 %v1225_v7, %s1172_s2 }
 0x31c   :  { %523 = vrot.lane.b32.xlu1 %v1248_v34, %s1172_s2 }
 0x388   :  { %v349_v10 = vpop.xlane.xlu0 %348 }
 0x389   :  { %v353_v11 = vsub.f32 %v345_v60, %v349_v10 }
 0x38b   :  { %v355_v12 = vmul.f32 1.442695, %v353_v11 }
 0x38c   :  { %v352_v13 = vpop.xlane.xlu1 %351 }
 0x38d   :  { %1145 = vpow2.f32 %v355_v12  ;;  %v354_v14 = vsub.f32 %v346_v3, %v352_v13 }
 0x38f   :  { %v357_v15 = vmul.f32 1.442695, %v354_v14 }
 0x390   :  { %v426_v22 = vpop.permute.xlu1 %425 }
 0x391   :  { %1147 = vpow2.f32 %v357_v15  ;;  %v431_v23 = vsel %vm143_vm2, %v426_v22, 0 }
 0x392   :  { %1055 = vmatpush3.bf16.msra.mxu1 %v431_v23 }
 0x393   :  { %1066 = vmatprep.subr.bf16.mxu1 %v1169_v0 }
 0x394   :  { %v476_v28 = vpop.permute.xlu1 %475 }
 0x395   :  { %v481_v37 = vsel %vm21_vm0, %v476_v28, 0 }
 0x397   :  { %v1146_v16 = vpop.eup %1145 }
 0x398   :  { %v359_v17 = vsel %vm21_vm0, %v1146_v16, 0.0  ;;  %v526_v35 = vpop.permute.xlu1 %525 }
 0x399   :  { %360 = vadd.xlane.f32.xlu0 %v359_v17  ;;  %v531_v38 = vsel %vm21_vm0, %v526_v35, 0 }
 0x39b   :  { %v1148_v18 = vpop.eup %1147 }
 0x39c   :  { %v362_v19 = vsel %vm21_vm0, %v1148_v18, 0.0  ;;  %v524_v41 = vpop.permute.xlu1 %523 }
 0x39d   :  { %363 = vadd.xlane.f32.xlu0 %v362_v19 }
 0x3b3   :  { %374 = vrot.lane.b32.xlu0 %v1294_v21, %s1171_s19 }
 0x3b7   :  { %473 = vrot.lane.b32.xlu0 %v1237_v31, %s1172_s2 }
 0x426   :  { %v361_v24 = vpop.xlane.xlu0 %360 }
 0x427   :  { %1149 = vrcp.f32 %v361_v24 }
 0x42a   :  { %v364_v25 = vpop.xlane.xlu0 %363 }
 0x42b   :  { %1151 = vrcp.f32 %v364_v25 }
 0x42e   :  { %v375_v26 = vpop.permute.xlu0 %374 }
 0x42f   :  { %v380_v27 = vsel %vm143_vm2, %v375_v26, 0 }
 0x430   :  { %1049 = vmatpush3.bf16.msra.mxu0 %v380_v27 }
 0x431   :  { %v1150_v29 = vpop.eup %1149  ;;  %1060 = vmatprep.subr.bf16.mxu0 %v1169_v0 }
 0x432   :  { %v366_v30 = vmul.f32 %v1150_v29, %v1146_v16  ;;  %v474_v40 = vpop.permute.xlu0 %473 }
 0x434   :  { %v369_v32 = vpack.c.bf16 %v366_v30, %v366_v30 }
 0x435   :  { %v1152_v33 = vpop.eup %1151 }
 0x436   :  { %v368_v36 = vmul.f32 %v1152_v33, %v1148_v18  ;;  %1051 = vmatmul.mubr.msk.bf16.vlgmr.msra.gmra.mrb[12].mxu0 %vm21_vm0, %v369_v32 }
 0x437   :  { %1062 = vmatprep.mubr.msk.bf16.mxu0 %vm1170_vm1, %v1169_v0 }
 0x438   :  { %v370_v39 = vpack.c.bf16 %v368_v36, %v368_v36 }
 0x439   :  { %1061 = vmatpush3.bf16.xpose.msra.mxu0 %v481_v37 }
 0x43a   :  { %1057 = vmatmul.mubr.msk.bf16.vlgmr.msra.gmra.mrb[12].mxu1 %vm21_vm0, %v370_v39  ;;  %1072 = vmatprep.subr.bf16.mxu0 %v1169_v0 }
 0x43b   :  { %1067 = vmatpush3.bf16.xpose.msra.mxu1 %v531_v38  ;;  %1068 = vmatprep.mubr.msk.bf16.mxu1 %vm1170_vm1, %v1169_v0 }
 0x43c   :  { %1078 = vmatprep.subr.bf16.mxu1 %v1169_v0 }
 0x440   :  { %1063 = vmatmul.mubr.msk.bf16.vlgmr.msra.gmra.mrb[16].mxu0 %vm21_vm0, %v474_v40 }
 0x441   :  { %1074 = vmatprep.mubr.msk.bf16.mxu0 %vm1170_vm1, %v1169_v0 }
 0x442   :  { %1069 = vmatmul.mubr.msk.bf16.vlgmr.msra.gmra.mrb[16].mxu1 %vm21_vm0, %v524_v41 }
 0x443   :  { %1080 = vmatprep.mubr.msk.bf16.mxu1 %vm1170_vm1, %v1169_v0 }
 0x509   :  { %v1320_v42 = vpop.f32.mrb[12].mxu0 }
 0x50a   :  { %v1052_v43 = vpop.f32.mrb[13].mxu0 }
 0x50b   :  { %v419_v44 = vpop.f32.mrb[14].mxu0 }
 0x50c   :  { %v1053_v45 = vpop.f32.mrb[15].mxu0 }
 0x50d   :  { %v1322_v46 = vpop.f32.mrb[12].mxu1 }
 0x50e   :  { %v1116_v47 = vpack.i.bf16 %v1322_v46, %v1320_v42  ;;  %v1058_v48 = vpop.f32.mrb[13].mxu1 }
 0x50f   :  { %v470_v49 = vpop.f32.mrb[14].mxu1 }
 0x510   :  { %v1059_v50 = vpop.f32.mrb[15].mxu1 }
 0x513   :  { %v517_v52 = vpop.f32.mrb[16].mxu0 }
 0x514   :  { %v573_v53 = vmul.f32 0.35355338, %v517_v52  ;;  %v1064_v54 = vpop.f32.mrb[17].mxu0 }
 0x515   :  { %v520_v56 = vpop.f32.mrb[18].mxu0  ;;  %v567_v57 = vpop.f32.mrb[16].mxu1 }
 0x516   :  { %v574_v58 = vmul.f32 0.35355338, %v567_v57  ;;  %v1065_v59 = vpop.f32.mrb[19].mxu0  ;;  %v1070_v60 = vpop.f32.mrb[17].mxu1  ;;  %v575_v61 = vsel %vm21_vm0, %v573_v53, -inf }
 0x517   :  { %v570_v62 = vpop.f32.mrb[18].mxu1  ;;  %576 = vmax.xlane.f32.xlu0 %v575_v61 }
 0x518   :  { %v1071_v63 = vpop.f32.mrb[19].mxu1  ;;  %v578_v1 = vsel %vm21_vm0, %v574_v58, -inf }
 0x519   :  { %579 = vmax.xlane.f32.xlu1 %v578_v1 }
 0x52a   :  { %647 = vrot.lane.b32.xlu1 %v1280_v9, %s1172_s2 }
 0x52e   :  { %697 = vrot.lane.b32.xlu1 %v1231_v20, %s1173_s23 }
 0x532   :  { %747 = vrot.lane.b32.xlu1 %v1225_v7, %s1173_s23 }
 0x536   :  { %745 = vrot.lane.b32.xlu1 %v1248_v34, %s1173_s23 }
 0x5a4   :  { %v577_v2 = vpop.xlane.xlu0 %576 }
 0x5a5   :  { %v581_v3 = vsub.f32 %v573_v53, %v577_v2 }
 0x5a6   :  { %v580_v4 = vpop.xlane.xlu1 %579 }
 0x5a7   :  { %v583_v5 = vmul.f32 1.442695, %v581_v3  ;;  %v582_v6 = vsub.f32 %v574_v58, %v580_v4 }
 0x5a9   :  { %1153 = vpow2.f32 %v583_v5  ;;  %v585_v8 = vmul.f32 1.442695, %v582_v6 }
 0x5aa   :  { %v648_v7 = vpop.permute.xlu1 %647 }
 0x5ab   :  { %1155 = vpow2.f32 %v585_v8  ;;  %v653_v13 = vsel %vm143_vm2, %v648_v7, 0 }
 0x5ac   :  { %1079 = vmatpush3.bf16.msra.mxu1 %v653_v13 }
 0x5ad   :  { %1090 = vmatprep.subr.bf16.mxu1 %v1169_v0 }
 0x5ae   :  { %v698_v17 = vpop.permute.xlu1 %697 }
 0x5af   :  { %v703_v26 = vsel %vm21_vm0, %v698_v17, 0 }
 0x5b2   :  { %v748_v24 = vpop.permute.xlu1 %747 }
 0x5b3   :  { %v1154_v10 = vpop.eup %1153 }
 0x5b4   :  { %v587_v11 = vsel %vm21_vm0, %v1154_v10, 0.0 }
 0x5b5   :  { %v1156_v12 = vpop.eup %1155  ;;  %588 = vadd.xlane.f32.xlu0 %v587_v11 }
 0x5b6   :  { %v590_v20 = vsel %vm21_vm0, %v1156_v12, 0.0  ;;  %v746_v29 = vpop.permute.xlu1 %745 }
 0x5b9   :  { %591 = vadd.xlane.f32.xlu0 %v590_v20 }
 0x5cf   :  { %599 = vrot.lane.b32.xlu0 %v1294_v21, %s1172_s2 }
 0x5d3   :  { %695 = vrot.lane.b32.xlu0 %v1237_v31, %s1173_s23  ;;  %v753_v31 = vsel %vm21_vm0, %v748_v24, 0 }
 0x642   :  { %v589_v34 = vpop.xlane.xlu0 %588 }
 0x643   :  { %1157 = vrcp.f32 %v589_v34 }
 0x646   :  { %v592_v14 = vpop.xlane.xlu0 %591 }
 0x647   :  { %1159 = vrcp.f32 %v592_v14 }
 0x64a   :  { %v600_v15 = vpop.permute.xlu0 %599 }
 0x64b   :  { %v605_v16 = vsel %vm143_vm2, %v600_v15, 0 }
 0x64c   :  { %1073 = vmatpush3.bf16.msra.mxu0 %v605_v16 }
 0x64d   :  { %v1158_v18 = vpop.eup %1157  ;;  %1084 = vmatprep.subr.bf16.mxu0 %v1169_v0 }
 0x64e   :  { %v594_v19 = vmul.f32 %v1158_v18, %v1154_v10  ;;  %v696_v28 = vpop.permute.xlu0 %695 }
 0x650   :  { %v597_v22 = vpack.c.bf16 %v594_v19, %v594_v19 }
 0x651   :  { %v1160_v23 = vpop.eup %1159 }
 0x652   :  { %v596_v25 = vmul.f32 %v1160_v23, %v1156_v12  ;;  %1075 = vmatmul.mubr.msk.bf16.vlgmr.msra.gmra.mrb[20].mxu0 %vm21_vm0, %v597_v22 }
 0x653   :  { %1086 = vmatprep.mubr.msk.bf16.mxu0 %vm1170_vm1, %v1169_v0 }
 0x654   :  { %v598_v27 = vpack.c.bf16 %v596_v25, %v596_v25 }
 0x655   :  { %1085 = vmatpush3.bf16.xpose.msra.mxu0 %v703_v26 }
 0x656   :  { %1081 = vmatmul.mubr.msk.bf16.vlgmr.msra.gmra.mrb[20].mxu1 %vm21_vm0, %v598_v27  ;;  %1096 = vmatprep.subr.bf16.mxu0 %v1169_v0 }
 0x657   :  { %1091 = vmatpush3.bf16.xpose.msra.mxu1 %v753_v31  ;;  %1092 = vmatprep.mubr.msk.bf16.mxu1 %vm1170_vm1, %v1169_v0 }
 0x658   :  { %1102 = vmatprep.subr.bf16.mxu1 %v1169_v0 }
 0x65c   :  { %1087 = vmatmul.mubr.msk.bf16.vlgmr.msra.gmra.mrb[24].mxu0 %vm21_vm0, %v696_v28 }
 0x65d   :  { %1098 = vmatprep.mubr.msk.bf16.mxu0 %vm1170_vm1, %v1169_v0 }
 0x65e   :  { %1093 = vmatmul.mubr.msk.bf16.vlgmr.msra.gmra.mrb[24].mxu1 %vm21_vm0, %v746_v29 }
 0x65f   :  { %1104 = vmatprep.mubr.msk.bf16.mxu1 %vm1170_vm1, %v1169_v0 }
 0x725   :  { %v641_v30 = vpop.f32.mrb[20].mxu0 }
 0x726   :  { %v1076_v32 = vpop.f32.mrb[21].mxu0 }
 0x727   :  { %v644_v33 = vpop.f32.mrb[22].mxu0 }
 0x728   :  { %v1077_v35 = vpop.f32.mrb[23].mxu0 }
 0x729   :  { %v689_v36 = vpop.f32.mrb[20].mxu1 }
 0x72a   :  { %v1121_v37 = vpack.i.bf16 %v689_v36, %v641_v30  ;;  %v1082_v38 = vpop.f32.mrb[21].mxu1 }
 0x72b   :  { %v692_v39 = vpop.f32.mrb[22].mxu1 }
 0x72c   :  { %v1083_v40 = vpop.f32.mrb[23].mxu1 }
 0x72f   :  { %v739_v41 = vpop.f32.mrb[24].mxu0 }
 0x730   :  { %v795_v43 = vmul.f32 0.35355338, %v739_v41  ;;  %v1088_v44 = vpop.f32.mrb[25].mxu0 }
 0x731   :  { %v742_v45 = vpop.f32.mrb[26].mxu0  ;;  %v789_v48 = vpop.f32.mrb[24].mxu1 }
 0x732   :  { %v796_v49 = vmul.f32 0.35355338, %v789_v48  ;;  %v1089_v50 = vpop.f32.mrb[27].mxu0  ;;  %v1094_v52 = vpop.f32.mrb[25].mxu1  ;;  %v797_v53 = vsel %vm21_vm0, %v795_v43, -inf }
 0x733   :  { %v792_v0 = vpop.f32.mrb[26].mxu1  ;;  %798 = vmax.xlane.f32.xlu0 %v797_v53 }
 0x734   :  { %v1095_v54 = vpop.f32.mrb[27].mxu1  ;;  %v800_v56 = vsel %vm21_vm0, %v796_v49, -inf }
 0x735   :  { %801 = vmax.xlane.f32.xlu1 %v800_v56 }
 0x746   :  { %869 = vrot.lane.b32.xlu1 %v1280_v9, %s1173_s23 }
 0x74a   :  { %1117 = vrot.lane.b32.xlu1 %v1116_v47, %s1174_s24 }
 0x74e   :  { %1122 = vrot.lane.b32.xlu1 %v1121_v37, %s1175_s25 }
 0x7c0   :  { %v799_v57 = vpop.xlane.xlu0 %798 }
 0x7c1   :  { %v803_v58 = vsub.f32 %v795_v43, %v799_v57 }
 0x7c2   :  { %v802_v59 = vpop.xlane.xlu1 %801 }
 0x7c3   :  { %v805_v60 = vmul.f32 1.442695, %v803_v58  ;;  %v804_v61 = vsub.f32 %v796_v49, %v802_v59 }
 0x7c5   :  { %1161 = vpow2.f32 %v805_v60  ;;  %v807_v62 = vmul.f32 1.442695, %v804_v61 }
 0x7c6   :  { %v870_v63 = vpop.permute.xlu1 %869 }
 0x7c7   :  { %1163 = vpow2.f32 %v807_v62  ;;  %v875_v1 = vsel %vm143_vm2, %v870_v63, 0 }
 0x7c8   :  { %1103 = vmatpush3.bf16.msra.mxu1 %v875_v1 }
 0x7ca   :  { %v1118_v19 = vpop.permute.xlu1 %1117 }
 0x7cb   :  { %v1120_v23 = vunpack.i.h.bf16 %v1118_v19  ;;  %v1119_v24 = vunpack.i.l.bf16 %v1118_v19 }
 0x7cd   :  { %v942_v27 = vsel %vm21_vm0, %v1276_v55, %v1120_v23  ;;  %v941_v28 = vsel %vm21_vm0, %v1274_v51, %v1119_v24 }
 0x7ce   :  { %v1123_v22 = vpop.permute.xlu1 %1122 }
 0x7cf   :  { %v1162_v9 = vpop.eup %1161  ;;  %v1125_v25 = vunpack.i.h.bf16 %v1123_v22  ;;  %v1124_v26 = vunpack.i.l.bf16 %v1123_v22 }
 0x7d0   :  { %v809_v2 = vsel %vm21_vm0, %v1162_v9, 0.0 }
 0x7d1   :  { %v1164_v3 = vpop.eup %1163  ;;  %810 = vadd.xlane.f32.xlu0 %v809_v2  ;;  %v945_v32 = vsel %vm943_vm3, %v942_v27, %v1125_v25  ;;  %v944_v33 = vsel %vm943_vm3, %v941_v28, %v1124_v26 }
 0x7d2   :  { %v812_v42 = vsel %vm21_vm0, %v1164_v3, 0.0 }
 0x7d5   :  { %813 = vadd.xlane.f32.xlu0 %v812_v42 }
 0x7eb   :  { %821 = vrot.lane.b32.xlu0 %v1294_v21, %s1173_s23 }
 0x85e   :  { %v811_v46 = vpop.xlane.xlu0 %810 }
 0x85f   :  { %1165 = vrcp.f32 %v811_v46 }
 0x862   :  { %v814_v47 = vpop.xlane.xlu0 %813 }
 0x863   :  { %1167 = vrcp.f32 %v814_v47 }
 0x866   :  { %v822_v4 = vpop.permute.xlu0 %821 }
 0x867   :  { %v827_v5 = vsel %vm143_vm2, %v822_v4, 0 }
 0x868   :  { %1097 = vmatpush3.bf16.msra.mxu0 %v827_v5 }
 0x869   :  { %v1166_v6 = vpop.eup %1165 }
 0x86a   :  { %v816_v8 = vmul.f32 %v1166_v6, %v1162_v9 }
 0x86c   :  { %v819_v10 = vpack.c.bf16 %v816_v8, %v816_v8 }
 0x86d   :  { %v1168_v11 = vpop.eup %1167 }
 0x86e   :  { %v818_v12 = vmul.f32 %v1168_v11, %v1164_v3  ;;  %1099 = vmatmul.mubr.msk.bf16.vlgmr.msra.gmra.mrb[28].mxu0 %vm21_vm0, %v819_v10 }
 0x870   :  { %v820_v20 = vpack.c.bf16 %v818_v12, %v818_v12 }
 0x872   :  { %1105 = vmatmul.mubr.msk.bf16.vlgmr.msra.gmra.mrb[28].mxu1 %vm21_vm0, %v820_v20 }
 0x941   :  { %v863_v7 = vpop.f32.mrb[28].mxu0 }
 0x942   :  { %v1100_v21 = vpop.f32.mrb[29].mxu0 }
 0x943   :  { %v866_v13 = vpop.f32.mrb[30].mxu0 }
 0x944   :  { %v1101_v34 = vpop.f32.mrb[31].mxu0 }
 0x945   :  { %v911_v14 = vpop.f32.mrb[28].mxu1 }
 0x946   :  { %v1126_v15 = vpack.i.bf16 %v911_v14, %v863_v7  ;;  %v1106_v16 = vpop.f32.mrb[29].mxu1 }
 0x947   :  { %v914_v17 = vpop.f32.mrb[30].mxu1 }
 0x948   :  { %v1107_v18 = vpop.f32.mrb[31].mxu1  ;;  %1127 = vrot.lane.b32.xlu0 %v1126_v15, %s1176_s26 }
 0x9ba   :  { %v1128_v31 = vpop.permute.xlu0 %1127 }
 0x9bb   :  { %v1130_v29 = vunpack.i.h.bf16 %v1128_v31  ;;  %v1129_v30 = vunpack.i.l.bf16 %v1128_v31 }
 0x9bd   :  { %v948_v35 = vsel %vm946_vm4, %v945_v32, %v1130_v29  ;;  %v947_v36 = vsel %vm946_vm4, %v944_v33, %v1129_v30 }
 0x9be   :  { %v950_v37 = vpack.c.bf16 %v948_v35, %v948_v35  ;;  %v949_v38 = vpack.c.bf16 %v947_v36, %v947_v36 }
 0x9c0   :  { %953 = vst.msk [vmem:[%s1390_s3 + $0x4] sm:$0xf] %vm951_vm5, %v950_v37  ;;  %952 = vst.msk [vmem:[%s1390_s3] sm:$0xf] %vm951_vm5, %v949_v38 }

// kernel: transformer_forward.36
= control target key start
LH: loop header
LB: loop body
LE: loop exit
PB: predicated region body
PF: predicated region fallthrough
CT: control target
= control target key end

     0   :  { %vm30_vm0 = vcmask 64512   ;;  %v1258_v0 = vmov 0.0   ;;  %vm1259_vm1 = vmmov 0   ;;  %s1260_s22 = smov 120   ;;  %v24_v8 = vlaneseq  ;;  %s1262_s29 = smov 104   ;;  %s1510_s1 = inlined_call_operand.vmem [shape: bf16[2,8,32], index: 1, kind: input, shape index: {}]   ;;  %s1511_s0 = inlined_call_operand.vmem [shape: bf16[2,8,32], index: 0, kind: input, shape index: {}]   ;;  %s1512_s3 = inlined_call_operand.vmem [shape: f32[2,1,8], index: 3, kind: input, shape index: {}]   ;;  %s1513_s2 = inlined_call_operand.vmem [shape: bf16[2,8,32], index: 2, kind: input, shape index: {}]   ;;  %s1514_s4 = inlined_call_operand.vmem [shape: bf16[2,8,32], index: 4, kind: output, shape index: {}]  }
   0x1   :  { %1101 = vmatprep.subr.bf16.mxu0 %v1258_v0  ;;  %v20_v1 = vld [vmem:[%s1510_s1] sm:$0xf]  ;;  %1107 = vmatprep.subr.bf16.mxu1 %v1258_v0  ;;  %v21_v2 = vld [vmem:[%s1510_s1 + $0x4] sm:$0xf]  ;;  %vm170_vm3 = vcmask 1043456   ;;  %s1263_s30 = smov 8  }
   0x2   :  { %v35_v3 = vsel %vm30_vm0, %v20_v1, 0  ;;  %v81_v4 = vsel %vm30_vm0, %v21_v2, 0  ;;  %1103 = vmatprep.mubr.msk.bf16.mxu0 %vm1259_vm1, %v1258_v0  ;;  %1109 = vmatprep.mubr.msk.bf16.mxu1 %vm1259_vm1, %v1258_v0  ;;  %v18_v5 = vld [vmem:[%s1511_s0] sm:$0xf]  ;;  %v19_v6 = vld [vmem:[%s1511_s0 + $0x4] sm:$0xf]  ;;  %v1319_v7 = vcombine.low %v21_v2, %v21_v2  ;;  %v1342_v30 = vcombine.low %v20_v1, %v20_v1 }
   0x3   :  { %1102 = vmatpush3.bf16.xpose.msra.mxu0 %v35_v3  ;;  %1108 = vmatpush3.bf16.xpose.msra.mxu1 %v81_v4  ;;  %v25_v9 = vshrl.u32 %v24_v8, 7  ;;  %v27_v10 = vand.u32 127, %v24_v8  ;;  %v1326_v12 = vld [vmem:[%s1512_s3] ss:$0 sm:$0xff]  ;;  %v1331_v14 = vld [vmem:[%s1512_s3 + $0x1] ss:$0 sm:$0xff]  ;;  %v1348_v41 = vcombine.low %v18_v5, %v18_v5  ;;  %v1359_v44 = vcombine.low %v19_v6, %v19_v6 }
   0x4   :  { %1113 = vmatprep.subr.bf16.mxu0 %v1258_v0  ;;  %1119 = vmatprep.subr.bf16.mxu1 %v1258_v0  ;;  %v1353_v42 = vld [vmem:[%s1513_s2] sm:$0xf]  ;;  %v23_v45 = vld [vmem:[%s1513_s2 + $0x4] sm:$0xf]  ;;  %s1261_s2 = smov 112   ;;  %s1264_s5 = smov 16  }
   0x5   :  { %324 = vrot.lane.b32.xlu1 %v1319_v7, %s1260_s22  ;;  %vm28_vm2 = vcmp.gt.s32.totalorder %v27_v10, %v25_v9  ;;  %v172_v43 = vsel %vm170_vm3, %v1353_v42, 0  ;;  %v218_v46 = vsel %vm170_vm3, %v23_v45, 0  ;;  %s1265_s6 = smov 24   ;;  %vm1024_vm4 = vcmask 130048  }
   0x6   :  { %v1334_v21 = vsel %vm28_vm2, -1e+30, %v1258_v0  ;;  %vm1027_vm5 = vcmask 195584   ;;  %vm1032_vm6 = vcmask 257024  }
   0xa   :  { %1104 = vmatmul.mubr.msk.bf16.vlgmr.msra.gmra.mrb[0].mxu0 %vm30_vm0, %v18_v5  ;;  %1110 = vmatmul.mubr.msk.bf16.vlgmr.msra.gmra.mrb[0].mxu1 %vm30_vm0, %v19_v6 }
   0xb   :  { %1115 = vmatprep.mubr.msk.bf16.mxu0 %vm1259_vm1, %v1258_v0  ;;  %1121 = vmatprep.mubr.msk.bf16.mxu1 %vm1259_vm1, %v1258_v0 }
   0xc   :  { %1114 = vmatpush3.bf16.msra.mxu0 %v172_v43  ;;  %1120 = vmatpush3.bf16.msra.mxu1 %v218_v46 }
   0xd   :  { %1125 = vmatprep.subr.bf16.mxu0 %v1258_v0  ;;  %1131 = vmatprep.subr.bf16.mxu1 %v1258_v0 }
  0x77   :  { %v325_v47 = vpop.permute.xlu1 %324 }
  0x78   :  { %v330_v59 = vsel %vm30_vm0, %v325_v47, 0 }
  0xdd   :  { %v71_v11 = vpop.f32.mrb[0].mxu0  ;;  %v117_v13 = vpop.f32.mrb[0].mxu1 }
  0xde   :  { %v123_v15 = vmul.f32 0.35355338, %v71_v11  ;;  %v1105_v16 = vpop.f32.mrb[1].mxu0  ;;  %v124_v17 = vmul.f32 0.35355338, %v117_v13  ;;  %v1111_v18 = vpop.f32.mrb[1].mxu1 }
  0xdf   :  { %v74_v19 = vpop.f32.mrb[2].mxu0  ;;  %v120_v20 = vpop.f32.mrb[2].mxu1 }
  0xe0   :  { %v139_v22 = vadd.f32 %v1326_v12, %v123_v15  ;;  %v140_v23 = vadd.f32 %v1331_v14, %v124_v17  ;;  %v1106_v24 = vpop.f32.mrb[3].mxu0  ;;  %v1112_v25 = vpop.f32.mrb[3].mxu1 }
  0xe2   :  { %v141_v26 = vadd.f32 %v139_v22, %v1334_v21  ;;  %v142_v27 = vadd.f32 %v140_v23, %v1334_v21 }
  0xe4   :  { %v143_v28 = vsel %vm30_vm0, %v141_v26, -inf  ;;  %v146_v29 = vsel %vm30_vm0, %v142_v27, -inf }
  0xe5   :  { %144 = vmax.xlane.f32.xlu0 %v143_v28 }
  0xe9   :  { %147 = vmax.xlane.f32.xlu0 %v146_v29 }
  0xff   :  { %268 = vrot.lane.b32.xlu0 %v1342_v30, %s1260_s22 }
 0x172   :  { %v145_v31 = vpop.xlane.xlu0 %144 }
 0x173   :  { %v149_v32 = vsub.f32 %v141_v26, %v145_v31  ;;  %v1395_v26 = vcombine.low %v23_v45, %v23_v45 }
 0x175   :  { %v151_v33 = vmul.f32 1.442695, %v149_v32 }
 0x176   :  { %v148_v34 = vpop.xlane.xlu0 %147 }
 0x177   :  { %1226 = vpow2.f32 %v151_v33  ;;  %v150_v35 = vsub.f32 %v142_v27, %v148_v34 }
 0x179   :  { %v153_v36 = vmul.f32 1.442695, %v150_v35 }
 0x17a   :  { %v269_v51 = vpop.permute.xlu0 %268 }
 0x17b   :  { %1228 = vpow2.f32 %v153_v36  ;;  %v274_v53 = vsel %vm30_vm0, %v269_v51, 0 }
 0x181   :  { %v1227_v37 = vpop.eup %1226 }
 0x182   :  { %v155_v38 = vsel %vm30_vm0, %v1227_v37, 0.0 }
 0x183   :  { %156 = vadd.xlane.f32.xlu1 %v155_v38  ;;  %v1409_v38 = vcombine.low %v1353_v42, %v1353_v42 }
 0x185   :  { %v1229_v39 = vpop.eup %1228 }
 0x186   :  { %v158_v40 = vsel %vm30_vm0, %v1229_v39, 0.0 }
 0x187   :  { %159 = vadd.xlane.f32.xlu1 %v158_v40 }
 0x198   :  { %263 = vrot.lane.b32.xlu1 %v1348_v41, %s1260_s22 }
 0x19c   :  { %319 = vrot.lane.b32.xlu1 %v1359_v44, %s1260_s22 }
 0x210   :  { %v157_v48 = vpop.xlane.xlu1 %156 }
 0x211   :  { %1230 = vrcp.f32 %v157_v48 }
 0x214   :  { %v160_v49 = vpop.xlane.xlu1 %159 }
 0x215   :  { %1232 = vrcp.f32 %v160_v49 }
 0x218   :  { %v264_v58 = vpop.permute.xlu1 %263 }
 0x21b   :  { %v1231_v50 = vpop.eup %1230 }
 0x21c   :  { %v162_v52 = vmul.f32 %v1231_v50, %v1227_v37  ;;  %v320_v60 = vpop.permute.xlu1 %319 }
 0x21e   :  { %v165_v54 = vpack.c.bf16 %v162_v52, %v162_v52 }
 0x21f   :  { %v1233_v55 = vpop.eup %1232 }
 0x220   :  { %v164_v56 = vmul.f32 %v1233_v55, %v1229_v39  ;;  %1116 = vmatmul.mubr.msk.bf16.vlgmr.msra.gmra.mrb[4].mxu0 %vm30_vm0, %v165_v54 }
 0x221   :  { %1126 = vmatpush3.bf16.xpose.msra.mxu0 %v274_v53  ;;  %1127 = vmatprep.mubr.msk.bf16.mxu0 %vm1259_vm1, %v1258_v0 }
 0x222   :  { %v166_v57 = vpack.c.bf16 %v164_v56, %v164_v56  ;;  %1137 = vmatprep.subr.bf16.mxu0 %v1258_v0 }
 0x224   :  { %1122 = vmatmul.mubr.msk.bf16.vlgmr.msra.gmra.mrb[4].mxu1 %vm30_vm0, %v166_v57 }
 0x225   :  { %1132 = vmatpush3.bf16.xpose.msra.mxu1 %v330_v59  ;;  %1133 = vmatprep.mubr.msk.bf16.mxu1 %vm1259_vm1, %v1258_v0 }
 0x226   :  { %1143 = vmatprep.subr.bf16.mxu1 %v1258_v0 }
 0x228   :  { %1128 = vmatmul.mubr.msk.bf16.vlgmr.msra.gmra.mrb[8].mxu0 %vm30_vm0, %v264_v58 }
 0x229   :  { %1139 = vmatprep.mubr.msk.bf16.mxu0 %vm1259_vm1, %v1258_v0 }
 0x22c   :  { %1134 = vmatmul.mubr.msk.bf16.vlgmr.msra.gmra.mrb[8].mxu1 %vm30_vm0, %v320_v60 }
 0x22d   :  { %1145 = vmatprep.mubr.msk.bf16.mxu1 %vm1259_vm1, %v1258_v0 }
 0x2f3   :  { %v1385_v61 = vpop.f32.mrb[4].mxu0 }
 0x2f4   :  { %v1117_v62 = vpop.f32.mrb[5].mxu0 }
 0x2f5   :  { %v211_v63 = vpop.f32.mrb[6].mxu0 }
 0x2f6   :  { %v1118_v1 = vpop.f32.mrb[7].mxu0 }
 0x2f7   :  { %v1387_v2 = vpop.f32.mrb[4].mxu1 }
 0x2f8   :  { %v1123_v3 = vpop.f32.mrb[5].mxu1 }
 0x2f9   :  { %v257_v4 = vpop.f32.mrb[6].mxu1 }
 0x2fa   :  { %v1124_v5 = vpop.f32.mrb[7].mxu1 }
 0x2fb   :  { %v310_v6 = vpop.f32.mrb[8].mxu0 }
 0x2fc   :  { %v372_v8 = vmul.f32 0.35355338, %v310_v6  ;;  %v1129_v9 = vpop.f32.mrb[9].mxu0 }
 0x2fd   :  { %v313_v10 = vpop.f32.mrb[10].mxu0 }
 0x2fe   :  { %v388_v11 = vadd.f32 %v1326_v12, %v372_v8  ;;  %v1130_v13 = vpop.f32.mrb[11].mxu0 }
 0x2ff   :  { %v366_v15 = vpop.f32.mrb[8].mxu1 }
 0x300   :  { %v373_v16 = vmul.f32 0.35355338, %v366_v15  ;;  %v1135_v17 = vpop.f32.mrb[9].mxu1  ;;  %v390_v18 = vadd.f32 %v388_v11, %v1334_v21 }
 0x301   :  { %v369_v19 = vpop.f32.mrb[10].mxu1 }
 0x302   :  { %v389_v20 = vadd.f32 %v1331_v14, %v373_v16  ;;  %v1136_v22 = vpop.f32.mrb[11].mxu1  ;;  %v392_v23 = vsel %vm30_vm0, %v390_v18, -inf }
 0x303   :  { %393 = vmax.xlane.f32.xlu0 %v392_v23 }
 0x304   :  { %v391_v24 = vadd.f32 %v389_v20, %v1334_v21 }
 0x306   :  { %v395_v25 = vsel %vm30_vm0, %v391_v24, -inf }
 0x307   :  { %396 = vmax.xlane.f32.xlu1 %v395_v25 }
 0x318   :  { %470 = vrot.lane.b32.xlu1 %v1395_v26, %s1260_s22 }
 0x31c   :  { %520 = vrot.lane.b32.xlu1 %v1342_v30, %s1261_s2 }
 0x320   :  { %570 = vrot.lane.b32.xlu1 %v1319_v7, %s1261_s2 }
 0x324   :  { %568 = vrot.lane.b32.xlu1 %v1359_v44, %s1261_s2 }
 0x390   :  { %v394_v27 = vpop.xlane.xlu0 %393 }
 0x391   :  { %v398_v28 = vsub.f32 %v390_v18, %v394_v27 }
 0x393   :  { %v400_v29 = vmul.f32 1.442695, %v398_v28 }
 0x394   :  { %v397_v31 = vpop.xlane.xlu1 %396 }
 0x395   :  { %1234 = vpow2.f32 %v400_v29  ;;  %v399_v32 = vsub.f32 %v391_v24, %v397_v31 }
 0x397   :  { %v402_v33 = vmul.f32 1.442695, %v399_v32 }
 0x398   :  { %v471_v39 = vpop.permute.xlu1 %470 }
 0x399   :  { %1236 = vpow2.f32 %v402_v33  ;;  %v476_v40 = vsel %vm170_vm3, %v471_v39, 0 }
 0x39a   :  { %1144 = vmatpush3.bf16.msra.mxu1 %v476_v40 }
 0x39b   :  { %1155 = vmatprep.subr.bf16.mxu1 %v1258_v0 }
 0x39c   :  { %v521_v47 = vpop.permute.xlu1 %520 }
 0x39d   :  { %v526_v54 = vsel %vm30_vm0, %v521_v47, 0 }
 0x39f   :  { %v1235_v34 = vpop.eup %1234 }
 0x3a0   :  { %v404_v35 = vsel %vm30_vm0, %v1235_v34, 0.0  ;;  %v571_v52 = vpop.permute.xlu1 %570 }
 0x3a1   :  { %405 = vadd.xlane.f32.xlu0 %v404_v35  ;;  %v576_v55 = vsel %vm30_vm0, %v571_v52, 0 }
 0x3a3   :  { %v1237_v36 = vpop.eup %1236 }
 0x3a4   :  { %v407_v37 = vsel %vm30_vm0, %v1237_v36, 0.0  ;;  %v569_v58 = vpop.permute.xlu1 %568 }
 0x3a5   :  { %408 = vadd.xlane.f32.xlu0 %v407_v37 }
 0x3bb   :  { %419 = vrot.lane.b32.xlu0 %v1409_v38, %s1260_s22 }
 0x3bf   :  { %518 = vrot.lane.b32.xlu0 %v1348_v41, %s1261_s2 }
 0x42e   :  { %v406_v43 = vpop.xlane.xlu0 %405 }
 0x42f   :  { %1238 = vrcp.f32 %v406_v43 }
 0x432   :  { %v409_v45 = vpop.xlane.xlu0 %408 }
 0x433   :  { %1240 = vrcp.f32 %v409_v45 }
 0x436   :  { %v420_v46 = vpop.permute.xlu0 %419 }
 0x437   :  { %v425_v42 = vsel %vm170_vm3, %v420_v46, 0 }
 0x438   :  { %1138 = vmatpush3.bf16.msra.mxu0 %v425_v42 }
 0x439   :  { %v1239_v48 = vpop.eup %1238  ;;  %1149 = vmatprep.subr.bf16.mxu0 %v1258_v0 }
 0x43a   :  { %v411_v49 = vmul.f32 %v1239_v48, %v1235_v34  ;;  %v519_v57 = vpop.permute.xlu0 %518 }
 0x43c   :  { %v414_v50 = vpack.c.bf16 %v411_v49, %v411_v49 }
 0x43d   :  { %v1241_v51 = vpop.eup %1240 }
 0x43e   :  { %v413_v53 = vmul.f32 %v1241_v51, %v1237_v36  ;;  %1140 = vmatmul.mubr.msk.bf16.vlgmr.msra.gmra.mrb[12].mxu0 %vm30_vm0, %v414_v50 }
 0x43f   :  { %1151 = vmatprep.mubr.msk.bf16.mxu0 %vm1259_vm1, %v1258_v0 }
 0x440   :  { %v415_v56 = vpack.c.bf16 %v413_v53, %v413_v53 }
 0x441   :  { %1150 = vmatpush3.bf16.xpose.msra.mxu0 %v526_v54 }
 0x442   :  { %1146 = vmatmul.mubr.msk.bf16.vlgmr.msra.gmra.mrb[12].mxu1 %vm30_vm0, %v415_v56  ;;  %1161 = vmatprep.subr.bf16.mxu0 %v1258_v0 }
 0x443   :  { %1156 = vmatpush3.bf16.xpose.msra.mxu1 %v576_v55  ;;  %1157 = vmatprep.mubr.msk.bf16.mxu1 %vm1259_vm1, %v1258_v0 }
 0x444   :  { %1167 = vmatprep.subr.bf16.mxu1 %v1258_v0 }
 0x448   :  { %1152 = vmatmul.mubr.msk.bf16.vlgmr.msra.gmra.mrb[16].mxu0 %vm30_vm0, %v519_v57 }
 0x449   :  { %1163 = vmatprep.mubr.msk.bf16.mxu0 %vm1259_vm1, %v1258_v0 }
 0x44a   :  { %1158 = vmatmul.mubr.msk.bf16.vlgmr.msra.gmra.mrb[16].mxu1 %vm30_vm0, %v569_v58 }
 0x44b   :  { %1169 = vmatprep.mubr.msk.bf16.mxu1 %vm1259_vm1, %v1258_v0 }
 0x511   :  { %v1435_v59 = vpop.f32.mrb[12].mxu0 }
 0x512   :  { %v1141_v60 = vpop.f32.mrb[13].mxu0 }
 0x513   :  { %v464_v62 = vpop.f32.mrb[14].mxu0 }
 0x514   :  { %v1142_v63 = vpop.f32.mrb[15].mxu0 }
 0x515   :  { %v1437_v1 = vpop.f32.mrb[12].mxu1 }
 0x516   :  { %v1205_v3 = vpack.i.bf16 %v1437_v1, %v1435_v59  ;;  %v1147_v4 = vpop.f32.mrb[13].mxu1 }
 0x517   :  { %v515_v5 = vpop.f32.mrb[14].mxu1 }
 0x518   :  { %v1148_v6 = vpop.f32.mrb[15].mxu1 }
 0x51b   :  { %v562_v8 = vpop.f32.mrb[16].mxu0 }
 0x51c   :  { %v618_v9 = vmul.f32 0.35355338, %v562_v8  ;;  %v1153_v10 = vpop.f32.mrb[17].mxu0 }
 0x51d   :  { %v565_v11 = vpop.f32.mrb[18].mxu0  ;;  %v612_v13 = vpop.f32.mrb[16].mxu1 }
 0x51e   :  { %v634_v15 = vadd.f32 %v1326_v12, %v618_v9  ;;  %v619_v16 = vmul.f32 0.35355338, %v612_v13  ;;  %v1154_v17 = vpop.f32.mrb[19].mxu0  ;;  %v1159_v18 = vpop.f32.mrb[17].mxu1 }
 0x51f   :  { %v615_v19 = vpop.f32.mrb[18].mxu1 }
 0x520   :  { %v635_v20 = vadd.f32 %v1331_v14, %v619_v16  ;;  %v1160_v22 = vpop.f32.mrb[19].mxu1  ;;  %v636_v23 = vadd.f32 %v634_v15, %v1334_v21 }
 0x522   :  { %v638_v24 = vsel %vm30_vm0, %v636_v23, -inf  ;;  %v637_v25 = vadd.f32 %v635_v20, %v1334_v21 }
 0x523   :  { %639 = vmax.xlane.f32.xlu0 %v638_v24 }
 0x524   :  { %v641_v27 = vsel %vm30_vm0, %v637_v25, -inf }
 0x525   :  { %642 = vmax.xlane.f32.xlu1 %v641_v27 }
 0x536   :  { %710 = vrot.lane.b32.xlu1 %v1395_v26, %s1261_s2 }
 0x53a   :  { %760 = vrot.lane.b32.xlu1 %v1342_v30, %s1262_s29 }
 0x53e   :  { %810 = vrot.lane.b32.xlu1 %v1319_v7, %s1262_s29 }
 0x542   :  { %808 = vrot.lane.b32.xlu1 %v1359_v44, %s1262_s29 }
 0x5b0   :  { %v640_v28 = vpop.xlane.xlu0 %639 }
 0x5b1   :  { %v644_v29 = vsub.f32 %v636_v23, %v640_v28 }
 0x5b2   :  { %v643_v31 = vpop.xlane.xlu1 %642 }
 0x5b3   :  { %v646_v32 = vmul.f32 1.442695, %v644_v29  ;;  %v645_v33 = vsub.f32 %v637_v25, %v643_v31 }
 0x5b5   :  { %1242 = vpow2.f32 %v646_v32  ;;  %v648_v34 = vmul.f32 1.442695, %v645_v33 }
 0x5b6   :  { %v711_v7 = vpop.permute.xlu1 %710 }
 0x5b7   :  { %1244 = vpow2.f32 %v648_v34  ;;  %v716_v39 = vsel %vm170_vm3, %v711_v7, 0 }
 0x5b8   :  { %1168 = vmatpush3.bf16.msra.mxu1 %v716_v39 }
 0x5b9   :  { %1179 = vmatprep.subr.bf16.mxu1 %v1258_v0 }
 0x5ba   :  { %v761_v46 = vpop.permute.xlu1 %760 }
 0x5bb   :  { %v766_v52 = vsel %vm30_vm0, %v761_v46, 0 }
 0x5be   :  { %v811_v50 = vpop.permute.xlu1 %810 }
 0x5bf   :  { %v1243_v35 = vpop.eup %1242 }
 0x5c0   :  { %v650_v36 = vsel %vm30_vm0, %v1243_v35, 0.0 }
 0x5c1   :  { %v1245_v37 = vpop.eup %1244  ;;  %651 = vadd.xlane.f32.xlu0 %v650_v36 }
 0x5c2   :  { %v653_v30 = vsel %vm30_vm0, %v1245_v37, 0.0  ;;  %v809_v55 = vpop.permute.xlu1 %808 }
 0x5c5   :  { %654 = vadd.xlane.f32.xlu0 %v653_v30 }
 0x5db   :  { %662 = vrot.lane.b32.xlu0 %v1409_v38, %s1261_s2 }
 0x5df   :  { %758 = vrot.lane.b32.xlu0 %v1348_v41, %s1262_s29  ;;  %v816_v41 = vsel %vm30_vm0, %v811_v50, 0 }
 0x64e   :  { %v652_v44 = vpop.xlane.xlu0 %651 }
 0x64f   :  { %1246 = vrcp.f32 %v652_v44 }
 0x652   :  { %v655_v40 = vpop.xlane.xlu0 %654 }
 0x653   :  { %1248 = vrcp.f32 %v655_v40 }
 0x656   :  { %v663_v43 = vpop.permute.xlu0 %662 }
 0x657   :  { %v668_v45 = vsel %vm170_vm3, %v663_v43, 0 }
 0x658   :  { %1162 = vmatpush3.bf16.msra.mxu0 %v668_v45 }
 0x659   :  { %v1247_v42 = vpop.eup %1246  ;;  %1173 = vmatprep.subr.bf16.mxu0 %v1258_v0 }
 0x65a   :  { %v657_v47 = vmul.f32 %v1247_v42, %v1243_v35  ;;  %v759_v54 = vpop.permute.xlu0 %758 }
 0x65c   :  { %v660_v48 = vpack.c.bf16 %v657_v47, %v657_v47 }
 0x65d   :  { %v1249_v49 = vpop.eup %1248 }
 0x65e   :  { %v659_v51 = vmul.f32 %v1249_v49, %v1245_v37  ;;  %1164 = vmatmul.mubr.msk.bf16.vlgmr.msra.gmra.mrb[20].mxu0 %vm30_vm0, %v660_v48 }
 0x65f   :  { %1175 = vmatprep.mubr.msk.bf16.mxu0 %vm1259_vm1, %v1258_v0 }
 0x660   :  { %v661_v53 = vpack.c.bf16 %v659_v51, %v659_v51 }
 0x661   :  { %1174 = vmatpush3.bf16.xpose.msra.mxu0 %v766_v52 }
 0x662   :  { %1170 = vmatmul.mubr.msk.bf16.vlgmr.msra.gmra.mrb[20].mxu1 %vm30_vm0, %v661_v53  ;;  %1185 = vmatprep.subr.bf16.mxu0 %v1258_v0 }
 0x663   :  { %1180 = vmatpush3.bf16.xpose.msra.mxu1 %v816_v41  ;;  %1181 = vmatprep.mubr.msk.bf16.mxu1 %vm1259_vm1, %v1258_v0 }
 0x664   :  { %1191 = vmatprep.subr.bf16.mxu1 %v1258_v0 }
 0x668   :  { %1176 = vmatmul.mubr.msk.bf16.vlgmr.msra.gmra.mrb[24].mxu0 %vm30_vm0, %v759_v54 }
 0x669   :  { %1187 = vmatprep.mubr.msk.bf16.mxu0 %vm1259_vm1, %v1258_v0 }
 0x66a   :  { %1182 = vmatmul.mubr.msk.bf16.vlgmr.msra.gmra.mrb[24].mxu1 %vm30_vm0, %v809_v55 }
 0x66b   :  { %1193 = vmatprep.mubr.msk.bf16.mxu1 %vm1259_vm1, %v1258_v0 }
 0x731   :  { %v704_v56 = vpop.f32.mrb[20].mxu0 }
 0x732   :  { %v1165_v57 = vpop.f32.mrb[21].mxu0 }
 0x733   :  { %v707_v58 = vpop.f32.mrb[22].mxu0 }
 0x734   :  { %v1166_v60 = vpop.f32.mrb[23].mxu0 }
 0x735   :  { %v752_v62 = vpop.f32.mrb[20].mxu1 }
 0x736   :  { %v1210_v63 = vpack.i.bf16 %v752_v62, %v704_v56  ;;  %v1171_v4 = vpop.f32.mrb[21].mxu1 }
 0x737   :  { %v755_v5 = vpop.f32.mrb[22].mxu1 }
 0x738   :  { %v1172_v6 = vpop.f32.mrb[23].mxu1 }
 0x73b   :  { %v802_v8 = vpop.f32.mrb[24].mxu0 }
 0x73c   :  { %v858_v9 = vmul.f32 0.35355338, %v802_v8  ;;  %v1177_v10 = vpop.f32.mrb[25].mxu0 }
 0x73d   :  { %v805_v11 = vpop.f32.mrb[26].mxu0  ;;  %v852_v13 = vpop.f32.mrb[24].mxu1 }
 0x73e   :  { %v874_v15 = vadd.f32 %v1326_v12, %v858_v9  ;;  %v859_v16 = vmul.f32 0.35355338, %v852_v13  ;;  %v1178_v17 = vpop.f32.mrb[27].mxu0  ;;  %v1183_v18 = vpop.f32.mrb[25].mxu1 }
 0x73f   :  { %v855_v0 = vpop.f32.mrb[26].mxu1 }
 0x740   :  { %v875_v19 = vadd.f32 %v1331_v14, %v859_v16  ;;  %v1184_v20 = vpop.f32.mrb[27].mxu1  ;;  %v876_v22 = vadd.f32 %v874_v15, %v1334_v21 }
 0x742   :  { %v878_v23 = vsel %vm30_vm0, %v876_v22, -inf  ;;  %v877_v24 = vadd.f32 %v875_v19, %v1334_v21 }
 0x743   :  { %879 = vmax.xlane.f32.xlu0 %v878_v23 }
 0x744   :  { %v881_v25 = vsel %vm30_vm0, %v877_v24, -inf }
 0x745   :  { %882 = vmax.xlane.f32.xlu1 %v881_v25 }
 0x756   :  { %950 = vrot.lane.b32.xlu1 %v1395_v26, %s1262_s29 }
 0x75a   :  { %1206 = vrot.lane.b32.xlu1 %v1205_v3, %s1263_s30 }
 0x75e   :  { %1211 = vrot.lane.b32.xlu1 %v1210_v63, %s1264_s5 }
 0x7d0   :  { %v880_v12 = vpop.xlane.xlu0 %879 }
 0x7d1   :  { %v884_v14 = vsub.f32 %v876_v22, %v880_v12 }
 0x7d2   :  { %v883_v27 = vpop.xlane.xlu1 %882 }
 0x7d3   :  { %v886_v28 = vmul.f32 1.442695, %v884_v14  ;;  %v885_v29 = vsub.f32 %v877_v24, %v883_v27 }
 0x7d5   :  { %1250 = vpow2.f32 %v886_v28  ;;  %v888_v21 = vmul.f32 1.442695, %v885_v29 }
 0x7d6   :  { %v951_v31 = vpop.permute.xlu1 %950 }
 0x7d7   :  { %1252 = vpow2.f32 %v888_v21  ;;  %v956_v32 = vsel %vm170_vm3, %v951_v31, 0 }
 0x7d8   :  { %1192 = vmatpush3.bf16.msra.mxu1 %v956_v32 }
 0x7da   :  { %v1207_v51 = vpop.permute.xlu1 %1206 }
 0x7db   :  { %v1209_v41 = vunpack.i.h.bf16 %v1207_v51  ;;  %v1208_v53 = vunpack.i.l.bf16 %v1207_v51 }
 0x7dd   :  { %v1023_v57 = vsel %vm30_vm0, %v1387_v2, %v1209_v41  ;;  %v1022_v58 = vsel %vm30_vm0, %v1385_v61, %v1208_v53 }
 0x7de   :  { %v1212_v52 = vpop.permute.xlu1 %1211 }
 0x7df   :  { %v1251_v26 = vpop.eup %1250  ;;  %v1214_v54 = vunpack.i.h.bf16 %v1212_v52  ;;  %v1213_v55 = vunpack.i.l.bf16 %v1212_v52 }
 0x7e0   :  { %v890_v33 = vsel %vm30_vm0, %v1251_v26, 0.0 }
 0x7e1   :  { %v1253_v34 = vpop.eup %1252  ;;  %891 = vadd.xlane.f32.xlu0 %v890_v33  ;;  %v1026_v63 = vsel %vm1024_vm4, %v1023_v57, %v1214_v54  ;;  %v1025_v4 = vsel %vm1024_vm4, %v1022_v58, %v1213_v55 }
 0x7e2   :  { %v893_v59 = vsel %vm30_vm0, %v1253_v34, 0.0 }
 0x7e5   :  { %894 = vadd.xlane.f32.xlu0 %v893_v59 }
 0x7fb   :  { %902 = vrot.lane.b32.xlu0 %v1409_v38, %s1262_s29 }
 0x86e   :  { %v892_v1 = vpop.xlane.xlu0 %891 }
 0x86f   :  { %1254 = vrcp.f32 %v892_v1 }
 0x872   :  { %v895_v3 = vpop.xlane.xlu0 %894 }
 0x873   :  { %1256 = vrcp.f32 %v895_v3 }
 0x876   :  { %v903_v35 = vpop.permute.xlu0 %902 }
 0x877   :  { %v908_v36 = vsel %vm170_vm3, %v903_v35, 0 }
 0x878   :  { %1186 = vmatpush3.bf16.msra.mxu0 %v908_v36 }
 0x879   :  { %v1255_v37 = vpop.eup %1254 }
 0x87a   :  { %v897_v30 = vmul.f32 %v1255_v37, %v1251_v26 }
 0x87c   :  { %v900_v7 = vpack.c.bf16 %v897_v30, %v897_v30 }
 0x87d   :  { %v1257_v39 = vpop.eup %1256 }
 0x87e   :  { %v899_v44 = vmul.f32 %v1257_v39, %v1253_v34  ;;  %1188 = vmatmul.mubr.msk.bf16.vlgmr.msra.gmra.mrb[28].mxu0 %vm30_vm0, %v900_v7 }
 0x880   :  { %v901_v40 = vpack.c.bf16 %v899_v44, %v899_v44 }
 0x882   :  { %1194 = vmatmul.mubr.msk.bf16.vlgmr.msra.gmra.mrb[28].mxu1 %vm30_vm0, %v901_v40 }
 0x951   :  { %v944_v43 = vpop.f32.mrb[28].mxu0 }
 0x952   :  { %v1189_v38 = vpop.f32.mrb[29].mxu0 }
 0x953   :  { %v947_v45 = vpop.f32.mrb[30].mxu0 }
 0x954   :  { %v1190_v46 = vpop.f32.mrb[31].mxu0 }
 0x955   :  { %v992_v42 = vpop.f32.mrb[28].mxu1 }
 0x956   :  { %v1215_v47 = vpack.i.bf16 %v992_v42, %v944_v43  ;;  %v1195_v48 = vpop.f32.mrb[29].mxu1 }
 0x957   :  { %v995_v49 = vpop.f32.mrb[30].mxu1 }
 0x958   :  { %v1196_v50 = vpop.f32.mrb[31].mxu1  ;;  %1216 = vrot.lane.b32.xlu0 %v1215_v47, %s1265_s6 }
 0x9ca   :  { %v1217_v56 = vpop.permute.xlu0 %1216 }
 0x9cb   :  { %v1219_v60 = vunpack.i.h.bf16 %v1217_v56  ;;  %v1218_v62 = vunpack.i.l.bf16 %v1217_v56 }
 0x9cd   :  { %v1029_v5 = vsel %vm1027_vm5, %v1026_v63, %v1219_v60  ;;  %v1028_v6 = vsel %vm1027_vm5, %v1025_v4, %v1218_v62 }
 0x9ce   :  { %v1031_v8 = vpack.c.bf16 %v1029_v5, %v1029_v5  ;;  %v1030_v9 = vpack.c.bf16 %v1028_v6, %v1028_v6 }
 0x9d0   :  { %1034 = vst.msk [vmem:[%s1514_s4 + $0x4] sm:$0xf] %vm1032_vm6, %v1031_v8  ;;  %1033 = vst.msk [vmem:[%s1514_s4] sm:$0xf] %vm1032_vm6, %v1030_v9 }

</bundles_post_ra>
